<compile_context>
chip_gen: v6e
topology: v6e:2x2x1
jax: 0.10.0
libtpu: 0.0.40
codegen_flags: <defaults>
</compile_context>

<pallas_src>
import functools

import jax
import jax.numpy as jnp
import numpy as np
from jax.experimental import pallas as pl
from jax.experimental.pallas import tpu as pltpu

LRELU_SLOPE = 0.2
MAX_TM = 1024   # lane-tile cap; only the embedding conv (M=2048) exceeds it.


# ----------------------------- Pallas kernels ------------------------------ #

def _conv_kernel(*refs, slope, has_skip):
    """out = [leakyrelu](W @ A + b) [+ skip].

    A: (K, TM) activations / im2col patches (pixels on lanes),
    W: (Cout, K), b: (Cout, 1), skip/out: (Cout, TM).
    """
    if has_skip:
        a_ref, w_ref, b_ref, skip_ref, o_ref = refs
    else:
        a_ref, w_ref, b_ref, o_ref = refs
        skip_ref = None
    acc = jnp.dot(w_ref[...], a_ref[...], preferred_element_type=jnp.float32)
    acc = acc + b_ref[...]
    if slope is not None:
        acc = jnp.where(acc >= 0.0, acc, acc * slope)
    if skip_ref is not None:
        acc = acc + skip_ref[...]
    o_ref[...] = acc.astype(o_ref.dtype)


def _final_head_kernel(cols_ref, segemb_ref, wf_ref, bf_ref, wh_ref, bh_ref,
                       o_ref, *, slope):
    """Fused final{2,3,4} 3x3 conv + prediction head for one pyramid level.

    feat = leakyrelu(Wf @ cols + bf)                   (C, M)
    comb = Wh @ feat + bh,  Wh = [Wseg ; Wout]         (C+1, M)
    pred = comb[C] + sum_c segemb[c] * comb[c]         (1, M)  lane-dense
    """
    feat = jnp.dot(wf_ref[...], cols_ref[...],
                   preferred_element_type=jnp.float32) + bf_ref[...]
    feat = jnp.where(feat >= 0.0, feat, feat * slope)
    comb = jnp.dot(wh_ref[...], feat,
                   preferred_element_type=jnp.float32) + bh_ref[...]
    seg = comb[:-1, :]           # seg-conv channels
    out = comb[-1:, :]           # output-conv (folded-in extra row)
    pred = out + jnp.sum(segemb_ref[...] * seg, axis=0, keepdims=True)
    o_ref[...] = pred.astype(o_ref.dtype)


# ----------------------------- Pallas wrappers ------------------------------ #

def conv_matmul(a, w2, b2, slope, skip=None):
    """a: (K, M); w2: (Cout, K); b2: (Cout, 1); skip: (Cout, M) or None."""
    k, m = a.shape
    cout = w2.shape[0]
    tm = m if m <= MAX_TM else MAX_TM
    assert m % tm == 0, (m, tm)          # all M here are powers of two
    has_skip = skip is not None
    kernel = functools.partial(_conv_kernel, slope=slope, has_skip=has_skip)
    in_specs = [
        pl.BlockSpec((k, tm), lambda i: (0, i)),
        pl.BlockSpec((cout, k), lambda i: (0, 0)),
        pl.BlockSpec((cout, 1), lambda i: (0, 0)),
    ]
    args = [a, w2, b2]
    if has_skip:
        in_specs.append(pl.BlockSpec((cout, tm), lambda i: (0, i)))
        args.append(skip)
    return pl.pallas_call(
        kernel,
        out_shape=jax.ShapeDtypeStruct((cout, m), jnp.float32),
        grid=(m // tm,),
        in_specs=in_specs,
        out_specs=pl.BlockSpec((cout, tm), lambda i: (0, i)),
        compiler_params=pltpu.CompilerParams(
            dimension_semantics=("parallel",)),
    )(*args)


def fused_final_head(cols, segemb, wf2, bf2, wh2, bh2):
    """cols: (Kf, M); segemb: (C, M); returns pred (1, M)."""
    kf, m = cols.shape
    c = segemb.shape[0]
    ch = wh2.shape[0]            # C + 1
    return pl.pallas_call(
        functools.partial(_final_head_kernel, slope=LRELU_SLOPE),
        out_shape=jax.ShapeDtypeStruct((1, m), jnp.float32),
        grid=(1,),
        in_specs=[
            pl.BlockSpec((kf, m), lambda i: (0, 0)),
            pl.BlockSpec((c, m), lambda i: (0, 0)),
            pl.BlockSpec((c, kf), lambda i: (0, 0)),
            pl.BlockSpec((c, 1), lambda i: (0, 0)),
            pl.BlockSpec((ch, c), lambda i: (0, 0)),
            pl.BlockSpec((ch, 1), lambda i: (0, 0)),
        ],
        out_specs=pl.BlockSpec((1, m), lambda i: (0, 0)),
        compiler_params=pltpu.CompilerParams(
            dimension_semantics=("parallel",)),
    )(cols, segemb, wf2, bf2, wh2, bh2)


# -------------------------------- conv glue --------------------------------- #

def _im2col_t(x, kh, kw, stride, padding):
    """x: (C, B, H, W) -> cols (kh*kw*C, B*Ho*Wo), K ordered (ky, kx, c)."""
    c, b, h, w = x.shape
    if padding > 0:
        x = jnp.pad(x, ((0, 0), (0, 0), (padding, padding), (padding, padding)))
    ho = (h + 2 * padding - kh) // stride + 1
    wo = (w + 2 * padding - kw) // stride + 1
    patches = []
    for ky in range(kh):
        for kx in range(kw):
            patches.append(
                x[:, :, ky:ky + stride * ho:stride, kx:kx + stride * wo:stride])
    cols = jnp.stack(patches, axis=0)                 # (kh*kw, C, B, Ho, Wo)
    return cols.reshape(kh * kw * c, b * ho * wo), ho, wo


def upsample2x_bilinear(x):
    """(C, B, H, W) bilinear x2 on H,W; half-pixel == torch align_corners=False."""
    c, b, h, w = x.shape
    return jax.image.resize(x, (c, b, 2 * h, 2 * w), method="bilinear")


def avg_pool_2x2(x):
    c, b, h, w = x.shape
    return x.reshape(c, b, h // 2, 2, w // 2, 2).mean(axis=(3, 5))


# ------------------------------ parameters ---------------------------------- #

def init_params(key, num_input_channels, num_labels, num_filters, kernel_size):
    nf = num_filters
    k = kernel_size

    def conv_p(key, kh, kw, cin, cout):
        k1, k2 = jax.random.split(key)
        w = jax.random.normal(k1, (kh, kw, cin, cout), jnp.float32)
        w = w * (1.0 / np.sqrt(kh * kw * cin))
        b = 0.01 * jax.random.normal(k2, (cout,), jnp.float32)
        return {"w": w, "b": b}

    names_shapes = [
        ("enc1", (k, k, num_input_channels, nf)),
        ("enc2", (k, k, nf, 2 * nf)),
        ("enc3", (k, k, 2 * nf, 4 * nf)),
        ("enc4", (k, k, 4 * nf, 8 * nf)),
        ("enc5", (k, k, 8 * nf, 8 * nf)),
        ("lat2", (1, 1, 2 * nf, 4 * nf)),
        ("lat3", (1, 1, 4 * nf, 4 * nf)),
        ("lat4", (1, 1, 8 * nf, 4 * nf)),
        ("lat5", (1, 1, 8 * nf, 4 * nf)),
        ("final2", (k, k, 4 * nf, 2 * nf)),
        ("final3", (k, k, 4 * nf, 2 * nf)),
        ("final4", (k, k, 4 * nf, 2 * nf)),
        ("output", (1, 1, 2 * nf, 1)),
        ("seg", (1, 1, 2 * nf, 2 * nf)),
        ("embedding", (1, 1, num_labels, 2 * nf)),
    ]
    keys = jax.random.split(key, len(names_shapes))
    return {name: conv_p(kk, *shape)
            for kk, (name, shape) in zip(keys, names_shapes)}


# -------------------------------- forward ----------------------------------- #

def fpse_forward(params, images_nchw, segmaps_nchw, kernel_size):
    padding = int(np.ceil((kernel_size - 1.0) / 2))
    images = jnp.transpose(images_nchw, (1, 0, 2, 3))    # NCHW -> (C, B, H, W)
    segmaps = jnp.transpose(segmaps_nchw, (1, 0, 2, 3))

    def w2b2(name):
        w = params[name]["w"]
        b = params[name]["b"]
        kh, kw, cin, cout = w.shape
        return w.reshape(kh * kw * cin, cout).T, b.reshape(cout, 1)

    def conv_block(name, x, stride, pad, slope=LRELU_SLOPE, skip=None):
        w2, b2 = w2b2(name)
        kh, kw, _, cout = params[name]["w"].shape
        c, b, h, w = x.shape
        if kh == 1 and kw == 1 and stride == 1 and pad == 0:
            a, ho, wo = x.reshape(c, b * h * w), h, w
        else:
            a, ho, wo = _im2col_t(x, kh, kw, stride, pad)
        skip2 = None if skip is None else skip.reshape(cout, b * ho * wo)
        out = conv_matmul(a, w2, b2, slope, skip2)
        return out.reshape(cout, b, ho, wo)

    feat11 = conv_block("enc1", images, 2, padding)
    feat12 = conv_block("enc2", feat11, 2, padding)
    feat13 = conv_block("enc3", feat12, 2, padding)
    feat14 = conv_block("enc4", feat13, 2, padding)
    feat15 = conv_block("enc5", feat14, 2, padding)

    # FPN: "upsample2x + lateral" add fused into the lateral conv epilogue.
    feat25 = conv_block("lat5", feat15, 1, 0)
    feat24 = conv_block("lat4", feat14, 1, 0, skip=upsample2x_bilinear(feat25))
    feat23 = conv_block("lat3", feat13, 1, 0, skip=upsample2x_bilinear(feat24))
    feat22 = conv_block("lat2", feat12, 1, 0, skip=upsample2x_bilinear(feat23))

    segembs = conv_block("embedding", segmaps, 1, 0, slope=None)
    segembs = avg_pool_2x2(segembs)
    segembs2 = avg_pool_2x2(segembs)
    segembs3 = avg_pool_2x2(segembs2)
    segembs4 = avg_pool_2x2(segembs3)

    # Shared head weights: output-conv folded into the seg-conv matmul (extra row).
    w_seg2, b_seg2 = w2b2("seg")        # (C, C), (C, 1)
    w_out2, b_out2 = w2b2("output")     # (1, C), (1, 1)
    wh2 = jnp.concatenate([w_seg2, w_out2], axis=0)    # (C+1, C)
    bh2 = jnp.concatenate([b_seg2, b_out2], axis=0)    # (C+1, 1)

    def head(final_name, feat_in, segemb):
        wf2, bf2 = w2b2(final_name)
        cols, ho, wo = _im2col_t(feat_in, kernel_size, kernel_size, 1, padding)
        c2, b = segemb.shape[0], segemb.shape[1]
        m = b * ho * wo
        pred = fused_final_head(cols, segemb.reshape(c2, m), wf2, bf2, wh2, bh2)
        return jnp.transpose(pred.reshape(1, b, ho, wo), (1, 0, 2, 3))  # NCHW

    pred2 = head("final2", feat22, segembs2)
    pred3 = head("final3", feat23, segembs3)
    pred4 = head("final4", feat24, segembs4)
    return pred2, pred3, pred4


# --------------------------------- main -------------------------------------- #

if __name__ == "__main__":
    num_input_channels = 3
    num_labels = 4
    num_filters = 8
    kernel_size = 3
    B, H, W = 2, 32, 32

    root = jax.random.PRNGKey(0)
    k_params, k_img, k_seg = jax.random.split(root, 3)

    params = init_params(k_params, num_input_channels, num_labels,
                         num_filters, kernel_size)
    images = jax.random.normal(k_img, (B, num_input_channels, H, W), jnp.float32)
    segmaps = jax.random.uniform(k_seg, (B, num_labels, H, W), jnp.float32)

    fwd = jax.jit(functools.partial(fpse_forward, kernel_size=kernel_size))
    pred2, pred3, pred4 = fwd(params, images, segmaps)
    jax.block_until_ready((pred2, pred3, pred4))

    assert pred2.shape == (B, 1, H // 4, W // 4), pred2.shape
    assert pred3.shape == (B, 1, H // 8, W // 8), pred3.shape
    assert pred4.shape == (B, 1, H // 16, W // 16), pred4.shape
    assert all(bool(jnp.isfinite(p).all()) for p in (pred2, pred3, pred4))
    print("KERNEL_OK")
</pallas_src>

<mosaic_0001>
module attributes {stable_mosaic.version = 11 : i64} {
  func.func @_conv_kernel(%arg0: i32, %arg1: memref<27x512xf32, #tpu.memory_space<vmem>>, %arg2: memref<8x27xf32, #tpu.memory_space<vmem>>, %arg3: memref<8x1xf32, #tpu.memory_space<vmem>>, %arg4: memref<8x512xf32, #tpu.memory_space<vmem>>) attributes {dimension_semantics = [#tpu.dimension_semantics<parallel>], iteration_bounds = array<i64: 1>, scalar_prefetch = 0 : i64, scratch_operands = 0 : i64, tpu.core_type = #tpu.core_type<tc>, window_params = [{transform_indices = @transform_0, window_bounds = array<i64: 27, 512>}, {pipeline_mode = #tpu.pipeline_mode<synchronous>, transform_indices = @transform_1, window_bounds = array<i64: 8, 27>}, {pipeline_mode = #tpu.pipeline_mode<synchronous>, transform_indices = @transform_2, window_bounds = array<i64: 8, 1>}, {transform_indices = @transform_3, window_bounds = array<i64: 8, 512>}]} {
    %c0 = arith.constant 0 : index
    %c0_0 = arith.constant 0 : index
    %0 = vector.load %arg2[%c0, %c0_0] : memref<8x27xf32, #tpu.memory_space<vmem>>, vector<8x27xf32>
    %c0_1 = arith.constant 0 : index
    %c0_2 = arith.constant 0 : index
    %1 = vector.load %arg1[%c0_1, %c0_2] : memref<27x512xf32, #tpu.memory_space<vmem>>, vector<27x512xf32>
    %cst = arith.constant dense<0.000000e+00> : vector<8x512xf32>
    %2 = tpu.matmul %0, %1, %cst {dimension_numbers = #tpu.dot_dimension_numbers<[1], [0], [0], [1], [0, 0, 1, 1], [], []>} : vector<8x27xf32>, vector<27x512xf32>, vector<8x512xf32> -> vector<8x512xf32>
    %c0_3 = arith.constant 0 : index
    %c0_4 = arith.constant 0 : index
    %3 = vector.load %arg3[%c0_3, %c0_4] : memref<8x1xf32, #tpu.memory_space<vmem>>, vector<8x1xf32>
    %4 = vector.broadcast %3 : vector<8x1xf32> to vector<8x512xf32>
    %5 = arith.addf %2, %4 : vector<8x512xf32>
    %cst_5 = arith.constant 0.000000e+00 : f32
    %6 = vector.broadcast %cst_5 : f32 to vector<8x512xf32>
    %7 = arith.cmpf oge, %5, %6 : vector<8x512xf32>
    %cst_6 = arith.constant 2.000000e-01 : f32
    %8 = vector.broadcast %cst_6 : f32 to vector<8x512xf32>
    %9 = arith.mulf %5, %8 : vector<8x512xf32>
    %10 = arith.select %7, %5, %9 : vector<8x512xi1>, vector<8x512xf32>
    %c0_7 = arith.constant 0 : index
    %c0_8 = arith.constant 0 : index
    %11 = vector.load %arg4[%c0_7, %c0_8] : memref<8x512xf32, #tpu.memory_space<vmem>>, vector<8x512xf32>
    tpu.vector_store %arg4[%c0_7, %c0_8], %10 {strides = array<i32>} : memref<8x512xf32, #tpu.memory_space<vmem>>, vector<8x512xf32>,
    return
  }
  func.func @transform_0(%arg0: i32) -> (i32, i32) {
    %c0_i32 = arith.constant 0 : i32
    %c0_i32_0 = arith.constant 0 : i32
    return %c0_i32, %arg0 : i32, i32
  }
  func.func @transform_1(%arg0: i32) -> (i32, i32) {
    %c0_i32 = arith.constant 0 : i32
    %c0_i32_0 = arith.constant 0 : i32
    %c0_i32_1 = arith.constant 0 : i32
    return %c0_i32, %c0_i32_0 : i32, i32
  }
  func.func @transform_2(%arg0: i32) -> (i32, i32) {
    %c0_i32 = arith.constant 0 : i32
    %c0_i32_0 = arith.constant 0 : i32
    %c0_i32_1 = arith.constant 0 : i32
    return %c0_i32, %c0_i32_0 : i32, i32
  }
  func.func @transform_3(%arg0: i32) -> (i32, i32) {
    %c0_i32 = arith.constant 0 : i32
    %c0_i32_0 = arith.constant 0 : i32
    return %c0_i32, %arg0 : i32, i32
  }
}

module attributes {stable_mosaic.version = 11 : i64} {
  func.func @_conv_kernel(%arg0: i32, %arg1: memref<72x128xf32, #tpu.memory_space<vmem>>, %arg2: memref<16x72xf32, #tpu.memory_space<vmem>>, %arg3: memref<16x1xf32, #tpu.memory_space<vmem>>, %arg4: memref<16x128xf32, #tpu.memory_space<vmem>>) attributes {dimension_semantics = [#tpu.dimension_semantics<parallel>], iteration_bounds = array<i64: 1>, scalar_prefetch = 0 : i64, scratch_operands = 0 : i64, tpu.core_type = #tpu.core_type<tc>, window_params = [{transform_indices = @transform_0, window_bounds = array<i64: 72, 128>}, {pipeline_mode = #tpu.pipeline_mode<synchronous>, transform_indices = @transform_1, window_bounds = array<i64: 16, 72>}, {pipeline_mode = #tpu.pipeline_mode<synchronous>, transform_indices = @transform_2, window_bounds = array<i64: 16, 1>}, {transform_indices = @transform_3, window_bounds = array<i64: 16, 128>}]} {
    %c0 = arith.constant 0 : index
    %c0_0 = arith.constant 0 : index
    %0 = vector.load %arg2[%c0, %c0_0] : memref<16x72xf32, #tpu.memory_space<vmem>>, vector<16x72xf32>
    %c0_1 = arith.constant 0 : index
    %c0_2 = arith.constant 0 : index
    %1 = vector.load %arg1[%c0_1, %c0_2] : memref<72x128xf32, #tpu.memory_space<vmem>>, vector<72x128xf32>
    %cst = arith.constant dense<0.000000e+00> : vector<16x128xf32>
    %2 = tpu.matmul %0, %1, %cst {dimension_numbers = #tpu.dot_dimension_numbers<[1], [0], [0], [1], [0, 0, 1, 1], [], []>} : vector<16x72xf32>, vector<72x128xf32>, vector<16x128xf32> -> vector<16x128xf32>
    %c0_3 = arith.constant 0 : index
    %c0_4 = arith.constant 0 : index
    %3 = vector.load %arg3[%c0_3, %c0_4] : memref<16x1xf32, #tpu.memory_space<vmem>>, vector<16x1xf32>
    %4 = vector.broadcast %3 : vector<16x1xf32> to vector<16x128xf32>
    %5 = arith.addf %2, %4 : vector<16x128xf32>
    %cst_5 = arith.constant 0.000000e+00 : f32
    %6 = vector.broadcast %cst_5 : f32 to vector<16x128xf32>
    %7 = arith.cmpf oge, %5, %6 : vector<16x128xf32>
    %cst_6 = arith.constant 2.000000e-01 : f32
    %8 = vector.broadcast %cst_6 : f32 to vector<16x128xf32>
    %9 = arith.mulf %5, %8 : vector<16x128xf32>
    %10 = arith.select %7, %5, %9 : vector<16x128xi1>, vector<16x128xf32>
    %c0_7 = arith.constant 0 : index
    %c0_8 = arith.constant 0 : index
    %11 = vector.load %arg4[%c0_7, %c0_8] : memref<16x128xf32, #tpu.memory_space<vmem>>, vector<16x128xf32>
    tpu.vector_store %arg4[%c0_7, %c0_8], %10 {strides = array<i32>} : memref<16x128xf32, #tpu.memory_space<vmem>>, vector<16x128xf32>,
    return
  }
  func.func @transform_0(%arg0: i32) -> (i32, i32) {
    %c0_i32 = arith.constant 0 : i32
    %c0_i32_0 = arith.constant 0 : i32
    return %c0_i32, %arg0 : i32, i32
  }
  func.func @transform_1(%arg0: i32) -> (i32, i32) {
    %c0_i32 = arith.constant 0 : i32
    %c0_i32_0 = arith.constant 0 : i32
    %c0_i32_1 = arith.constant 0 : i32
    return %c0_i32, %c0_i32_0 : i32, i32
  }
  func.func @transform_2(%arg0: i32) -> (i32, i32) {
    %c0_i32 = arith.constant 0 : i32
    %c0_i32_0 = arith.constant 0 : i32
    %c0_i32_1 = arith.constant 0 : i32
    return %c0_i32, %c0_i32_0 : i32, i32
  }
  func.func @transform_3(%arg0: i32) -> (i32, i32) {
    %c0_i32 = arith.constant 0 : i32
    %c0_i32_0 = arith.constant 0 : i32
    return %c0_i32, %arg0 : i32, i32
  }
}

module attributes {stable_mosaic.version = 11 : i64} {
  func.func @_conv_kernel(%arg0: i32, %arg1: memref<144x32xf32, #tpu.memory_space<vmem>>, %arg2: memref<32x144xf32, #tpu.memory_space<vmem>>, %arg3: memref<32x1xf32, #tpu.memory_space<vmem>>, %arg4: memref<32x32xf32, #tpu.memory_space<vmem>>) attributes {dimension_semantics = [#tpu.dimension_semantics<parallel>], iteration_bounds = array<i64: 1>, scalar_prefetch = 0 : i64, scratch_operands = 0 : i64, tpu.core_type = #tpu.core_type<tc>, window_params = [{transform_indices = @transform_0, window_bounds = array<i64: 144, 32>}, {pipeline_mode = #tpu.pipeline_mode<synchronous>, transform_indices = @transform_1, window_bounds = array<i64: 32, 144>}, {pipeline_mode = #tpu.pipeline_mode<synchronous>, transform_indices = @transform_2, window_bounds = array<i64: 32, 1>}, {transform_indices = @transform_3, window_bounds = array<i64: 32, 32>}]} {
    %c0 = arith.constant 0 : index
    %c0_0 = arith.constant 0 : index
    %0 = vector.load %arg2[%c0, %c0_0] : memref<32x144xf32, #tpu.memory_space<vmem>>, vector<32x144xf32>
    %c0_1 = arith.constant 0 : index
    %c0_2 = arith.constant 0 : index
    %1 = vector.load %arg1[%c0_1, %c0_2] : memref<144x32xf32, #tpu.memory_space<vmem>>, vector<144x32xf32>
    %cst = arith.constant dense<0.000000e+00> : vector<32x32xf32>
    %2 = tpu.matmul %0, %1, %cst {dimension_numbers = #tpu.dot_dimension_numbers<[1], [0], [0], [1], [0, 0, 1, 1], [], []>} : vector<32x144xf32>, vector<144x32xf32>, vector<32x32xf32> -> vector<32x32xf32>
    %c0_3 = arith.constant 0 : index
    %c0_4 = arith.constant 0 : index
    %3 = vector.load %arg3[%c0_3, %c0_4] : memref<32x1xf32, #tpu.memory_space<vmem>>, vector<32x1xf32>
    %4 = vector.broadcast %3 : vector<32x1xf32> to vector<32x32xf32>
    %5 = arith.addf %2, %4 : vector<32x32xf32>
    %cst_5 = arith.constant 0.000000e+00 : f32
    %6 = vector.broadcast %cst_5 : f32 to vector<32x32xf32>
    %7 = arith.cmpf oge, %5, %6 : vector<32x32xf32>
    %cst_6 = arith.constant 2.000000e-01 : f32
    %8 = vector.broadcast %cst_6 : f32 to vector<32x32xf32>
    %9 = arith.mulf %5, %8 : vector<32x32xf32>
    %10 = arith.select %7, %5, %9 : vector<32x32xi1>, vector<32x32xf32>
    %c0_7 = arith.constant 0 : index
    %c0_8 = arith.constant 0 : index
    %11 = vector.load %arg4[%c0_7, %c0_8] : memref<32x32xf32, #tpu.memory_space<vmem>>, vector<32x32xf32>
    tpu.vector_store %arg4[%c0_7, %c0_8], %10 {strides = array<i32>} : memref<32x32xf32, #tpu.memory_space<vmem>>, vector<32x32xf32>,
    return
  }
  func.func @transform_0(%arg0: i32) -> (i32, i32) {
    %c0_i32 = arith.constant 0 : i32
    %c0_i32_0 = arith.constant 0 : i32
    return %c0_i32, %arg0 : i32, i32
  }
  func.func @transform_1(%arg0: i32) -> (i32, i32) {
    %c0_i32 = arith.constant 0 : i32
    %c0_i32_0 = arith.constant 0 : i32
    %c0_i32_1 = arith.constant 0 : i32
    return %c0_i32, %c0_i32_0 : i32, i32
  }
  func.func @transform_2(%arg0: i32) -> (i32, i32) {
    %c0_i32 = arith.constant 0 : i32
    %c0_i32_0 = arith.constant 0 : i32
    %c0_i32_1 = arith.constant 0 : i32
    return %c0_i32, %c0_i32_0 : i32, i32
  }
  func.func @transform_3(%arg0: i32) -> (i32, i32) {
    %c0_i32 = arith.constant 0 : i32
    %c0_i32_0 = arith.constant 0 : i32
    return %c0_i32, %arg0 : i32, i32
  }
}

module attributes {stable_mosaic.version = 11 : i64} {
  func.func @_conv_kernel(%arg0: i32, %arg1: memref<576x2xf32, #tpu.memory_space<vmem>>, %arg2: memref<64x576xf32, #tpu.memory_space<vmem>>, %arg3: memref<64x1xf32, #tpu.memory_space<vmem>>, %arg4: memref<64x2xf32, #tpu.memory_space<vmem>>) attributes {dimension_semantics = [#tpu.dimension_semantics<parallel>], iteration_bounds = array<i64: 1>, scalar_prefetch = 0 : i64, scratch_operands = 0 : i64, tpu.core_type = #tpu.core_type<tc>, window_params = [{transform_indices = @transform_0, window_bounds = array<i64: 576, 2>}, {pipeline_mode = #tpu.pipeline_mode<synchronous>, transform_indices = @transform_1, window_bounds = array<i64: 64, 576>}, {pipeline_mode = #tpu.pipeline_mode<synchronous>, transform_indices = @transform_2, window_bounds = array<i64: 64, 1>}, {transform_indices = @transform_3, window_bounds = array<i64: 64, 2>}]} {
    %c0 = arith.constant 0 : index
    %c0_0 = arith.constant 0 : index
    %0 = vector.load %arg2[%c0, %c0_0] : memref<64x576xf32, #tpu.memory_space<vmem>>, vector<64x576xf32>
    %c0_1 = arith.constant 0 : index
    %c0_2 = arith.constant 0 : index
    %1 = vector.load %arg1[%c0_1, %c0_2] : memref<576x2xf32, #tpu.memory_space<vmem>>, vector<576x2xf32>
    %cst = arith.constant dense<0.000000e+00> : vector<64x2xf32>
    %2 = tpu.matmul %0, %1, %cst {dimension_numbers = #tpu.dot_dimension_numbers<[1], [0], [0], [1], [0, 0, 1, 1], [], []>} : vector<64x576xf32>, vector<576x2xf32>, vector<64x2xf32> -> vector<64x2xf32>
    %c0_3 = arith.constant 0 : index
    %c0_4 = arith.constant 0 : index
    %3 = vector.load %arg3[%c0_3, %c0_4] : memref<64x1xf32, #tpu.memory_space<vmem>>, vector<64x1xf32>
    %4 = vector.broadcast %3 : vector<64x1xf32> to vector<64x2xf32>
    %5 = arith.addf %2, %4 : vector<64x2xf32>
    %cst_5 = arith.constant 0.000000e+00 : f32
    %6 = vector.broadcast %cst_5 : f32 to vector<64x2xf32>
    %7 = arith.cmpf oge, %5, %6 : vector<64x2xf32>
    %cst_6 = arith.constant 2.000000e-01 : f32
    %8 = vector.broadcast %cst_6 : f32 to vector<64x2xf32>
    %9 = arith.mulf %5, %8 : vector<64x2xf32>
    %10 = arith.select %7, %5, %9 : vector<64x2xi1>, vector<64x2xf32>
    %c0_7 = arith.constant 0 : index
    %c0_8 = arith.constant 0 : index
    %11 = vector.load %arg4[%c0_7, %c0_8] : memref<64x2xf32, #tpu.memory_space<vmem>>, vector<64x2xf32>
    tpu.vector_store %arg4[%c0_7, %c0_8], %10 {strides = array<i32>} : memref<64x2xf32, #tpu.memory_space<vmem>>, vector<64x2xf32>,
    return
  }
  func.func @transform_0(%arg0: i32) -> (i32, i32) {
    %c0_i32 = arith.constant 0 : i32
    %c0_i32_0 = arith.constant 0 : i32
    return %c0_i32, %arg0 : i32, i32
  }
  func.func @transform_1(%arg0: i32) -> (i32, i32) {
    %c0_i32 = arith.constant 0 : i32
    %c0_i32_0 = arith.constant 0 : i32
    %c0_i32_1 = arith.constant 0 : i32
    return %c0_i32, %c0_i32_0 : i32, i32
  }
  func.func @transform_2(%arg0: i32) -> (i32, i32) {
    %c0_i32 = arith.constant 0 : i32
    %c0_i32_0 = arith.constant 0 : i32
    %c0_i32_1 = arith.constant 0 : i32
    return %c0_i32, %c0_i32_0 : i32, i32
  }
  func.func @transform_3(%arg0: i32) -> (i32, i32) {
    %c0_i32 = arith.constant 0 : i32
    %c0_i32_0 = arith.constant 0 : i32
    return %c0_i32, %arg0 : i32, i32
  }
}

module attributes {stable_mosaic.version = 11 : i64} {
  func.func @_conv_kernel(%arg0: i32, %arg1: memref<288x8xf32, #tpu.memory_space<vmem>>, %arg2: memref<64x288xf32, #tpu.memory_space<vmem>>, %arg3: memref<64x1xf32, #tpu.memory_space<vmem>>, %arg4: memref<64x8xf32, #tpu.memory_space<vmem>>) attributes {dimension_semantics = [#tpu.dimension_semantics<parallel>], iteration_bounds = array<i64: 1>, scalar_prefetch = 0 : i64, scratch_operands = 0 : i64, tpu.core_type = #tpu.core_type<tc>, window_params = [{transform_indices = @transform_0, window_bounds = array<i64: 288, 8>}, {pipeline_mode = #tpu.pipeline_mode<synchronous>, transform_indices = @transform_1, window_bounds = array<i64: 64, 288>}, {pipeline_mode = #tpu.pipeline_mode<synchronous>, transform_indices = @transform_2, window_bounds = array<i64: 64, 1>}, {transform_indices = @transform_3, window_bounds = array<i64: 64, 8>}]} {
    %c0 = arith.constant 0 : index
    %c0_0 = arith.constant 0 : index
    %0 = vector.load %arg2[%c0, %c0_0] : memref<64x288xf32, #tpu.memory_space<vmem>>, vector<64x288xf32>
    %c0_1 = arith.constant 0 : index
    %c0_2 = arith.constant 0 : index
    %1 = vector.load %arg1[%c0_1, %c0_2] : memref<288x8xf32, #tpu.memory_space<vmem>>, vector<288x8xf32>
    %cst = arith.constant dense<0.000000e+00> : vector<64x8xf32>
    %2 = tpu.matmul %0, %1, %cst {dimension_numbers = #tpu.dot_dimension_numbers<[1], [0], [0], [1], [0, 0, 1, 1], [], []>} : vector<64x288xf32>, vector<288x8xf32>, vector<64x8xf32> -> vector<64x8xf32>
    %c0_3 = arith.constant 0 : index
    %c0_4 = arith.constant 0 : index
    %3 = vector.load %arg3[%c0_3, %c0_4] : memref<64x1xf32, #tpu.memory_space<vmem>>, vector<64x1xf32>
    %4 = vector.broadcast %3 : vector<64x1xf32> to vector<64x8xf32>
    %5 = arith.addf %2, %4 : vector<64x8xf32>
    %cst_5 = arith.constant 0.000000e+00 : f32
    %6 = vector.broadcast %cst_5 : f32 to vector<64x8xf32>
    %7 = arith.cmpf oge, %5, %6 : vector<64x8xf32>
    %cst_6 = arith.constant 2.000000e-01 : f32
    %8 = vector.broadcast %cst_6 : f32 to vector<64x8xf32>
    %9 = arith.mulf %5, %8 : vector<64x8xf32>
    %10 = arith.select %7, %5, %9 : vector<64x8xi1>, vector<64x8xf32>
    %c0_7 = arith.constant 0 : index
    %c0_8 = arith.constant 0 : index
    %11 = vector.load %arg4[%c0_7, %c0_8] : memref<64x8xf32, #tpu.memory_space<vmem>>, vector<64x8xf32>
    tpu.vector_store %arg4[%c0_7, %c0_8], %10 {strides = array<i32>} : memref<64x8xf32, #tpu.memory_space<vmem>>, vector<64x8xf32>,
    return
  }
  func.func @transform_0(%arg0: i32) -> (i32, i32) {
    %c0_i32 = arith.constant 0 : i32
    %c0_i32_0 = arith.constant 0 : i32
    return %c0_i32, %arg0 : i32, i32
  }
  func.func @transform_1(%arg0: i32) -> (i32, i32) {
    %c0_i32 = arith.constant 0 : i32
    %c0_i32_0 = arith.constant 0 : i32
    %c0_i32_1 = arith.constant 0 : i32
    return %c0_i32, %c0_i32_0 : i32, i32
  }
  func.func @transform_2(%arg0: i32) -> (i32, i32) {
    %c0_i32 = arith.constant 0 : i32
    %c0_i32_0 = arith.constant 0 : i32
    %c0_i32_1 = arith.constant 0 : i32
    return %c0_i32, %c0_i32_0 : i32, i32
  }
  func.func @transform_3(%arg0: i32) -> (i32, i32) {
    %c0_i32 = arith.constant 0 : i32
    %c0_i32_0 = arith.constant 0 : i32
    return %c0_i32, %arg0 : i32, i32
  }
}

module attributes {stable_mosaic.version = 11 : i64} {
  func.func @_conv_kernel(%arg0: i32, %arg1: memref<64x2xf32, #tpu.memory_space<vmem>>, %arg2: memref<32x64xf32, #tpu.memory_space<vmem>>, %arg3: memref<32x1xf32, #tpu.memory_space<vmem>>, %arg4: memref<32x2xf32, #tpu.memory_space<vmem>>) attributes {dimension_semantics = [#tpu.dimension_semantics<parallel>], iteration_bounds = array<i64: 1>, scalar_prefetch = 0 : i64, scratch_operands = 0 : i64, tpu.core_type = #tpu.core_type<tc>, window_params = [{transform_indices = @transform_0, window_bounds = array<i64: 64, 2>}, {pipeline_mode = #tpu.pipeline_mode<synchronous>, transform_indices = @transform_1, window_bounds = array<i64: 32, 64>}, {pipeline_mode = #tpu.pipeline_mode<synchronous>, transform_indices = @transform_2, window_bounds = array<i64: 32, 1>}, {transform_indices = @transform_3, window_bounds = array<i64: 32, 2>}]} {
    %c0 = arith.constant 0 : index
    %c0_0 = arith.constant 0 : index
    %0 = vector.load %arg2[%c0, %c0_0] : memref<32x64xf32, #tpu.memory_space<vmem>>, vector<32x64xf32>
    %c0_1 = arith.constant 0 : index
    %c0_2 = arith.constant 0 : index
    %1 = vector.load %arg1[%c0_1, %c0_2] : memref<64x2xf32, #tpu.memory_space<vmem>>, vector<64x2xf32>
    %cst = arith.constant dense<0.000000e+00> : vector<32x2xf32>
    %2 = tpu.matmul %0, %1, %cst {dimension_numbers = #tpu.dot_dimension_numbers<[1], [0], [0], [1], [0, 0, 1, 1], [], []>} : vector<32x64xf32>, vector<64x2xf32>, vector<32x2xf32> -> vector<32x2xf32>
    %c0_3 = arith.constant 0 : index
    %c0_4 = arith.constant 0 : index
    %3 = vector.load %arg3[%c0_3, %c0_4] : memref<32x1xf32, #tpu.memory_space<vmem>>, vector<32x1xf32>
    %4 = vector.broadcast %3 : vector<32x1xf32> to vector<32x2xf32>
    %5 = arith.addf %2, %4 : vector<32x2xf32>
    %cst_5 = arith.constant 0.000000e+00 : f32
    %6 = vector.broadcast %cst_5 : f32 to vector<32x2xf32>
    %7 = arith.cmpf oge, %5, %6 : vector<32x2xf32>
    %cst_6 = arith.constant 2.000000e-01 : f32
    %8 = vector.broadcast %cst_6 : f32 to vector<32x2xf32>
    %9 = arith.mulf %5, %8 : vector<32x2xf32>
    %10 = arith.select %7, %5, %9 : vector<32x2xi1>, vector<32x2xf32>
    %c0_7 = arith.constant 0 : index
    %c0_8 = arith.constant 0 : index
    %11 = vector.load %arg4[%c0_7, %c0_8] : memref<32x2xf32, #tpu.memory_space<vmem>>, vector<32x2xf32>
    tpu.vector_store %arg4[%c0_7, %c0_8], %10 {strides = array<i32>} : memref<32x2xf32, #tpu.memory_space<vmem>>, vector<32x2xf32>,
    return
  }
  func.func @transform_0(%arg0: i32) -> (i32, i32) {
    %c0_i32 = arith.constant 0 : i32
    %c0_i32_0 = arith.constant 0 : i32
    return %c0_i32, %arg0 : i32, i32
  }
  func.func @transform_1(%arg0: i32) -> (i32, i32) {
    %c0_i32 = arith.constant 0 : i32
    %c0_i32_0 = arith.constant 0 : i32
    %c0_i32_1 = arith.constant 0 : i32
    return %c0_i32, %c0_i32_0 : i32, i32
  }
  func.func @transform_2(%arg0: i32) -> (i32, i32) {
    %c0_i32 = arith.constant 0 : i32
    %c0_i32_0 = arith.constant 0 : i32
    %c0_i32_1 = arith.constant 0 : i32
    return %c0_i32, %c0_i32_0 : i32, i32
  }
  func.func @transform_3(%arg0: i32) -> (i32, i32) {
    %c0_i32 = arith.constant 0 : i32
    %c0_i32_0 = arith.constant 0 : i32
    return %c0_i32, %arg0 : i32, i32
  }
}

module attributes {stable_mosaic.version = 11 : i64} {
  func.func @_conv_kernel(%arg0: i32, %arg1: memref<64x8xf32, #tpu.memory_space<vmem>>, %arg2: memref<32x64xf32, #tpu.memory_space<vmem>>, %arg3: memref<32x1xf32, #tpu.memory_space<vmem>>, %arg4: memref<32x8xf32, #tpu.memory_space<vmem>>, %arg5: memref<32x8xf32, #tpu.memory_space<vmem>>) attributes {dimension_semantics = [#tpu.dimension_semantics<parallel>], iteration_bounds = array<i64: 1>, scalar_prefetch = 0 : i64, scratch_operands = 0 : i64, tpu.core_type = #tpu.core_type<tc>, window_params = [{transform_indices = @transform_0, window_bounds = array<i64: 64, 8>}, {pipeline_mode = #tpu.pipeline_mode<synchronous>, transform_indices = @transform_1, window_bounds = array<i64: 32, 64>}, {pipeline_mode = #tpu.pipeline_mode<synchronous>, transform_indices = @transform_2, window_bounds = array<i64: 32, 1>}, {transform_indices = @transform_3, window_bounds = array<i64: 32, 8>}, {transform_indices = @transform_4, window_bounds = array<i64: 32, 8>}]} {
    %c0 = arith.constant 0 : index
    %c0_0 = arith.constant 0 : index
    %0 = vector.load %arg2[%c0, %c0_0] : memref<32x64xf32, #tpu.memory_space<vmem>>, vector<32x64xf32>
    %c0_1 = arith.constant 0 : index
    %c0_2 = arith.constant 0 : index
    %1 = vector.load %arg1[%c0_1, %c0_2] : memref<64x8xf32, #tpu.memory_space<vmem>>, vector<64x8xf32>
    %cst = arith.constant dense<0.000000e+00> : vector<32x8xf32>
    %2 = tpu.matmul %0, %1, %cst {dimension_numbers = #tpu.dot_dimension_numbers<[1], [0], [0], [1], [0, 0, 1, 1], [], []>} : vector<32x64xf32>, vector<64x8xf32>, vector<32x8xf32> -> vector<32x8xf32>
    %c0_3 = arith.constant 0 : index
    %c0_4 = arith.constant 0 : index
    %3 = vector.load %arg3[%c0_3, %c0_4] : memref<32x1xf32, #tpu.memory_space<vmem>>, vector<32x1xf32>
    %4 = vector.broadcast %3 : vector<32x1xf32> to vector<32x8xf32>
    %5 = arith.addf %2, %4 : vector<32x8xf32>
    %cst_5 = arith.constant 0.000000e+00 : f32
    %6 = vector.broadcast %cst_5 : f32 to vector<32x8xf32>
    %7 = arith.cmpf oge, %5, %6 : vector<32x8xf32>
    %cst_6 = arith.constant 2.000000e-01 : f32
    %8 = vector.broadcast %cst_6 : f32 to vector<32x8xf32>
    %9 = arith.mulf %5, %8 : vector<32x8xf32>
    %10 = arith.select %7, %5, %9 : vector<32x8xi1>, vector<32x8xf32>
    %c0_7 = arith.constant 0 : index
    %c0_8 = arith.constant 0 : index
    %11 = vector.load %arg4[%c0_7, %c0_8] : memref<32x8xf32, #tpu.memory_space<vmem>>, vector<32x8xf32>
    %12 = arith.addf %10, %11 : vector<32x8xf32>
    %c0_9 = arith.constant 0 : index
    %c0_10 = arith.constant 0 : index
    %13 = vector.load %arg5[%c0_9, %c0_10] : memref<32x8xf32, #tpu.memory_space<vmem>>, vector<32x8xf32>
    tpu.vector_store %arg5[%c0_9, %c0_10], %12 {strides = array<i32>} : memref<32x8xf32, #tpu.memory_space<vmem>>, vector<32x8xf32>,
    return
  }
  func.func @transform_0(%arg0: i32) -> (i32, i32) {
    %c0_i32 = arith.constant 0 : i32
    %c0_i32_0 = arith.constant 0 : i32
    return %c0_i32, %arg0 : i32, i32
  }
  func.func @transform_1(%arg0: i32) -> (i32, i32) {
    %c0_i32 = arith.constant 0 : i32
    %c0_i32_0 = arith.constant 0 : i32
    %c0_i32_1 = arith.constant 0 : i32
    return %c0_i32, %c0_i32_0 : i32, i32
  }
  func.func @transform_2(%arg0: i32) -> (i32, i32) {
    %c0_i32 = arith.constant 0 : i32
    %c0_i32_0 = arith.constant 0 : i32
    %c0_i32_1 = arith.constant 0 : i32
    return %c0_i32, %c0_i32_0 : i32, i32
  }
  func.func @transform_3(%arg0: i32) -> (i32, i32) {
    %c0_i32 = arith.constant 0 : i32
    %c0_i32_0 = arith.constant 0 : i32
    return %c0_i32, %arg0 : i32, i32
  }
  func.func @transform_4(%arg0: i32) -> (i32, i32) {
    %c0_i32 = arith.constant 0 : i32
    %c0_i32_0 = arith.constant 0 : i32
    return %c0_i32, %arg0 : i32, i32
  }
}

module attributes {stable_mosaic.version = 11 : i64} {
  func.func @_conv_kernel(%arg0: i32, %arg1: memref<32x32xf32, #tpu.memory_space<vmem>>, %arg2: memref<32x32xf32, #tpu.memory_space<vmem>>, %arg3: memref<32x1xf32, #tpu.memory_space<vmem>>, %arg4: memref<32x32xf32, #tpu.memory_space<vmem>>, %arg5: memref<32x32xf32, #tpu.memory_space<vmem>>) attributes {dimension_semantics = [#tpu.dimension_semantics<parallel>], iteration_bounds = array<i64: 1>, scalar_prefetch = 0 : i64, scratch_operands = 0 : i64, tpu.core_type = #tpu.core_type<tc>, window_params = [{transform_indices = @transform_0, window_bounds = array<i64: 32, 32>}, {pipeline_mode = #tpu.pipeline_mode<synchronous>, transform_indices = @transform_1, window_bounds = array<i64: 32, 32>}, {pipeline_mode = #tpu.pipeline_mode<synchronous>, transform_indices = @transform_2, window_bounds = array<i64: 32, 1>}, {transform_indices = @transform_3, window_bounds = array<i64: 32, 32>}, {transform_indices = @transform_4, window_bounds = array<i64: 32, 32>}]} {
    %c0 = arith.constant 0 : index
    %c0_0 = arith.constant 0 : index
    %0 = vector.load %arg2[%c0, %c0_0] : memref<32x32xf32, #tpu.memory_space<vmem>>, vector<32x32xf32>
    %c0_1 = arith.constant 0 : index
    %c0_2 = arith.constant 0 : index
    %1 = vector.load %arg1[%c0_1, %c0_2] : memref<32x32xf32, #tpu.memory_space<vmem>>, vector<32x32xf32>
    %cst = arith.constant dense<0.000000e+00> : vector<32x32xf32>
    %2 = tpu.matmul %0, %1, %cst {dimension_numbers = #tpu.dot_dimension_numbers<[1], [0], [0], [1], [0, 0, 1, 1], [], []>} : vector<32x32xf32>, vector<32x32xf32>, vector<32x32xf32> -> vector<32x32xf32>
    %c0_3 = arith.constant 0 : index
    %c0_4 = arith.constant 0 : index
    %3 = vector.load %arg3[%c0_3, %c0_4] : memref<32x1xf32, #tpu.memory_space<vmem>>, vector<32x1xf32>
    %4 = vector.broadcast %3 : vector<32x1xf32> to vector<32x32xf32>
    %5 = arith.addf %2, %4 : vector<32x32xf32>
    %cst_5 = arith.constant 0.000000e+00 : f32
    %6 = vector.broadcast %cst_5 : f32 to vector<32x32xf32>
    %7 = arith.cmpf oge, %5, %6 : vector<32x32xf32>
    %cst_6 = arith.constant 2.000000e-01 : f32
    %8 = vector.broadcast %cst_6 : f32 to vector<32x32xf32>
    %9 = arith.mulf %5, %8 : vector<32x32xf32>
    %10 = arith.select %7, %5, %9 : vector<32x32xi1>, vector<32x32xf32>
    %c0_7 = arith.constant 0 : index
    %c0_8 = arith.constant 0 : index
    %11 = vector.load %arg4[%c0_7, %c0_8] : memref<32x32xf32, #tpu.memory_space<vmem>>, vector<32x32xf32>
    %12 = arith.addf %10, %11 : vector<32x32xf32>
    %c0_9 = arith.constant 0 : index
    %c0_10 = arith.constant 0 : index
    %13 = vector.load %arg5[%c0_9, %c0_10] : memref<32x32xf32, #tpu.memory_space<vmem>>, vector<32x32xf32>
    tpu.vector_store %arg5[%c0_9, %c0_10], %12 {strides = array<i32>} : memref<32x32xf32, #tpu.memory_space<vmem>>, vector<32x32xf32>,
    return
  }
  func.func @transform_0(%arg0: i32) -> (i32, i32) {
    %c0_i32 = arith.constant 0 : i32
    %c0_i32_0 = arith.constant 0 : i32
    return %c0_i32, %arg0 : i32, i32
  }
  func.func @transform_1(%arg0: i32) -> (i32, i32) {
    %c0_i32 = arith.constant 0 : i32
    %c0_i32_0 = arith.constant 0 : i32
    %c0_i32_1 = arith.constant 0 : i32
    return %c0_i32, %c0_i32_0 : i32, i32
  }
  func.func @transform_2(%arg0: i32) -> (i32, i32) {
    %c0_i32 = arith.constant 0 : i32
    %c0_i32_0 = arith.constant 0 : i32
    %c0_i32_1 = arith.constant 0 : i32
    return %c0_i32, %c0_i32_0 : i32, i32
  }
  func.func @transform_3(%arg0: i32) -> (i32, i32) {
    %c0_i32 = arith.constant 0 : i32
    %c0_i32_0 = arith.constant 0 : i32
    return %c0_i32, %arg0 : i32, i32
  }
  func.func @transform_4(%arg0: i32) -> (i32, i32) {
    %c0_i32 = arith.constant 0 : i32
    %c0_i32_0 = arith.constant 0 : i32
    return %c0_i32, %arg0 : i32, i32
  }
}

module attributes {stable_mosaic.version = 11 : i64} {
  func.func @_conv_kernel(%arg0: i32, %arg1: memref<16x128xf32, #tpu.memory_space<vmem>>, %arg2: memref<32x16xf32, #tpu.memory_space<vmem>>, %arg3: memref<32x1xf32, #tpu.memory_space<vmem>>, %arg4: memref<32x128xf32, #tpu.memory_space<vmem>>, %arg5: memref<32x128xf32, #tpu.memory_space<vmem>>) attributes {dimension_semantics = [#tpu.dimension_semantics<parallel>], iteration_bounds = array<i64: 1>, scalar_prefetch = 0 : i64, scratch_operands = 0 : i64, tpu.core_type = #tpu.core_type<tc>, window_params = [{transform_indices = @transform_0, window_bounds = array<i64: 16, 128>}, {pipeline_mode = #tpu.pipeline_mode<synchronous>, transform_indices = @transform_1, window_bounds = array<i64: 32, 16>}, {pipeline_mode = #tpu.pipeline_mode<synchronous>, transform_indices = @transform_2, window_bounds = array<i64: 32, 1>}, {transform_indices = @transform_3, window_bounds = array<i64: 32, 128>}, {transform_indices = @transform_4, window_bounds = array<i64: 32, 128>}]} {
    %c0 = arith.constant 0 : index
    %c0_0 = arith.constant 0 : index
    %0 = vector.load %arg2[%c0, %c0_0] : memref<32x16xf32, #tpu.memory_space<vmem>>, vector<32x16xf32>
    %c0_1 = arith.constant 0 : index
    %c0_2 = arith.constant 0 : index
    %1 = vector.load %arg1[%c0_1, %c0_2] : memref<16x128xf32, #tpu.memory_space<vmem>>, vector<16x128xf32>
    %cst = arith.constant dense<0.000000e+00> : vector<32x128xf32>
    %2 = tpu.matmul %0, %1, %cst {dimension_numbers = #tpu.dot_dimension_numbers<[1], [0], [0], [1], [0, 0, 1, 1], [], []>} : vector<32x16xf32>, vector<16x128xf32>, vector<32x128xf32> -> vector<32x128xf32>
    %c0_3 = arith.constant 0 : index
    %c0_4 = arith.constant 0 : index
    %3 = vector.load %arg3[%c0_3, %c0_4] : memref<32x1xf32, #tpu.memory_space<vmem>>, vector<32x1xf32>
    %4 = vector.broadcast %3 : vector<32x1xf32> to vector<32x128xf32>
    %5 = arith.addf %2, %4 : vector<32x128xf32>
    %cst_5 = arith.constant 0.000000e+00 : f32
    %6 = vector.broadcast %cst_5 : f32 to vector<32x128xf32>
    %7 = arith.cmpf oge, %5, %6 : vector<32x128xf32>
    %cst_6 = arith.constant 2.000000e-01 : f32
    %8 = vector.broadcast %cst_6 : f32 to vector<32x128xf32>
    %9 = arith.mulf %5, %8 : vector<32x128xf32>
    %10 = arith.select %7, %5, %9 : vector<32x128xi1>, vector<32x128xf32>
    %c0_7 = arith.constant 0 : index
    %c0_8 = arith.constant 0 : index
    %11 = vector.load %arg4[%c0_7, %c0_8] : memref<32x128xf32, #tpu.memory_space<vmem>>, vector<32x128xf32>
    %12 = arith.addf %10, %11 : vector<32x128xf32>
    %c0_9 = arith.constant 0 : index
    %c0_10 = arith.constant 0 : index
    %13 = vector.load %arg5[%c0_9, %c0_10] : memref<32x128xf32, #tpu.memory_space<vmem>>, vector<32x128xf32>
    tpu.vector_store %arg5[%c0_9, %c0_10], %12 {strides = array<i32>} : memref<32x128xf32, #tpu.memory_space<vmem>>, vector<32x128xf32>,
    return
  }
  func.func @transform_0(%arg0: i32) -> (i32, i32) {
    %c0_i32 = arith.constant 0 : i32
    %c0_i32_0 = arith.constant 0 : i32
    return %c0_i32, %arg0 : i32, i32
  }
  func.func @transform_1(%arg0: i32) -> (i32, i32) {
    %c0_i32 = arith.constant 0 : i32
    %c0_i32_0 = arith.constant 0 : i32
    %c0_i32_1 = arith.constant 0 : i32
    return %c0_i32, %c0_i32_0 : i32, i32
  }
  func.func @transform_2(%arg0: i32) -> (i32, i32) {
    %c0_i32 = arith.constant 0 : i32
    %c0_i32_0 = arith.constant 0 : i32
    %c0_i32_1 = arith.constant 0 : i32
    return %c0_i32, %c0_i32_0 : i32, i32
  }
  func.func @transform_3(%arg0: i32) -> (i32, i32) {
    %c0_i32 = arith.constant 0 : i32
    %c0_i32_0 = arith.constant 0 : i32
    return %c0_i32, %arg0 : i32, i32
  }
  func.func @transform_4(%arg0: i32) -> (i32, i32) {
    %c0_i32 = arith.constant 0 : i32
    %c0_i32_0 = arith.constant 0 : i32
    return %c0_i32, %arg0 : i32, i32
  }
}

module attributes {stable_mosaic.version = 11 : i64} {
  func.func @_conv_kernel(%arg0: i32, %arg1: memref<4x1024xf32, #tpu.memory_space<vmem>>, %arg2: memref<16x4xf32, #tpu.memory_space<vmem>>, %arg3: memref<16x1xf32, #tpu.memory_space<vmem>>, %arg4: memref<16x1024xf32, #tpu.memory_space<vmem>>) attributes {dimension_semantics = [#tpu.dimension_semantics<parallel>], iteration_bounds = array<i64: 2>, scalar_prefetch = 0 : i64, scratch_operands = 0 : i64, tpu.core_type = #tpu.core_type<tc>, window_params = [{transform_indices = @transform_0, window_bounds = array<i64: 4, 1024>}, {pipeline_mode = #tpu.pipeline_mode<synchronous>, transform_indices = @transform_1, window_bounds = array<i64: 16, 4>}, {pipeline_mode = #tpu.pipeline_mode<synchronous>, transform_indices = @transform_2, window_bounds = array<i64: 16, 1>}, {transform_indices = @transform_3, window_bounds = array<i64: 16, 1024>}]} {
    %c0 = arith.constant 0 : index
    %c0_0 = arith.constant 0 : index
    %0 = vector.load %arg2[%c0, %c0_0] : memref<16x4xf32, #tpu.memory_space<vmem>>, vector<16x4xf32>
    %c0_1 = arith.constant 0 : index
    %c0_2 = arith.constant 0 : index
    %1 = vector.load %arg1[%c0_1, %c0_2] : memref<4x1024xf32, #tpu.memory_space<vmem>>, vector<4x1024xf32>
    %cst = arith.constant dense<0.000000e+00> : vector<16x1024xf32>
    %2 = tpu.matmul %0, %1, %cst {dimension_numbers = #tpu.dot_dimension_numbers<[1], [0], [0], [1], [0, 0, 1, 1], [], []>} : vector<16x4xf32>, vector<4x1024xf32>, vector<16x1024xf32> -> vector<16x1024xf32>
    %c0_3 = arith.constant 0 : index
    %c0_4 = arith.constant 0 : index
    %3 = vector.load %arg3[%c0_3, %c0_4] : memref<16x1xf32, #tpu.memory_space<vmem>>, vector<16x1xf32>
    %4 = vector.broadcast %3 : vector<16x1xf32> to vector<16x1024xf32>
    %5 = arith.addf %2, %4 : vector<16x1024xf32>
    %c0_5 = arith.constant 0 : index
    %c0_6 = arith.constant 0 : index
    %6 = vector.load %arg4[%c0_5, %c0_6] : memref<16x1024xf32, #tpu.memory_space<vmem>>, vector<16x1024xf32>
    tpu.vector_store %arg4[%c0_5, %c0_6], %5 {strides = array<i32>} : memref<16x1024xf32, #tpu.memory_space<vmem>>, vector<16x1024xf32>,
    return
  }
  func.func @transform_0(%arg0: i32) -> (i32, i32) {
    %c0_i32 = arith.constant 0 : i32
    %c0_i32_0 = arith.constant 0 : i32
    return %c0_i32, %arg0 : i32, i32
  }
  func.func @transform_1(%arg0: i32) -> (i32, i32) {
    %c0_i32 = arith.constant 0 : i32
    %c0_i32_0 = arith.constant 0 : i32
    %c0_i32_1 = arith.constant 0 : i32
    return %c0_i32, %c0_i32_0 : i32, i32
  }
  func.func @transform_2(%arg0: i32) -> (i32, i32) {
    %c0_i32 = arith.constant 0 : i32
    %c0_i32_0 = arith.constant 0 : i32
    %c0_i32_1 = arith.constant 0 : i32
    return %c0_i32, %c0_i32_0 : i32, i32
  }
  func.func @transform_3(%arg0: i32) -> (i32, i32) {
    %c0_i32 = arith.constant 0 : i32
    %c0_i32_0 = arith.constant 0 : i32
    return %c0_i32, %arg0 : i32, i32
  }
}

module attributes {stable_mosaic.version = 11 : i64} {
  func.func @_final_head_kernel(%arg0: i32, %arg1: memref<288x128xf32, #tpu.memory_space<vmem>>, %arg2: memref<16x128xf32, #tpu.memory_space<vmem>>, %arg3: memref<16x288xf32, #tpu.memory_space<vmem>>, %arg4: memref<16x1xf32, #tpu.memory_space<vmem>>, %arg5: memref<17x16xf32, #tpu.memory_space<vmem>>, %arg6: memref<17x1xf32, #tpu.memory_space<vmem>>, %arg7: memref<1x128xf32, #tpu.memory_space<vmem>>) attributes {dimension_semantics = [#tpu.dimension_semantics<parallel>], iteration_bounds = array<i64: 1>, scalar_prefetch = 0 : i64, scratch_operands = 0 : i64, tpu.core_type = #tpu.core_type<tc>, window_params = [{pipeline_mode = #tpu.pipeline_mode<synchronous>, transform_indices = @transform_0, window_bounds = array<i64: 288, 128>}, {pipeline_mode = #tpu.pipeline_mode<synchronous>, transform_indices = @transform_1, window_bounds = array<i64: 16, 128>}, {pipeline_mode = #tpu.pipeline_mode<synchronous>, transform_indices = @transform_2, window_bounds = array<i64: 16, 288>}, {pipeline_mode = #tpu.pipeline_mode<synchronous>, transform_indices = @transform_3, window_bounds = array<i64: 16, 1>}, {pipeline_mode = #tpu.pipeline_mode<synchronous>, transform_indices = @transform_4, window_bounds = array<i64: 17, 16>}, {pipeline_mode = #tpu.pipeline_mode<synchronous>, transform_indices = @transform_5, window_bounds = array<i64: 17, 1>}, {pipeline_mode = #tpu.pipeline_mode<synchronous>, transform_indices = @transform_6, window_bounds = array<i64: 1, 128>}]} {
    %c0 = arith.constant 0 : index
    %c0_0 = arith.constant 0 : index
    %0 = vector.load %arg3[%c0, %c0_0] : memref<16x288xf32, #tpu.memory_space<vmem>>, vector<16x288xf32>
    %c0_1 = arith.constant 0 : index
    %c0_2 = arith.constant 0 : index
    %1 = vector.load %arg1[%c0_1, %c0_2] : memref<288x128xf32, #tpu.memory_space<vmem>>, vector<288x128xf32>
    %cst = arith.constant dense<0.000000e+00> : vector<16x128xf32>
    %2 = tpu.matmul %0, %1, %cst {dimension_numbers = #tpu.dot_dimension_numbers<[1], [0], [0], [1], [0, 0, 1, 1], [], []>} : vector<16x288xf32>, vector<288x128xf32>, vector<16x128xf32> -> vector<16x128xf32>
    %c0_3 = arith.constant 0 : index
    %c0_4 = arith.constant 0 : index
    %3 = vector.load %arg4[%c0_3, %c0_4] : memref<16x1xf32, #tpu.memory_space<vmem>>, vector<16x1xf32>
    %4 = vector.broadcast %3 : vector<16x1xf32> to vector<16x128xf32>
    %5 = arith.addf %2, %4 : vector<16x128xf32>
    %cst_5 = arith.constant 0.000000e+00 : f32
    %6 = vector.broadcast %cst_5 : f32 to vector<16x128xf32>
    %7 = arith.cmpf oge, %5, %6 : vector<16x128xf32>
    %cst_6 = arith.constant 2.000000e-01 : f32
    %8 = vector.broadcast %cst_6 : f32 to vector<16x128xf32>
    %9 = arith.mulf %5, %8 : vector<16x128xf32>
    %10 = arith.select %7, %5, %9 : vector<16x128xi1>, vector<16x128xf32>
    %c0_7 = arith.constant 0 : index
    %c0_8 = arith.constant 0 : index
    %11 = vector.load %arg5[%c0_7, %c0_8] : memref<17x16xf32, #tpu.memory_space<vmem>>, vector<17x16xf32>
    %cst_9 = arith.constant dense<0.000000e+00> : vector<17x128xf32>
    %12 = tpu.matmul %11, %10, %cst_9 {dimension_numbers = #tpu.dot_dimension_numbers<[1], [0], [0], [1], [0, 0, 1, 1], [], []>} : vector<17x16xf32>, vector<16x128xf32>, vector<17x128xf32> -> vector<17x128xf32>
    %c0_10 = arith.constant 0 : index
    %c0_11 = arith.constant 0 : index
    %13 = vector.load %arg6[%c0_10, %c0_11] : memref<17x1xf32, #tpu.memory_space<vmem>>, vector<17x1xf32>
    %14 = vector.broadcast %13 : vector<17x1xf32> to vector<17x128xf32>
    %15 = arith.addf %12, %14 : vector<17x128xf32>
    %16 = vector.extract_strided_slice %15 {offsets = [0, 0], sizes = [16, 128], strides = [1, 1]} : vector<17x128xf32> to vector<16x128xf32>
    %17 = vector.extract_strided_slice %15 {offsets = [16, 0], sizes = [1, 128], strides = [1, 1]} : vector<17x128xf32> to vector<1x128xf32>
    %c0_12 = arith.constant 0 : index
    %c0_13 = arith.constant 0 : index
    %18 = vector.load %arg2[%c0_12, %c0_13] : memref<16x128xf32, #tpu.memory_space<vmem>>, vector<16x128xf32>
    %19 = arith.mulf %18, %16 : vector<16x128xf32>
    %cst_14 = arith.constant dense<0.000000e+00> : vector<128xf32>
    %20 = vector.multi_reduction <add>, %19, %cst_14 [0] : vector<16x128xf32> to vector<128xf32>
    %21 = vector.shape_cast %20 : vector<128xf32> to vector<1x128xf32>
    %22 = arith.addf %17, %21 : vector<1x128xf32>
    %c0_15 = arith.constant 0 : index
    %c0_16 = arith.constant 0 : index
    %23 = vector.load %arg7[%c0_15, %c0_16] : memref<1x128xf32, #tpu.memory_space<vmem>>, vector<1x128xf32>
    tpu.vector_store %arg7[%c0_15, %c0_16], %22 {strides = array<i32>} : memref<1x128xf32, #tpu.memory_space<vmem>>, vector<1x128xf32>,
    return
  }
  func.func @transform_0(%arg0: i32) -> (i32, i32) {
    %c0_i32 = arith.constant 0 : i32
    %c0_i32_0 = arith.constant 0 : i32
    %c0_i32_1 = arith.constant 0 : i32
    return %c0_i32, %c0_i32_0 : i32, i32
  }
  func.func @transform_1(%arg0: i32) -> (i32, i32) {
    %c0_i32 = arith.constant 0 : i32
    %c0_i32_0 = arith.constant 0 : i32
    %c0_i32_1 = arith.constant 0 : i32
    return %c0_i32, %c0_i32_0 : i32, i32
  }
  func.func @transform_2(%arg0: i32) -> (i32, i32) {
    %c0_i32 = arith.constant 0 : i32
    %c0_i32_0 = arith.constant 0 : i32
    %c0_i32_1 = arith.constant 0 : i32
    return %c0_i32, %c0_i32_0 : i32, i32
  }
  func.func @transform_3(%arg0: i32) -> (i32, i32) {
    %c0_i32 = arith.constant 0 : i32
    %c0_i32_0 = arith.constant 0 : i32
    %c0_i32_1 = arith.constant 0 : i32
    return %c0_i32, %c0_i32_0 : i32, i32
  }
  func.func @transform_4(%arg0: i32) -> (i32, i32) {
    %c0_i32 = arith.constant 0 : i32
    %c0_i32_0 = arith.constant 0 : i32
    %c0_i32_1 = arith.constant 0 : i32
    return %c0_i32, %c0_i32_0 : i32, i32
  }
  func.func @transform_5(%arg0: i32) -> (i32, i32) {
    %c0_i32 = arith.constant 0 : i32
    %c0_i32_0 = arith.constant 0 : i32
    %c0_i32_1 = arith.constant 0 : i32
    return %c0_i32, %c0_i32_0 : i32, i32
  }
  func.func @transform_6(%arg0: i32) -> (i32, i32) {
    %c0_i32 = arith.constant 0 : i32
    %c0_i32_0 = arith.constant 0 : i32
    %c0_i32_1 = arith.constant 0 : i32
    return %c0_i32, %c0_i32_0 : i32, i32
  }
}

module attributes {stable_mosaic.version = 11 : i64} {
  func.func @_final_head_kernel(%arg0: i32, %arg1: memref<288x32xf32, #tpu.memory_space<vmem>>, %arg2: memref<16x32xf32, #tpu.memory_space<vmem>>, %arg3: memref<16x288xf32, #tpu.memory_space<vmem>>, %arg4: memref<16x1xf32, #tpu.memory_space<vmem>>, %arg5: memref<17x16xf32, #tpu.memory_space<vmem>>, %arg6: memref<17x1xf32, #tpu.memory_space<vmem>>, %arg7: memref<1x32xf32, #tpu.memory_space<vmem>>) attributes {dimension_semantics = [#tpu.dimension_semantics<parallel>], iteration_bounds = array<i64: 1>, scalar_prefetch = 0 : i64, scratch_operands = 0 : i64, tpu.core_type = #tpu.core_type<tc>, window_params = [{pipeline_mode = #tpu.pipeline_mode<synchronous>, transform_indices = @transform_0, window_bounds = array<i64: 288, 32>}, {pipeline_mode = #tpu.pipeline_mode<synchronous>, transform_indices = @transform_1, window_bounds = array<i64: 16, 32>}, {pipeline_mode = #tpu.pipeline_mode<synchronous>, transform_indices = @transform_2, window_bounds = array<i64: 16, 288>}, {pipeline_mode = #tpu.pipeline_mode<synchronous>, transform_indices = @transform_3, window_bounds = array<i64: 16, 1>}, {pipeline_mode = #tpu.pipeline_mode<synchronous>, transform_indices = @transform_4, window_bounds = array<i64: 17, 16>}, {pipeline_mode = #tpu.pipeline_mode<synchronous>, transform_indices = @transform_5, window_bounds = array<i64: 17, 1>}, {pipeline_mode = #tpu.pipeline_mode<synchronous>, transform_indices = @transform_6, window_bounds = array<i64: 1, 32>}]} {
    %c0 = arith.constant 0 : index
    %c0_0 = arith.constant 0 : index
    %0 = vector.load %arg3[%c0, %c0_0] : memref<16x288xf32, #tpu.memory_space<vmem>>, vector<16x288xf32>
    %c0_1 = arith.constant 0 : index
    %c0_2 = arith.constant 0 : index
    %1 = vector.load %arg1[%c0_1, %c0_2] : memref<288x32xf32, #tpu.memory_space<vmem>>, vector<288x32xf32>
    %cst = arith.constant dense<0.000000e+00> : vector<16x32xf32>
    %2 = tpu.matmul %0, %1, %cst {dimension_numbers = #tpu.dot_dimension_numbers<[1], [0], [0], [1], [0, 0, 1, 1], [], []>} : vector<16x288xf32>, vector<288x32xf32>, vector<16x32xf32> -> vector<16x32xf32>
    %c0_3 = arith.constant 0 : index
    %c0_4 = arith.constant 0 : index
    %3 = vector.load %arg4[%c0_3, %c0_4] : memref<16x1xf32, #tpu.memory_space<vmem>>, vector<16x1xf32>
    %4 = vector.broadcast %3 : vector<16x1xf32> to vector<16x32xf32>
    %5 = arith.addf %2, %4 : vector<16x32xf32>
    %cst_5 = arith.constant 0.000000e+00 : f32
    %6 = vector.broadcast %cst_5 : f32 to vector<16x32xf32>
    %7 = arith.cmpf oge, %5, %6 : vector<16x32xf32>
    %cst_6 = arith.constant 2.000000e-01 : f32
    %8 = vector.broadcast %cst_6 : f32 to vector<16x32xf32>
    %9 = arith.mulf %5, %8 : vector<16x32xf32>
    %10 = arith.select %7, %5, %9 : vector<16x32xi1>, vector<16x32xf32>
    %c0_7 = arith.constant 0 : index
    %c0_8 = arith.constant 0 : index
    %11 = vector.load %arg5[%c0_7, %c0_8] : memref<17x16xf32, #tpu.memory_space<vmem>>, vector<17x16xf32>
    %cst_9 = arith.constant dense<0.000000e+00> : vector<17x32xf32>
    %12 = tpu.matmul %11, %10, %cst_9 {dimension_numbers = #tpu.dot_dimension_numbers<[1], [0], [0], [1], [0, 0, 1, 1], [], []>} : vector<17x16xf32>, vector<16x32xf32>, vector<17x32xf32> -> vector<17x32xf32>
    %c0_10 = arith.constant 0 : index
    %c0_11 = arith.constant 0 : index
    %13 = vector.load %arg6[%c0_10, %c0_11] : memref<17x1xf32, #tpu.memory_space<vmem>>, vector<17x1xf32>
    %14 = vector.broadcast %13 : vector<17x1xf32> to vector<17x32xf32>
    %15 = arith.addf %12, %14 : vector<17x32xf32>
    %16 = vector.extract_strided_slice %15 {offsets = [0, 0], sizes = [16, 32], strides = [1, 1]} : vector<17x32xf32> to vector<16x32xf32>
    %17 = vector.extract_strided_slice %15 {offsets = [16, 0], sizes = [1, 32], strides = [1, 1]} : vector<17x32xf32> to vector<1x32xf32>
    %c0_12 = arith.constant 0 : index
    %c0_13 = arith.constant 0 : index
    %18 = vector.load %arg2[%c0_12, %c0_13] : memref<16x32xf32, #tpu.memory_space<vmem>>, vector<16x32xf32>
    %19 = arith.mulf %18, %16 : vector<16x32xf32>
    %cst_14 = arith.constant dense<0.000000e+00> : vector<32xf32>
    %20 = vector.multi_reduction <add>, %19, %cst_14 [0] : vector<16x32xf32> to vector<32xf32>
    %21 = vector.shape_cast %20 : vector<32xf32> to vector<1x32xf32>
    %22 = arith.addf %17, %21 : vector<1x32xf32>
    %c0_15 = arith.constant 0 : index
    %c0_16 = arith.constant 0 : index
    %23 = vector.load %arg7[%c0_15, %c0_16] : memref<1x32xf32, #tpu.memory_space<vmem>>, vector<1x32xf32>
    tpu.vector_store %arg7[%c0_15, %c0_16], %22 {strides = array<i32>} : memref<1x32xf32, #tpu.memory_space<vmem>>, vector<1x32xf32>,
    return
  }
  func.func @transform_0(%arg0: i32) -> (i32, i32) {
    %c0_i32 = arith.constant 0 : i32
    %c0_i32_0 = arith.constant 0 : i32
    %c0_i32_1 = arith.constant 0 : i32
    return %c0_i32, %c0_i32_0 : i32, i32
  }
  func.func @transform_1(%arg0: i32) -> (i32, i32) {
    %c0_i32 = arith.constant 0 : i32
    %c0_i32_0 = arith.constant 0 : i32
    %c0_i32_1 = arith.constant 0 : i32
    return %c0_i32, %c0_i32_0 : i32, i32
  }
  func.func @transform_2(%arg0: i32) -> (i32, i32) {
    %c0_i32 = arith.constant 0 : i32
    %c0_i32_0 = arith.constant 0 : i32
    %c0_i32_1 = arith.constant 0 : i32
    return %c0_i32, %c0_i32_0 : i32, i32
  }
  func.func @transform_3(%arg0: i32) -> (i32, i32) {
    %c0_i32 = arith.constant 0 : i32
    %c0_i32_0 = arith.constant 0 : i32
    %c0_i32_1 = arith.constant 0 : i32
    return %c0_i32, %c0_i32_0 : i32, i32
  }
  func.func @transform_4(%arg0: i32) -> (i32, i32) {
    %c0_i32 = arith.constant 0 : i32
    %c0_i32_0 = arith.constant 0 : i32
    %c0_i32_1 = arith.constant 0 : i32
    return %c0_i32, %c0_i32_0 : i32, i32
  }
  func.func @transform_5(%arg0: i32) -> (i32, i32) {
    %c0_i32 = arith.constant 0 : i32
    %c0_i32_0 = arith.constant 0 : i32
    %c0_i32_1 = arith.constant 0 : i32
    return %c0_i32, %c0_i32_0 : i32, i32
  }
  func.func @transform_6(%arg0: i32) -> (i32, i32) {
    %c0_i32 = arith.constant 0 : i32
    %c0_i32_0 = arith.constant 0 : i32
    %c0_i32_1 = arith.constant 0 : i32
    return %c0_i32, %c0_i32_0 : i32, i32
  }
}

module attributes {stable_mosaic.version = 11 : i64} {
  func.func @_final_head_kernel(%arg0: i32, %arg1: memref<288x8xf32, #tpu.memory_space<vmem>>, %arg2: memref<16x8xf32, #tpu.memory_space<vmem>>, %arg3: memref<16x288xf32, #tpu.memory_space<vmem>>, %arg4: memref<16x1xf32, #tpu.memory_space<vmem>>, %arg5: memref<17x16xf32, #tpu.memory_space<vmem>>, %arg6: memref<17x1xf32, #tpu.memory_space<vmem>>, %arg7: memref<1x8xf32, #tpu.memory_space<vmem>>) attributes {dimension_semantics = [#tpu.dimension_semantics<parallel>], iteration_bounds = array<i64: 1>, scalar_prefetch = 0 : i64, scratch_operands = 0 : i64, tpu.core_type = #tpu.core_type<tc>, window_params = [{pipeline_mode = #tpu.pipeline_mode<synchronous>, transform_indices = @transform_0, window_bounds = array<i64: 288, 8>}, {pipeline_mode = #tpu.pipeline_mode<synchronous>, transform_indices = @transform_1, window_bounds = array<i64: 16, 8>}, {pipeline_mode = #tpu.pipeline_mode<synchronous>, transform_indices = @transform_2, window_bounds = array<i64: 16, 288>}, {pipeline_mode = #tpu.pipeline_mode<synchronous>, transform_indices = @transform_3, window_bounds = array<i64: 16, 1>}, {pipeline_mode = #tpu.pipeline_mode<synchronous>, transform_indices = @transform_4, window_bounds = array<i64: 17, 16>}, {pipeline_mode = #tpu.pipeline_mode<synchronous>, transform_indices = @transform_5, window_bounds = array<i64: 17, 1>}, {pipeline_mode = #tpu.pipeline_mode<synchronous>, transform_indices = @transform_6, window_bounds = array<i64: 1, 8>}]} {
    %c0 = arith.constant 0 : index
    %c0_0 = arith.constant 0 : index
    %0 = vector.load %arg3[%c0, %c0_0] : memref<16x288xf32, #tpu.memory_space<vmem>>, vector<16x288xf32>
    %c0_1 = arith.constant 0 : index
    %c0_2 = arith.constant 0 : index
    %1 = vector.load %arg1[%c0_1, %c0_2] : memref<288x8xf32, #tpu.memory_space<vmem>>, vector<288x8xf32>
    %cst = arith.constant dense<0.000000e+00> : vector<16x8xf32>
    %2 = tpu.matmul %0, %1, %cst {dimension_numbers = #tpu.dot_dimension_numbers<[1], [0], [0], [1], [0, 0, 1, 1], [], []>} : vector<16x288xf32>, vector<288x8xf32>, vector<16x8xf32> -> vector<16x8xf32>
    %c0_3 = arith.constant 0 : index
    %c0_4 = arith.constant 0 : index
    %3 = vector.load %arg4[%c0_3, %c0_4] : memref<16x1xf32, #tpu.memory_space<vmem>>, vector<16x1xf32>
    %4 = vector.broadcast %3 : vector<16x1xf32> to vector<16x8xf32>
    %5 = arith.addf %2, %4 : vector<16x8xf32>
    %cst_5 = arith.constant 0.000000e+00 : f32
    %6 = vector.broadcast %cst_5 : f32 to vector<16x8xf32>
    %7 = arith.cmpf oge, %5, %6 : vector<16x8xf32>
    %cst_6 = arith.constant 2.000000e-01 : f32
    %8 = vector.broadcast %cst_6 : f32 to vector<16x8xf32>
    %9 = arith.mulf %5, %8 : vector<16x8xf32>
    %10 = arith.select %7, %5, %9 : vector<16x8xi1>, vector<16x8xf32>
    %c0_7 = arith.constant 0 : index
    %c0_8 = arith.constant 0 : index
    %11 = vector.load %arg5[%c0_7, %c0_8] : memref<17x16xf32, #tpu.memory_space<vmem>>, vector<17x16xf32>
    %cst_9 = arith.constant dense<0.000000e+00> : vector<17x8xf32>
    %12 = tpu.matmul %11, %10, %cst_9 {dimension_numbers = #tpu.dot_dimension_numbers<[1], [0], [0], [1], [0, 0, 1, 1], [], []>} : vector<17x16xf32>, vector<16x8xf32>, vector<17x8xf32> -> vector<17x8xf32>
    %c0_10 = arith.constant 0 : index
    %c0_11 = arith.constant 0 : index
    %13 = vector.load %arg6[%c0_10, %c0_11] : memref<17x1xf32, #tpu.memory_space<vmem>>, vector<17x1xf32>
    %14 = vector.broadcast %13 : vector<17x1xf32> to vector<17x8xf32>
    %15 = arith.addf %12, %14 : vector<17x8xf32>
    %16 = vector.extract_strided_slice %15 {offsets = [0, 0], sizes = [16, 8], strides = [1, 1]} : vector<17x8xf32> to vector<16x8xf32>
    %17 = vector.extract_strided_slice %15 {offsets = [16, 0], sizes = [1, 8], strides = [1, 1]} : vector<17x8xf32> to vector<1x8xf32>
    %c0_12 = arith.constant 0 : index
    %c0_13 = arith.constant 0 : index
    %18 = vector.load %arg2[%c0_12, %c0_13] : memref<16x8xf32, #tpu.memory_space<vmem>>, vector<16x8xf32>
    %19 = arith.mulf %18, %16 : vector<16x8xf32>
    %cst_14 = arith.constant dense<0.000000e+00> : vector<8xf32>
    %20 = vector.multi_reduction <add>, %19, %cst_14 [0] : vector<16x8xf32> to vector<8xf32>
    %21 = vector.shape_cast %20 : vector<8xf32> to vector<1x8xf32>
    %22 = arith.addf %17, %21 : vector<1x8xf32>
    %c0_15 = arith.constant 0 : index
    %c0_16 = arith.constant 0 : index
    %23 = vector.load %arg7[%c0_15, %c0_16] : memref<1x8xf32, #tpu.memory_space<vmem>>, vector<1x8xf32>
    tpu.vector_store %arg7[%c0_15, %c0_16], %22 {strides = array<i32>} : memref<1x8xf32, #tpu.memory_space<vmem>>, vector<1x8xf32>,
    return
  }
  func.func @transform_0(%arg0: i32) -> (i32, i32) {
    %c0_i32 = arith.constant 0 : i32
    %c0_i32_0 = arith.constant 0 : i32
    %c0_i32_1 = arith.constant 0 : i32
    return %c0_i32, %c0_i32_0 : i32, i32
  }
  func.func @transform_1(%arg0: i32) -> (i32, i32) {
    %c0_i32 = arith.constant 0 : i32
    %c0_i32_0 = arith.constant 0 : i32
    %c0_i32_1 = arith.constant 0 : i32
    return %c0_i32, %c0_i32_0 : i32, i32
  }
  func.func @transform_2(%arg0: i32) -> (i32, i32) {
    %c0_i32 = arith.constant 0 : i32
    %c0_i32_0 = arith.constant 0 : i32
    %c0_i32_1 = arith.constant 0 : i32
    return %c0_i32, %c0_i32_0 : i32, i32
  }
  func.func @transform_3(%arg0: i32) -> (i32, i32) {
    %c0_i32 = arith.constant 0 : i32
    %c0_i32_0 = arith.constant 0 : i32
    %c0_i32_1 = arith.constant 0 : i32
    return %c0_i32, %c0_i32_0 : i32, i32
  }
  func.func @transform_4(%arg0: i32) -> (i32, i32) {
    %c0_i32 = arith.constant 0 : i32
    %c0_i32_0 = arith.constant 0 : i32
    %c0_i32_1 = arith.constant 0 : i32
    return %c0_i32, %c0_i32_0 : i32, i32
  }
  func.func @transform_5(%arg0: i32) -> (i32, i32) {
    %c0_i32 = arith.constant 0 : i32
    %c0_i32_0 = arith.constant 0 : i32
    %c0_i32_1 = arith.constant 0 : i32
    return %c0_i32, %c0_i32_0 : i32, i32
  }
  func.func @transform_6(%arg0: i32) -> (i32, i32) {
    %c0_i32 = arith.constant 0 : i32
    %c0_i32_0 = arith.constant 0 : i32
    %c0_i32_1 = arith.constant 0 : i32
    return %c0_i32, %c0_i32_0 : i32, i32
  }
}

</mosaic_0001>

<bundles_post_ra>
// kernel: fpse_forward.13
= control target key start
LH: loop header
LB: loop body
LE: loop exit
PB: predicated region body
PF: predicated region fallthrough
CT: control target
= control target key end

     0   :  { %vm41_vm0 = vcmask 1042432   ;;  %v225_v3 = vmov 0.0   ;;  %vm37_vm1 = vcmask 220160   ;;  %v226_v19 = vmov 0   ;;  %s313_s0 = inlined_call_operand.vmem [shape: f32[27,512], index: 0, kind: input, shape index: {}]   ;;  %s314_s1 = inlined_call_operand.vmem [shape: f32[8,27], index: 1, kind: input, shape index: {}]   ;;  %s315_s2 = inlined_call_operand.vmem [shape: f32[8,1], index: 2, kind: input, shape index: {}]   ;;  %s316_s3 = inlined_call_operand.vmem [shape: f32[8,512], index: 3, kind: output, shape index: {}]  }
   0x1   :  { %v28_v0 = vld [vmem:[%s313_s0 + $0x68] sm:$0x7]  ;;  %v30_v1 = vld [vmem:[%s313_s0 + $0x78] sm:$0x7]  ;;  %v27_v2 = vld [vmem:[%s313_s0 + $0x60] sm:$0x7]  ;;  %118 = vmatprep.mubr.f32.mxu0 %v225_v3  ;;  %189 = vmatprep.mubr.f32.mxu1 %v225_v3 }
   0x2   :  { %216 = vmatprep.subr.msk.mxu0 %vm41_vm0, %v28_v0  ;;  %219 = vmatprep.subr.msk.mxu1 %vm41_vm0, %v30_v1  ;;  %v29_v4 = vld [vmem:[%s313_s0 + $0x70] sm:$0x7]  ;;  %v24_v5 = vld [vmem:[%s313_s0 + $0x48] sm:$0xff]  ;;  %v26_v6 = vld [vmem:[%s313_s0 + $0x58] sm:$0xff] }
   0x3   :  { %217 = vmatpush1.msk.msra.mxu0 %vm41_vm0, %v27_v2  ;;  %220 = vmatpush1.msk.msra.mxu1 %vm41_vm0, %v29_v4  ;;  %v23_v7 = vld [vmem:[%s313_s0 + $0x40] sm:$0xff]  ;;  %v25_v8 = vld [vmem:[%s313_s0 + $0x50] sm:$0xff]  ;;  %v20_v9 = vld [vmem:[%s313_s0 + $0x28] sm:$0xff] }
   0x4   :  { %80 = vmatprep.subr.mxu0 %v24_v5  ;;  %151 = vmatprep.subr.mxu1 %v26_v6  ;;  %v22_v10 = vld [vmem:[%s313_s0 + $0x38] sm:$0xff]  ;;  %v19_v11 = vld [vmem:[%s313_s0 + $0x20] sm:$0xff]  ;;  %v21_v12 = vld [vmem:[%s313_s0 + $0x30] sm:$0xff] }
   0x5   :  { %81 = vmatpush1.msra.mxu0 %v23_v7  ;;  %152 = vmatpush1.msra.mxu1 %v25_v8  ;;  %v16_v13 = vld [vmem:[%s313_s0 + $0x8] sm:$0xff]  ;;  %v18_v14 = vld [vmem:[%s313_s0 + $0x18] sm:$0xff]  ;;  %v15_v15 = vld [vmem:[%s313_s0] sm:$0xff] }
   0x6   :  { %82 = vmatprep.subr.mxu0 %v20_v9  ;;  %153 = vmatprep.subr.mxu1 %v22_v10  ;;  %v17_v16 = vld [vmem:[%s313_s0 + $0x10] sm:$0xff]  ;;  %v14_v17 = vld [vmem:[%s314_s1] sm:$0xff] }
   0x7   :  { %83 = vmatpush1.msra.mxu0 %v19_v11  ;;  %154 = vmatpush1.msra.mxu1 %v21_v12  ;;  %v31_v18 = vld [vmem:[%s315_s2] sm:$0xff] }
   0x8   :  { %84 = vmatprep.subr.mxu0 %v16_v13  ;;  %155 = vmatprep.subr.mxu1 %v18_v14 }
   0x9   :  { %85 = vmatpush1.msra.mxu0 %v15_v15  ;;  %156 = vmatpush1.msra.mxu1 %v17_v16 }
   0xa   :  { %218 = vmatmul.mubr.msk.f32.vlgmr.msra.gmra.mxu0 %vm37_vm1, %v14_v17  ;;  %221 = vmatmul.mubr.msk.f32.vlgmr.msra.gmra.mxu1 %vm37_vm1, %v14_v17 }
   0xb   :  { %224 = vset.pattern.permute.xlu0 %v226_v19 }
   0xc   :  { %34 = vperm.xlu0 %224, %v31_v18  }
  0x87   :  { %v35_v20 = vpop.permute.xlu0 %34 }
  0xca   :  { %v120_v21 = vpop.f32.mrf.mxu0  ;;  %v191_v22 = vpop.f32.mrf.mxu1 }
  0xcb   :  { %v121_v23 = vadd.f32 %v120_v21, %v35_v20  ;;  %v192_v24 = vadd.f32 %v191_v22, %v35_v20 }
  0xcc   :  { %v122_v25 = vpop.f32.mrf.mxu0  ;;  %v193_v26 = vpop.f32.mrf.mxu1 }
  0xcd   :  { %vm196_vm2 = vcmp.ge.f32.partialorder %v121_v23, 0.0  ;;  %v200_v27 = vmul.f32 0.2, %v121_v23  ;;  %vm198_vm3 = vcmp.ge.f32.partialorder %v192_v24, 0.0  ;;  %v202_v28 = vmul.f32 0.2, %v192_v24 }
  0xce   :  { %v123_v29 = vadd.f32 %v122_v25, %v35_v20  ;;  %v194_v30 = vadd.f32 %v193_v26, %v35_v20 }
  0xcf   :  { %v204_v31 = vsel %vm196_vm2, %v121_v23, %v200_v27  ;;  %v206_v32 = vsel %vm198_vm3, %v192_v24, %v202_v28 }
  0xd0   :  { %208 = vst [vmem:[%s316_s3] sm:$0xff] %v204_v31  ;;  %210 = vst [vmem:[%s316_s3 + $0x10] sm:$0xff] %v206_v32  ;;  %vm197_vm4 = vcmp.ge.f32.partialorder %v123_v29, 0.0  ;;  %v201_v33 = vmul.f32 0.2, %v123_v29  ;;  %vm199_vm5 = vcmp.ge.f32.partialorder %v194_v30, 0.0 }
  0xd1   :  { %v203_v34 = vmul.f32 0.2, %v194_v30 }
  0xd2   :  { %v205_v35 = vsel %vm197_vm4, %v123_v29, %v201_v33 }
  0xd3   :  { %v207_v36 = vsel %vm199_vm5, %v194_v30, %v203_v34  ;;  %209 = vst [vmem:[%s316_s3 + $0x8] sm:$0xff] %v205_v35 }
  0xd4   :  { %211 = vst [vmem:[%s316_s3 + $0x18] sm:$0xff] %v207_v36 }

// kernel: fpse_forward.14
= control target key start
LH: loop header
LB: loop body
LE: loop exit
PB: predicated region body
PF: predicated region fallthrough
CT: control target
= control target key end

     0   :  { %v167_v2 = vmov 0   ;;  %vm37_vm0 = vcmask 588800   ;;  %s235_s0 = inlined_call_operand.vmem [shape: f32[72,128], index: 0, kind: input, shape index: {}]   ;;  %s236_s1 = inlined_call_operand.vmem [shape: f32[16,72], index: 1, kind: input, shape index: {}]   ;;  %s237_s2 = inlined_call_operand.vmem [shape: f32[16,1], index: 2, kind: input, shape index: {}]   ;;  %s238_s3 = inlined_call_operand.vmem [shape: f32[16,128], index: 3, kind: output, shape index: {}]  }
   0x1   :  { %v24_v0 = vld [vmem:[%s235_s0 + $0x40] sm:$0xff]  ;;  %v23_v1 = vld [vmem:[%s235_s0 + $0x38] sm:$0xff]  ;;  %166 = vset.pattern.permute.xlu0 %v167_v2  ;;  %v22_v3 = vld [vmem:[%s235_s0 + $0x30] sm:$0xff] }
   0x2   :  { %144 = vmatprep.subr.mxu0 %v24_v0  ;;  %v14_v4 = vld [vmem:[%s236_s1] sm:$0xff]  ;;  %v21_v6 = vld [vmem:[%s235_s0 + $0x28] sm:$0xff]  ;;  %v19_v9 = vld [vmem:[%s235_s0 + $0x18] sm:$0xff] }
   0x3   :  { %145 = vmatpush3.msra.mxu0 %v24_v0  ;;  %v25_v5 = vld [vmem:[%s237_s2] sm:$0xff]  ;;  %162 = vmatprep.mubr.msk.f32.mxu0 %vm37_vm0, %v14_v4  ;;  %v26_v8 = vld [vmem:[%s237_s2 + $0x8] sm:$0xff]  ;;  %v18_v10 = vld [vmem:[%s235_s0 + $0x10] sm:$0xff] }
   0x4   :  { %146 = vmatprep.subr.mxu0 %v23_v1  ;;  %29 = vperm.xlu0 %166, %v25_v5   ;;  %v20_v7 = vld [vmem:[%s235_s0 + $0x20] sm:$0xff]  ;;  %v17_v11 = vld [vmem:[%s235_s0 + $0x8] sm:$0xff] }
   0x5   :  { %147 = vmatpush3.msra.mxu0 %v23_v1  ;;  %v16_v12 = vld [vmem:[%s235_s0] sm:$0xff]  ;;  %v15_v13 = vld [vmem:[%s236_s1 + $0x8] sm:$0xff] }
   0x6   :  { %148 = vmatprep.subr.mxu0 %v22_v3 }
   0x7   :  { %149 = vmatpush3.msra.mxu0 %v22_v3 }
   0x8   :  { %150 = vmatprep.subr.mxu0 %v21_v6  ;;  %34 = vperm.xlu0 %166, %v26_v8  }
   0x9   :  { %151 = vmatpush3.msra.mxu0 %v21_v6 }
   0xa   :  { %152 = vmatprep.subr.mxu0 %v20_v7 }
   0xb   :  { %153 = vmatpush3.msra.mxu0 %v20_v7 }
   0xc   :  { %154 = vmatprep.subr.mxu0 %v19_v9 }
   0xd   :  { %155 = vmatpush3.msra.mxu0 %v19_v9 }
   0xe   :  { %156 = vmatprep.subr.mxu0 %v18_v10 }
   0xf   :  { %157 = vmatpush3.msra.mxu0 %v18_v10 }
  0x10   :  { %158 = vmatprep.subr.mxu0 %v17_v11 }
  0x11   :  { %159 = vmatpush3.msra.mxu0 %v17_v11 }
  0x12   :  { %160 = vmatprep.subr.mxu0 %v16_v12 }
  0x13   :  { %161 = vmatpush3.msra.mxu0 %v16_v12 }
  0x14   :  { %163 = vmatmul.mubr.msk.f32.vlgmr.msra.gmra.mxu0 %vm37_vm0, %v15_v13 }
  0x7f   :  { %v30_v14 = vpop.permute.xlu0 %29 }
  0x83   :  { %v35_v15 = vpop.permute.xlu0 %34 }
  0xd4   :  { %v164_v16 = vpop.f32.mrf.mxu0 }
  0xd5   :  { %v116_v17 = vadd.f32 %v164_v16, %v35_v15 }
  0xd6   :  { %v110_v18 = vpop.f32.mrf.mxu0 }
  0xd7   :  { %vm120_vm1 = vcmp.ge.f32.partialorder %v116_v17, 0.0  ;;  %v122_v19 = vmul.f32 0.2, %v116_v17  ;;  %v111_v20 = vadd.f32 %v110_v18, %v30_v14 }
  0xd9   :  { %v124_v21 = vsel %vm120_vm1, %v116_v17, %v122_v19  ;;  %vm119_vm2 = vcmp.ge.f32.partialorder %v111_v20, 0.0  ;;  %v121_v22 = vmul.f32 0.2, %v111_v20 }
  0xda   :  { %126 = vst [vmem:[%s238_s3 + $0x8] sm:$0xff] %v124_v21 }
  0xdb   :  { %v123_v23 = vsel %vm119_vm2, %v111_v20, %v121_v22 }
  0xdc   :  { %125 = vst [vmem:[%s238_s3] sm:$0xff] %v123_v23 }

// kernel: fpse_forward.15
= control target key start
LH: loop header
LB: loop body
LE: loop exit
PB: predicated region body
PF: predicated region fallthrough
CT: control target
= control target key end

     0   :  { %v227_v0 = vmov 0.0   ;;  %vm64_vm0 = vcmask 130048   ;;  %v228_v29 = vmov 0   ;;  %vm174_vm1 = vcmask 261120   ;;  %s395_s0 = inlined_call_operand.vmem [shape: f32[144,32], index: 0, kind: input, shape index: {}]   ;;  %s396_s1 = inlined_call_operand.vmem [shape: f32[32,144], index: 1, kind: input, shape index: {}]   ;;  %s397_s2 = inlined_call_operand.vmem [shape: f32[32,1], index: 2, kind: input, shape index: {}]   ;;  %s398_s3 = inlined_call_operand.vmem [shape: f32[32,32], index: 3, kind: output, shape index: {}]  }
   0x1   :  { %77 = vmatprep.subr.mxu0 %v227_v0  ;;  %187 = vmatprep.subr.mxu1 %v227_v0  ;;  %v37_v1 = vld [vmem:[%s395_s0 + $0x78] sm:$0xff]  ;;  %v36_v2 = vld [vmem:[%s395_s0 + $0x70] sm:$0xff]  ;;  %v35_v3 = vld [vmem:[%s395_s0 + $0x68] sm:$0xff] }
   0x2   :  { %78 = vmatpush1.msra.mxu0 %v37_v1  ;;  %205 = vmatpush1.msra.mxu1 %v37_v1  ;;  %v34_v4 = vld [vmem:[%s395_s0 + $0x60] sm:$0xff]  ;;  %v33_v5 = vld [vmem:[%s395_s0 + $0x58] sm:$0xff]  ;;  %v32_v6 = vld [vmem:[%s395_s0 + $0x50] sm:$0xff] }
   0x3   :  { %79 = vmatprep.subr.mxu0 %v227_v0  ;;  %188 = vmatprep.subr.mxu1 %v227_v0  ;;  %v31_v7 = vld [vmem:[%s395_s0 + $0x48] sm:$0xff]  ;;  %v30_v8 = vld [vmem:[%s395_s0 + $0x40] sm:$0xff]  ;;  %v29_v9 = vld [vmem:[%s395_s0 + $0x38] sm:$0xff] }
   0x4   :  { %80 = vmatpush1.msra.mxu0 %v36_v2  ;;  %206 = vmatpush1.msra.mxu1 %v36_v2  ;;  %v28_v10 = vld [vmem:[%s395_s0 + $0x30] sm:$0xff]  ;;  %v27_v11 = vld [vmem:[%s395_s0 + $0x28] sm:$0xff]  ;;  %v26_v12 = vld [vmem:[%s395_s0 + $0x20] sm:$0xff] }
   0x5   :  { %81 = vmatprep.subr.mxu0 %v227_v0  ;;  %189 = vmatprep.subr.mxu1 %v227_v0  ;;  %v25_v13 = vld [vmem:[%s395_s0 + $0x18] sm:$0xff]  ;;  %v24_v14 = vld [vmem:[%s395_s0 + $0x10] sm:$0xff]  ;;  %v23_v15 = vld [vmem:[%s395_s0 + $0x8] sm:$0xff] }
   0x6   :  { %82 = vmatpush1.msra.mxu0 %v35_v3  ;;  %207 = vmatpush1.msra.mxu1 %v35_v3  ;;  %v22_v16 = vld [vmem:[%s395_s0] sm:$0xff]  ;;  %v39_v17 = vld [vmem:[%s395_s0 + $0x88] sm:$0xff]  ;;  %v17_v23 = vld [vmem:[%s396_s1 + $0x18] sm:$0xff] }
   0x7   :  { %83 = vmatprep.subr.mxu0 %v227_v0  ;;  %190 = vmatprep.subr.mxu1 %v227_v0  ;;  %v38_v18 = vld [vmem:[%s395_s0 + $0x80] sm:$0xff]  ;;  %v15_v19 = vld [vmem:[%s396_s1 + $0x8] sm:$0xff]  ;;  %v21_v24 = vld [vmem:[%s396_s1 + $0x38] sm:$0xff] }
   0x8   :  { %84 = vmatpush1.msra.mxu0 %v34_v4  ;;  %208 = vmatpush1.msra.mxu1 %v34_v4  ;;  %v19_v20 = vld [vmem:[%s396_s1 + $0x28] sm:$0xff]  ;;  %v14_v21 = vld [vmem:[%s396_s1] sm:$0xff]  ;;  %v42_v25 = vld [vmem:[%s397_s2 + $0x10] sm:$0xff] }
   0x9   :  { %85 = vmatprep.subr.mxu0 %v227_v0  ;;  %191 = vmatprep.subr.mxu1 %v227_v0  ;;  %v18_v22 = vld [vmem:[%s396_s1 + $0x20] sm:$0xff]  ;;  %v16_v27 = vld [vmem:[%s396_s1 + $0x10] sm:$0xff]  ;;  %v43_v30 = vld [vmem:[%s397_s2 + $0x18] sm:$0xff] }
   0xa   :  { %86 = vmatpush1.msra.mxu0 %v33_v5  ;;  %209 = vmatpush1.msra.mxu1 %v33_v5  ;;  %v40_v26 = vld [vmem:[%s397_s2] sm:$0xff]  ;;  %v20_v28 = vld [vmem:[%s396_s1 + $0x30] sm:$0xff]  ;;  %v41_v31 = vld [vmem:[%s397_s2 + $0x8] sm:$0xff] }
   0xb   :  { %87 = vmatprep.subr.mxu0 %v227_v0  ;;  %192 = vmatprep.subr.mxu1 %v227_v0 }
   0xc   :  { %88 = vmatpush1.msra.mxu0 %v32_v6  ;;  %210 = vmatpush1.msra.mxu1 %v32_v6 }
   0xd   :  { %89 = vmatprep.subr.mxu0 %v227_v0  ;;  %193 = vmatprep.subr.mxu1 %v227_v0 }
   0xe   :  { %90 = vmatpush1.msra.mxu0 %v31_v7  ;;  %211 = vmatpush1.msra.mxu1 %v31_v7 }
   0xf   :  { %91 = vmatprep.subr.mxu0 %v227_v0  ;;  %194 = vmatprep.subr.mxu1 %v227_v0 }
  0x10   :  { %92 = vmatpush1.msra.mxu0 %v30_v8  ;;  %212 = vmatpush1.msra.mxu1 %v30_v8 }
  0x11   :  { %93 = vmatprep.subr.mxu0 %v227_v0  ;;  %195 = vmatprep.subr.mxu1 %v227_v0 }
  0x12   :  { %94 = vmatpush1.msra.mxu0 %v29_v9  ;;  %213 = vmatpush1.msra.mxu1 %v29_v9 }
  0x13   :  { %95 = vmatprep.subr.mxu0 %v227_v0  ;;  %196 = vmatprep.subr.mxu1 %v227_v0 }
  0x14   :  { %96 = vmatpush1.msra.mxu0 %v28_v10  ;;  %214 = vmatpush1.msra.mxu1 %v28_v10 }
  0x15   :  { %97 = vmatprep.subr.mxu0 %v227_v0  ;;  %197 = vmatprep.subr.mxu1 %v227_v0 }
  0x16   :  { %98 = vmatpush1.msra.mxu0 %v27_v11  ;;  %215 = vmatpush1.msra.mxu1 %v27_v11 }
  0x17   :  { %99 = vmatprep.subr.mxu0 %v227_v0  ;;  %198 = vmatprep.subr.mxu1 %v227_v0 }
  0x18   :  { %100 = vmatpush1.msra.mxu0 %v26_v12  ;;  %216 = vmatpush1.msra.mxu1 %v26_v12 }
  0x19   :  { %101 = vmatprep.subr.mxu0 %v227_v0  ;;  %199 = vmatprep.subr.mxu1 %v227_v0 }
  0x1a   :  { %102 = vmatpush1.msra.mxu0 %v25_v13  ;;  %217 = vmatpush1.msra.mxu1 %v25_v13 }
  0x1b   :  { %103 = vmatprep.subr.mxu0 %v227_v0  ;;  %200 = vmatprep.subr.mxu1 %v227_v0 }
  0x1c   :  { %104 = vmatpush1.msra.mxu0 %v24_v14  ;;  %218 = vmatpush1.msra.mxu1 %v24_v14 }
  0x1d   :  { %105 = vmatprep.subr.mxu0 %v227_v0  ;;  %201 = vmatprep.subr.mxu1 %v227_v0 }
  0x1e   :  { %106 = vmatpush1.msra.mxu0 %v23_v15  ;;  %219 = vmatpush1.msra.mxu1 %v23_v15 }
  0x1f   :  { %107 = vmatprep.subr.mxu0 %v227_v0  ;;  %202 = vmatprep.subr.mxu1 %v227_v0 }
  0x20   :  { %108 = vmatpush1.msra.mxu0 %v22_v16  ;;  %220 = vmatpush1.msra.mxu1 %v22_v16 }
  0x21   :  { %137 = vmatprep.subr.mxu0 %v227_v0  ;;  %203 = vmatprep.subr.mxu1 %v227_v0 }
  0x22   :  { %138 = vmatpush2.msra.mxu0 %v39_v17  ;;  %221 = vmatpush2.msra.mxu1 %v39_v17 }
  0x23   :  { %139 = vmatprep.subr.mxu0 %v227_v0  ;;  %204 = vmatprep.subr.mxu1 %v227_v0 }
  0x24   :  { %140 = vmatpush2.msra.mxu0 %v38_v18  ;;  %222 = vmatpush2.msra.mxu1 %v38_v18 }
  0x25   :  { %183 = vmatprep.mubr.msk.f32.mxu0 %vm64_vm0, %v15_v19  ;;  %185 = vmatprep.mubr.msk.f32.mxu1 %vm64_vm0, %v19_v20 }
  0x26   :  { %142 = vmatmul.mubr.f32.vlgmr.msra.gmra.mxu0 %v14_v21  ;;  %152 = vmatmul.mubr.f32.vlgmr.msra.gmra.mxu1 %v18_v22 }
  0x27   :  { %184 = vmatprep.mubr.msk.f32.mxu0 %vm64_vm0, %v17_v23  ;;  %186 = vmatprep.mubr.msk.f32.mxu1 %vm64_vm0, %v21_v24 }
  0x28   :  { %226 = vset.pattern.permute.xlu1 %v228_v29  ;;  %225 = vset.pattern.permute.xlu0 %v228_v29 }
  0x29   :  { %56 = vperm.xlu1 %226, %v42_v25   ;;  %46 = vperm.xlu0 %225, %v40_v26  }
  0x2a   :  { %147 = vmatmul.mubr.f32.gmra.mxu0 %v16_v27  ;;  %157 = vmatmul.mubr.f32.gmra.mxu1 %v20_v28 }
  0x2d   :  { %61 = vperm.xlu1 %226, %v43_v30   ;;  %51 = vperm.xlu0 %225, %v41_v31  }
  0xa4   :  { %v57_v32 = vpop.permute.xlu1 %56  ;;  %v47_v33 = vpop.permute.xlu0 %46 }
  0xa8   :  { %v62_v40 = vpop.permute.xlu1 %61  ;;  %v52_v41 = vpop.permute.xlu0 %51 }
  0xe6   :  { %v143_v34 = vpop.f32.mrf.mxu0  ;;  %v153_v35 = vpop.f32.mrf.mxu1 }
  0xe7   :  { %v144_v36 = vadd.f32 %v143_v34, %v47_v33  ;;  %v154_v37 = vadd.f32 %v153_v35, %v57_v32 }
  0xe8   :  { %v145_v38 = vpop.f32.mrf.mxu0  ;;  %v155_v39 = vpop.f32.mrf.mxu1 }
  0xe9   :  { %vm162_vm2 = vcmp.ge.f32.partialorder %v144_v36, 0.0  ;;  %v166_v42 = vmul.f32 0.2, %v144_v36  ;;  %vm164_vm3 = vcmp.ge.f32.partialorder %v154_v37, 0.0  ;;  %v168_v43 = vmul.f32 0.2, %v154_v37 }
  0xea   :  { %v148_v44 = vpop.f32.mrf.mxu0  ;;  %v158_v45 = vpop.f32.mrf.mxu1 }
  0xeb   :  { %v170_v46 = vsel %vm162_vm2, %v144_v36, %v166_v42  ;;  %v172_v47 = vsel %vm164_vm3, %v154_v37, %v168_v43  ;;  %v149_v48 = vadd.f32 %v148_v44, %v52_v41  ;;  %v159_v49 = vadd.f32 %v158_v45, %v62_v40 }
  0xec   :  { %175 = vst.msk [vmem:[%s398_s3] sm:$0xff] %vm174_vm1, %v170_v46  ;;  %177 = vst.msk [vmem:[%s398_s3 + $0x10] sm:$0xff] %vm174_vm1, %v172_v47  ;;  %v150_v50 = vpop.f32.mrf.mxu0  ;;  %v160_v51 = vpop.f32.mrf.mxu1 }
  0xed   :  { %vm163_vm4 = vcmp.ge.f32.partialorder %v149_v48, 0.0  ;;  %v167_v52 = vmul.f32 0.2, %v149_v48  ;;  %vm165_vm5 = vcmp.ge.f32.partialorder %v159_v49, 0.0  ;;  %v169_v53 = vmul.f32 0.2, %v159_v49 }
  0xef   :  { %v171_v54 = vsel %vm163_vm4, %v149_v48, %v167_v52  ;;  %v173_v55 = vsel %vm165_vm5, %v159_v49, %v169_v53 }
  0xf0   :  { %176 = vst.msk [vmem:[%s398_s3 + $0x8] sm:$0xff] %vm174_vm1, %v171_v54  ;;  %178 = vst.msk [vmem:[%s398_s3 + $0x18] sm:$0xff] %vm174_vm1, %v173_v55 }

// kernel: fpse_forward.16
= control target key start
LH: loop header
LB: loop body
LE: loop exit
PB: predicated region body
PF: predicated region fallthrough
CT: control target
= control target key end

     0   :  { %v525_v3 = vmov 0   ;;  %vm122_vm0 = vcmask 261120   ;;  %vm381_vm2 = vcmask 64512   ;;  %s790_s0 = inlined_call_operand.vmem [shape: f32[288,8], index: 0, kind: input, shape index: {}]   ;;  %s791_s1 = inlined_call_operand.vmem [shape: f32[64,288], index: 1, kind: input, shape index: {}]   ;;  %s792_s2 = inlined_call_operand.vmem [shape: f32[64,1], index: 2, kind: input, shape index: {}]   ;;  %s793_s3 = inlined_call_operand.vmem [shape: f32[64,8], index: 3, kind: output, shape index: {}]  }
   0x1   :  { %v69_v0 = vld [vmem:[%s790_s0 + $0xf8] sm:$0xff]  ;;  %v68_v2 = vld [vmem:[%s790_s0 + $0xf0] sm:$0xff]  ;;  %523 = vset.pattern.permute.xlu0 %v525_v3  ;;  %524 = vset.pattern.permute.xlu1 %v525_v3  ;;  %v67_v5 = vld [vmem:[%s790_s0 + $0xe8] sm:$0xff] }
   0x2   :  { %v53_v1 = vld [vmem:[%s790_s0 + $0x78] sm:$0xff]  ;;  %402 = vmatprep.subr.mxu0 %v69_v0  ;;  %490 = vmatprep.subr.mxu1 %v69_v0  ;;  %v52_v4 = vld [vmem:[%s790_s0 + $0x70] sm:$0xff]  ;;  %v51_v6 = vld [vmem:[%s790_s0 + $0x68] sm:$0xff] }
   0x3   :  { %403 = vmatpush3.msra.mxu0 %v53_v1  ;;  %506 = vmatpush3.msra.mxu1 %v53_v1  ;;  %v66_v7 = vld [vmem:[%s790_s0 + $0xe0] sm:$0xff]  ;;  %v65_v9 = vld [vmem:[%s790_s0 + $0xd8] sm:$0xff]  ;;  %v64_v11 = vld [vmem:[%s790_s0 + $0xd0] sm:$0xff] }
   0x4   :  { %404 = vmatprep.subr.mxu0 %v68_v2  ;;  %491 = vmatprep.subr.mxu1 %v68_v2  ;;  %v50_v8 = vld [vmem:[%s790_s0 + $0x60] sm:$0xff]  ;;  %v49_v10 = vld [vmem:[%s790_s0 + $0x58] sm:$0xff]  ;;  %v48_v12 = vld [vmem:[%s790_s0 + $0x50] sm:$0xff] }
   0x5   :  { %405 = vmatpush3.msra.mxu0 %v52_v4  ;;  %507 = vmatpush3.msra.mxu1 %v52_v4  ;;  %v63_v13 = vld [vmem:[%s790_s0 + $0xc8] sm:$0xff]  ;;  %v62_v15 = vld [vmem:[%s790_s0 + $0xc0] sm:$0xff]  ;;  %v61_v17 = vld [vmem:[%s790_s0 + $0xb8] sm:$0xff] }
   0x6   :  { %406 = vmatprep.subr.mxu0 %v67_v5  ;;  %492 = vmatprep.subr.mxu1 %v67_v5  ;;  %v47_v14 = vld [vmem:[%s790_s0 + $0x48] sm:$0xff]  ;;  %v46_v16 = vld [vmem:[%s790_s0 + $0x40] sm:$0xff]  ;;  %v45_v18 = vld [vmem:[%s790_s0 + $0x38] sm:$0xff] }
   0x7   :  { %407 = vmatpush3.msra.mxu0 %v51_v6  ;;  %508 = vmatpush3.msra.mxu1 %v51_v6  ;;  %v60_v19 = vld [vmem:[%s790_s0 + $0xb0] sm:$0xff]  ;;  %v59_v21 = vld [vmem:[%s790_s0 + $0xa8] sm:$0xff]  ;;  %v58_v23 = vld [vmem:[%s790_s0 + $0xa0] sm:$0xff] }
   0x8   :  { %408 = vmatprep.subr.mxu0 %v66_v7  ;;  %493 = vmatprep.subr.mxu1 %v66_v7  ;;  %v44_v20 = vld [vmem:[%s790_s0 + $0x30] sm:$0xff]  ;;  %v43_v22 = vld [vmem:[%s790_s0 + $0x28] sm:$0xff]  ;;  %v42_v24 = vld [vmem:[%s790_s0 + $0x20] sm:$0xff] }
   0x9   :  { %409 = vmatpush3.msra.mxu0 %v50_v8  ;;  %509 = vmatpush3.msra.mxu1 %v50_v8  ;;  %v57_v25 = vld [vmem:[%s790_s0 + $0x98] sm:$0xff]  ;;  %v56_v27 = vld [vmem:[%s790_s0 + $0x90] sm:$0xff]  ;;  %v55_v29 = vld [vmem:[%s790_s0 + $0x88] sm:$0xff] }
   0xa   :  { %410 = vmatprep.subr.mxu0 %v65_v9  ;;  %494 = vmatprep.subr.mxu1 %v65_v9  ;;  %v41_v26 = vld [vmem:[%s790_s0 + $0x18] sm:$0xff]  ;;  %v40_v28 = vld [vmem:[%s790_s0 + $0x10] sm:$0xff]  ;;  %v39_v30 = vld [vmem:[%s790_s0 + $0x8] sm:$0xff] }
   0xb   :  { %411 = vmatpush3.msra.mxu0 %v49_v10  ;;  %510 = vmatpush3.msra.mxu1 %v49_v10  ;;  %v54_v31 = vld [vmem:[%s790_s0 + $0x80] sm:$0xff]  ;;  %v15_v33 = vld [vmem:[%s791_s1 + $0x8] sm:$0xff]  ;;  %v33_v34 = vld [vmem:[%s791_s1 + $0x98] sm:$0xff] }
   0xc   :  { %412 = vmatprep.subr.mxu0 %v64_v11  ;;  %495 = vmatprep.subr.mxu1 %v64_v11  ;;  %v38_v32 = vld [vmem:[%s790_s0] sm:$0xff]  ;;  %v32_v36 = vld [vmem:[%s791_s1 + $0x90] sm:$0xff]  ;;  %v73_v37 = vld [vmem:[%s790_s0 + $0x118] sm:$0xff] }
   0xd   :  { %413 = vmatpush3.msra.mxu0 %v48_v12  ;;  %511 = vmatpush3.msra.mxu1 %v48_v12  ;;  %v14_v35 = vld [vmem:[%s791_s1] sm:$0xff]  ;;  %v36_v39 = vld [vmem:[%s791_s1 + $0xb0] sm:$0xff]  ;;  %v17_v42 = vld [vmem:[%s791_s1 + $0x18] sm:$0xff] }
   0xe   :  { %414 = vmatprep.subr.mxu0 %v63_v13  ;;  %496 = vmatprep.subr.mxu1 %v63_v13  ;;  %v18_v38 = vld [vmem:[%s791_s1 + $0x20] sm:$0xff]  ;;  %v72_v40 = vld [vmem:[%s790_s0 + $0x110] sm:$0xff]  ;;  %v35_v43 = vld [vmem:[%s791_s1 + $0xa8] sm:$0xff] }
   0xf   :  { %415 = vmatpush3.msra.mxu0 %v47_v14  ;;  %512 = vmatpush3.msra.mxu1 %v47_v14  ;;  %v74_v41 = vld [vmem:[%s792_s2] sm:$0xff]  ;;  %v71_v44 = vld [vmem:[%s790_s0 + $0x108] sm:$0xff]  ;;  %v21_v45 = vld [vmem:[%s791_s1 + $0x38] sm:$0xff] }
  0x10   :  { %416 = vmatprep.subr.mxu0 %v62_v15  ;;  %497 = vmatprep.subr.mxu1 %v62_v15  ;;  %v70_v46 = vld [vmem:[%s790_s0 + $0x100] sm:$0xff]  ;;  %v16_v47 = vld [vmem:[%s791_s1 + $0x10] sm:$0xff]  ;;  %v19_v49 = vld [vmem:[%s791_s1 + $0x28] sm:$0xff] }
  0x11   :  { %417 = vmatpush3.msra.mxu0 %v46_v16  ;;  %513 = vmatpush3.msra.mxu1 %v46_v16  ;;  %v20_v48 = vld [vmem:[%s791_s1 + $0x30] sm:$0xff]  ;;  %v22_v51 = vld [vmem:[%s791_s1 + $0x40] sm:$0xff]  ;;  %v75_v53 = vld [vmem:[%s792_s2 + $0x8] sm:$0xff] }
  0x12   :  { %418 = vmatprep.subr.mxu0 %v61_v17  ;;  %498 = vmatprep.subr.mxu1 %v61_v17  ;;  %v24_v50 = vld [vmem:[%s791_s1 + $0x50] sm:$0xff]  ;;  %v23_v54 = vld [vmem:[%s791_s1 + $0x48] sm:$0xff]  ;;  %v25_v55 = vld [vmem:[%s791_s1 + $0x58] sm:$0xff] }
  0x13   :  { %419 = vmatpush3.msra.mxu0 %v45_v18  ;;  %514 = vmatpush3.msra.mxu1 %v45_v18  ;;  %v76_v52 = vld [vmem:[%s792_s2 + $0x10] sm:$0xff]  ;;  %v27_v56 = vld [vmem:[%s791_s1 + $0x68] sm:$0xff]  ;;  %v77_v58 = vld [vmem:[%s792_s2 + $0x18] sm:$0xff] }
  0x14   :  { %420 = vmatprep.subr.mxu0 %v60_v19  ;;  %499 = vmatprep.subr.mxu1 %v60_v19  ;;  %v28_v57 = vld [vmem:[%s791_s1 + $0x70] sm:$0xff]  ;;  %v78_v59 = vld [vmem:[%s792_s2 + $0x20] sm:$0xff]  ;;  %v31_v61 = vld [vmem:[%s791_s1 + $0x88] sm:$0xff] }
  0x15   :  { %421 = vmatpush3.msra.mxu0 %v44_v20  ;;  %515 = vmatpush3.msra.mxu1 %v44_v20  ;;  %v26_v60 = vld [vmem:[%s791_s1 + $0x60] sm:$0xff]  ;;  %v79_v0 = vld [vmem:[%s792_s2 + $0x28] sm:$0xff]  ;;  %v80_v1 = vld [vmem:[%s792_s2 + $0x30] sm:$0xff] }
  0x16   :  { %422 = vmatprep.subr.mxu0 %v59_v21  ;;  %500 = vmatprep.subr.mxu1 %v59_v21  ;;  %v30_v62 = vld [vmem:[%s791_s1 + $0x80] sm:$0xff]  ;;  %v29_v2 = vld [vmem:[%s791_s1 + $0x78] sm:$0xff] }
  0x17   :  { %423 = vmatpush3.msra.mxu0 %v43_v22  ;;  %516 = vmatpush3.msra.mxu1 %v43_v22  ;;  %v34_v63 = vld [vmem:[%s791_s1 + $0xa0] sm:$0xff]  ;;  %v37_v3 = vld [vmem:[%s791_s1 + $0xb8] sm:$0xff] }
  0x18   :  { %424 = vmatprep.subr.mxu0 %v58_v23  ;;  %501 = vmatprep.subr.mxu1 %v58_v23  ;;  %v81_v4 = vld [vmem:[%s792_s2 + $0x38] sm:$0xff] }
  0x19   :  { %425 = vmatpush3.msra.mxu0 %v42_v24  ;;  %517 = vmatpush3.msra.mxu1 %v42_v24 }
  0x1a   :  { %426 = vmatprep.subr.mxu0 %v57_v25  ;;  %502 = vmatprep.subr.mxu1 %v57_v25 }
  0x1b   :  { %427 = vmatpush3.msra.mxu0 %v41_v26  ;;  %518 = vmatpush3.msra.mxu1 %v41_v26 }
  0x1c   :  { %428 = vmatprep.subr.mxu0 %v56_v27  ;;  %503 = vmatprep.subr.mxu1 %v56_v27 }
  0x1d   :  { %429 = vmatpush3.msra.mxu0 %v40_v28  ;;  %519 = vmatpush3.msra.mxu1 %v40_v28 }
  0x1e   :  { %430 = vmatprep.subr.mxu0 %v55_v29  ;;  %504 = vmatprep.subr.mxu1 %v55_v29 }
  0x1f   :  { %431 = vmatpush3.msra.mxu0 %v39_v30  ;;  %520 = vmatpush3.msra.mxu1 %v39_v30 }
  0x20   :  { %432 = vmatprep.subr.mxu0 %v54_v31  ;;  %505 = vmatprep.subr.mxu1 %v54_v31 }
  0x21   :  { %433 = vmatpush3.msra.mxu0 %v38_v32  ;;  %521 = vmatpush3.msra.mxu1 %v38_v32 }
  0x22   :  { %211 = vmatprep.mubr.f32.mxu0 %v15_v33  ;;  %241 = vmatprep.mubr.f32.mxu1 %v33_v34 }
  0x23   :  { %212 = vmatmul.mubr.f32.vlgmr.msra.gmra.mxu0 %v14_v35  ;;  %242 = vmatmul.mubr.f32.vlgmr.msra.gmra.mxu1 %v32_v36 }
  0x24   :  { %470 = vmatprep.subr.mxu1 %v73_v37  ;;  %216 = vmatprep.mubr.f32.mxu0 %v18_v38 }
  0x25   :  { %471 = vmatpush3.msra.mxu1 %v73_v37  ;;  %246 = vmatprep.mubr.f32.mxu1 %v36_v39 }
  0x26   :  { %472 = vmatprep.subr.mxu1 %v72_v40  ;;  %84 = vperm.xlu0 %523, %v74_v41  }
  0x27   :  { %473 = vmatpush3.msra.mxu1 %v72_v40  ;;  %217 = vmatmul.mubr.f32.gmra.mxu0 %v17_v42 }
  0x28   :  { %247 = vmatmul.mubr.f32.gmra.mxu1 %v35_v43  ;;  %474 = vmatprep.subr.mxu1 %v71_v44 }
  0x29   :  { %475 = vmatpush3.msra.mxu1 %v71_v44  ;;  %221 = vmatprep.mubr.f32.mxu0 %v21_v45 }
  0x2a   :  { %476 = vmatprep.subr.mxu1 %v70_v46  ;;  %478 = vmatprep.mubr.msk.f32.mxu1 %vm122_vm0, %v16_v47 }
  0x2b   :  { %477 = vmatpush3.msra.mxu1 %v70_v46  ;;  %222 = vmatmul.mubr.f32.gmra.mxu0 %v20_v48 }
  0x2c   :  { %479 = vmatmul.mubr.msk.f32.vlgmr.msra.gmra.mxu1 %vm122_vm0, %v19_v49  ;;  %226 = vmatprep.mubr.f32.mxu0 %v24_v50 }
  0x2d   :  { %481 = vmatprep.mubr.msk.f32.mxu1 %vm122_vm0, %v22_v51  ;;  %94 = vperm.xlu1 %524, %v76_v52  }
  0x2e   :  { %89 = vperm.xlu0 %523, %v75_v53  }
  0x2f   :  { %227 = vmatmul.mubr.f32.gmra.mxu0 %v23_v54 }
  0x30   :  { %482 = vmatmul.mubr.msk.f32.gmra.mxu1 %vm122_vm0, %v25_v55  ;;  %231 = vmatprep.mubr.f32.mxu0 %v27_v56 }
  0x31   :  { %484 = vmatprep.mubr.msk.f32.mxu1 %vm122_vm0, %v28_v57  ;;  %99 = vperm.xlu1 %524, %v77_v58  }
  0x32   :  { %104 = vperm.xlu0 %523, %v78_v59  }
  0x33   :  { %232 = vmatmul.mubr.f32.gmra.mxu0 %v26_v60 }
  0x34   :  { %485 = vmatmul.mubr.msk.f32.gmra.mxu1 %vm122_vm0, %v31_v61  ;;  %236 = vmatprep.mubr.f32.mxu0 %v30_v62 }
  0x35   :  { %487 = vmatprep.mubr.msk.f32.mxu1 %vm122_vm0, %v34_v63  ;;  %109 = vperm.xlu1 %524, %v79_v0  }
  0x36   :  { %114 = vperm.xlu0 %523, %v80_v1  }
  0x37   :  { %237 = vmatmul.mubr.f32.gmra.mxu0 %v29_v2 }
  0x38   :  { %488 = vmatmul.mubr.msk.f32.gmra.mxu1 %vm122_vm0, %v37_v3 }
  0x39   :  { %119 = vperm.xlu1 %524, %v81_v4  }
  0xa1   :  { %v85_v8 = vpop.permute.xlu0 %84 }
  0xa8   :  { %v95_v5 = vpop.permute.xlu1 %94 }
  0xa9   :  { %v90_v16 = vpop.permute.xlu0 %89 }
  0xac   :  { %v100_v12 = vpop.permute.xlu1 %99 }
  0xad   :  { %v105_v30 = vpop.permute.xlu0 %104 }
  0xb0   :  { %v110_v24 = vpop.permute.xlu1 %109 }
  0xb1   :  { %v115_v49 = vpop.permute.xlu0 %114 }
  0xb4   :  { %v120_v43 = vpop.permute.xlu1 %119 }
  0xe3   :  { %v434_v6 = vpop.f32.mrf.mxu0  ;;  %v452_v7 = vpop.f32.mrf.mxu1 }
  0xe5   :  { %v435_v9 = vpop.f32.mrf.mxu0  ;;  %v453_v10 = vpop.f32.mrf.mxu1 }
  0xe6   :  { %v436_v14 = vadd.f32 %v435_v9, %v434_v6  ;;  %v454_v46 = vadd.f32 %v453_v10, %v452_v7 }
  0xe7   :  { %v437_v11 = vpop.f32.mrf.mxu0 }
  0xe8   :  { %v455_v13 = vpop.f32.mrf.mxu1  ;;  %v214_v23 = vadd.f32 %v436_v14, %v85_v8  ;;  %v244_v59 = vadd.f32 %v454_v46, %v115_v49 }
  0xe9   :  { %v438_v15 = vpop.f32.mrf.mxu0 }
  0xea   :  { %v439_v17 = vadd.f32 %v438_v15, %v437_v11  ;;  %v456_v18 = vpop.f32.mrf.mxu1 }
  0xeb   :  { %v440_v19 = vpop.f32.mrf.mxu0  ;;  %v457_v39 = vadd.f32 %v456_v18, %v455_v13 }
  0xec   :  { %v219_v20 = vadd.f32 %v439_v17, %v90_v16  ;;  %v480_v21 = vpop.f32.mrf.mxu1 }
  0xed   :  { %v441_v22 = vpop.f32.mrf.mxu0  ;;  %v249_v53 = vadd.f32 %v457_v39, %v120_v43 }
  0xee   :  { %v324_v25 = vadd.f32 %v480_v21, %v219_v20  ;;  %v442_v26 = vadd.f32 %v441_v22, %v440_v19  ;;  %v318_v27 = vpop.f32.mrf.mxu1 }
  0xef   :  { %v319_v28 = vadd.f32 %v318_v27, %v214_v23  ;;  %v443_v29 = vpop.f32.mrf.mxu0 }
  0xf0   :  { %vm358_vm1 = vcmp.ge.f32.partialorder %v324_v25, 0.0  ;;  %v366_v31 = vmul.f32 0.2, %v324_v25  ;;  %v483_v32 = vpop.f32.mrf.mxu1  ;;  %v224_v33 = vadd.f32 %v442_v26, %v95_v5 }
  0xf1   :  { %vm357_vm3 = vcmp.ge.f32.partialorder %v319_v28, 0.0  ;;  %v365_v34 = vmul.f32 0.2, %v319_v28  ;;  %v444_v35 = vpop.f32.mrf.mxu0 }
  0xf2   :  { %v374_v36 = vsel %vm358_vm1, %v324_v25, %v366_v31  ;;  %v445_v37 = vadd.f32 %v444_v35, %v443_v29  ;;  %v328_v38 = vpop.f32.mrf.mxu1 }
  0xf3   :  { %383 = vst.msk [vmem:[%s793_s3 + $0x8] sm:$0xff] %vm381_vm2, %v374_v36  ;;  %v373_v40 = vsel %vm357_vm3, %v319_v28, %v365_v34  ;;  %v329_v41 = vadd.f32 %v328_v38, %v224_v33  ;;  %v446_v42 = vpop.f32.mrf.mxu0 }
  0xf4   :  { %382 = vst.msk [vmem:[%s793_s3] sm:$0xff] %vm381_vm2, %v373_v40  ;;  %v229_v44 = vadd.f32 %v445_v37, %v100_v12  ;;  %v486_v45 = vpop.f32.mrf.mxu1 }
  0xf5   :  { %vm359_vm4 = vcmp.ge.f32.partialorder %v329_v41, 0.0  ;;  %v367_v47 = vmul.f32 0.2, %v329_v41  ;;  %v447_v48 = vpop.f32.mrf.mxu0 }
  0xf6   :  { %v334_v50 = vadd.f32 %v483_v32, %v229_v44  ;;  %v448_v51 = vadd.f32 %v447_v48, %v446_v42  ;;  %v338_v52 = vpop.f32.mrf.mxu1 }
  0xf7   :  { %v375_v54 = vsel %vm359_vm4, %v329_v41, %v367_v47  ;;  %v449_v55 = vpop.f32.mrf.mxu0 }
  0xf8   :  { %vm360_vm5 = vcmp.ge.f32.partialorder %v334_v50, 0.0  ;;  %v368_v56 = vmul.f32 0.2, %v334_v50  ;;  %384 = vst.msk [vmem:[%s793_s3 + $0x10] sm:$0xff] %vm381_vm2, %v375_v54  ;;  %v234_v57 = vadd.f32 %v448_v51, %v105_v30  ;;  %v489_v58 = vpop.f32.mrf.mxu1 }
  0xf9   :  { %v354_v60 = vadd.f32 %v489_v58, %v249_v53  ;;  %v450_v61 = vpop.f32.mrf.mxu0 }
  0xfa   :  { %v376_v62 = vsel %vm360_vm5, %v334_v50, %v368_v56  ;;  %v339_v63 = vadd.f32 %v338_v52, %v234_v57  ;;  %v451_v0 = vadd.f32 %v450_v61, %v449_v55  ;;  %v348_v1 = vpop.f32.mrf.mxu1 }
  0xfb   :  { %385 = vst.msk [vmem:[%s793_s3 + $0x18] sm:$0xff] %vm381_vm2, %v376_v62  ;;  %vm364_vm6 = vcmp.ge.f32.partialorder %v354_v60, 0.0  ;;  %v372_v2 = vmul.f32 0.2, %v354_v60  ;;  %v349_v3 = vadd.f32 %v348_v1, %v244_v59 }
  0xfc   :  { %vm361_vm7 = vcmp.ge.f32.partialorder %v339_v63, 0.0  ;;  %v369_v4 = vmul.f32 0.2, %v339_v63  ;;  %v239_v5 = vadd.f32 %v451_v0, %v110_v24 }
  0xfd   :  { %v380_v6 = vsel %vm364_vm6, %v354_v60, %v372_v2  ;;  %vm363_vm8 = vcmp.ge.f32.partialorder %v349_v3, 0.0  ;;  %v371_v7 = vmul.f32 0.2, %v349_v3 }
  0xfe   :  { %v377_v8 = vsel %vm361_vm7, %v339_v63, %v369_v4  ;;  %389 = vst.msk [vmem:[%s793_s3 + $0x38] sm:$0xff] %vm381_vm2, %v380_v6  ;;  %v344_v9 = vadd.f32 %v486_v45, %v239_v5 }
  0xff   :  { %386 = vst.msk [vmem:[%s793_s3 + $0x20] sm:$0xff] %vm381_vm2, %v377_v8  ;;  %v379_v10 = vsel %vm363_vm8, %v349_v3, %v371_v7 }
 0x100   :  { %vm362_vm9 = vcmp.ge.f32.partialorder %v344_v9, 0.0  ;;  %v370_v11 = vmul.f32 0.2, %v344_v9  ;;  %388 = vst.msk [vmem:[%s793_s3 + $0x30] sm:$0xff] %vm381_vm2, %v379_v10 }
 0x102   :  { %v378_v12 = vsel %vm362_vm9, %v344_v9, %v370_v11 }
 0x103   :  { %387 = vst.msk [vmem:[%s793_s3 + $0x28] sm:$0xff] %vm381_vm2, %v378_v12 }

// kernel: fpse_forward.17
= control target key start
LH: loop header
LB: loop body
LE: loop exit
PB: predicated region body
PF: predicated region fallthrough
CT: control target
= control target key end

     0   :  { %v734_v3 = vmov 0   ;;  %vm174_vm0 = vcmask 523264   ;;  %vm538_vm1 = vcmask 15360   ;;  %s1155_s0 = inlined_call_operand.vmem [shape: f32[576,2], index: 0, kind: input, shape index: {}]   ;;  %s1156_s1 = inlined_call_operand.vmem [shape: f32[64,576], index: 1, kind: input, shape index: {}]   ;;  %s1157_s2 = inlined_call_operand.vmem [shape: f32[64,1], index: 2, kind: input, shape index: {}]   ;;  %s1158_s3 = inlined_call_operand.vmem [shape: f32[64,2], index: 3, kind: output, shape index: {}]  }
   0x1   :  { %v85_v0 = vld [vmem:[%s1155_s0 + $0xf8] sm:$0xff]  ;;  %732 = vset.pattern.permute.xlu0 %v734_v3  ;;  %733 = vset.pattern.permute.xlu1 %v734_v3  ;;  %v84_v5 = vld [vmem:[%s1155_s0 + $0xf0] sm:$0xff]  ;;  %v83_v9 = vld [vmem:[%s1155_s0 + $0xe8] sm:$0xff] }
   0x2   :  { %v117_v1 = vld [vmem:[%s1155_s0 + $0x1f8] sm:$0xff]  ;;  %559 = vmatprep.subr.mxu0 %v85_v0  ;;  %v116_v6 = vld [vmem:[%s1155_s0 + $0x1f0] sm:$0xff]  ;;  %v115_v10 = vld [vmem:[%s1155_s0 + $0x1e8] sm:$0xff] }
   0x3   :  { %v69_v2 = vld [vmem:[%s1155_s0 + $0x78] sm:$0xff]  ;;  %615 = vmatprep.subr.mxu1 %v117_v1  ;;  %v68_v7 = vld [vmem:[%s1155_s0 + $0x70] sm:$0xff]  ;;  %v67_v11 = vld [vmem:[%s1155_s0 + $0x68] sm:$0xff] }
   0x4   :  { %v101_v4 = vld [vmem:[%s1155_s0 + $0x178] sm:$0xff]  ;;  %560 = vmatpush3.msra.mxu0 %v69_v2  ;;  %v100_v8 = vld [vmem:[%s1155_s0 + $0x170] sm:$0xff]  ;;  %v99_v12 = vld [vmem:[%s1155_s0 + $0x168] sm:$0xff] }
   0x5   :  { %616 = vmatpush3.msra.mxu1 %v101_v4  ;;  %561 = vmatprep.subr.mxu0 %v84_v5  ;;  %v82_v13 = vld [vmem:[%s1155_s0 + $0xe0] sm:$0xff]  ;;  %v81_v17 = vld [vmem:[%s1155_s0 + $0xd8] sm:$0xff]  ;;  %v80_v21 = vld [vmem:[%s1155_s0 + $0xd0] sm:$0xff] }
   0x6   :  { %617 = vmatprep.subr.mxu1 %v116_v6  ;;  %562 = vmatpush3.msra.mxu0 %v68_v7  ;;  %v114_v14 = vld [vmem:[%s1155_s0 + $0x1e0] sm:$0xff]  ;;  %v113_v18 = vld [vmem:[%s1155_s0 + $0x1d8] sm:$0xff]  ;;  %v112_v22 = vld [vmem:[%s1155_s0 + $0x1d0] sm:$0xff] }
   0x7   :  { %618 = vmatpush3.msra.mxu1 %v100_v8  ;;  %563 = vmatprep.subr.mxu0 %v83_v9  ;;  %v66_v15 = vld [vmem:[%s1155_s0 + $0x60] sm:$0xff]  ;;  %v65_v19 = vld [vmem:[%s1155_s0 + $0x58] sm:$0xff]  ;;  %v64_v23 = vld [vmem:[%s1155_s0 + $0x50] sm:$0xff] }
   0x8   :  { %619 = vmatprep.subr.mxu1 %v115_v10  ;;  %v98_v16 = vld [vmem:[%s1155_s0 + $0x160] sm:$0xff]  ;;  %564 = vmatpush3.msra.mxu0 %v67_v11  ;;  %v97_v20 = vld [vmem:[%s1155_s0 + $0x158] sm:$0xff]  ;;  %v96_v24 = vld [vmem:[%s1155_s0 + $0x150] sm:$0xff] }
   0x9   :  { %620 = vmatpush3.msra.mxu1 %v99_v12  ;;  %565 = vmatprep.subr.mxu0 %v82_v13  ;;  %v79_v25 = vld [vmem:[%s1155_s0 + $0xc8] sm:$0xff]  ;;  %v78_v29 = vld [vmem:[%s1155_s0 + $0xc0] sm:$0xff]  ;;  %v77_v33 = vld [vmem:[%s1155_s0 + $0xb8] sm:$0xff] }
   0xa   :  { %621 = vmatprep.subr.mxu1 %v114_v14  ;;  %566 = vmatpush3.msra.mxu0 %v66_v15  ;;  %v111_v26 = vld [vmem:[%s1155_s0 + $0x1c8] sm:$0xff]  ;;  %v110_v30 = vld [vmem:[%s1155_s0 + $0x1c0] sm:$0xff]  ;;  %v109_v34 = vld [vmem:[%s1155_s0 + $0x1b8] sm:$0xff] }
   0xb   :  { %622 = vmatpush3.msra.mxu1 %v98_v16  ;;  %567 = vmatprep.subr.mxu0 %v81_v17  ;;  %v63_v27 = vld [vmem:[%s1155_s0 + $0x48] sm:$0xff]  ;;  %v62_v31 = vld [vmem:[%s1155_s0 + $0x40] sm:$0xff]  ;;  %v61_v35 = vld [vmem:[%s1155_s0 + $0x38] sm:$0xff] }
   0xc   :  { %623 = vmatprep.subr.mxu1 %v113_v18  ;;  %568 = vmatpush3.msra.mxu0 %v65_v19  ;;  %v95_v28 = vld [vmem:[%s1155_s0 + $0x148] sm:$0xff]  ;;  %v94_v32 = vld [vmem:[%s1155_s0 + $0x140] sm:$0xff]  ;;  %v93_v36 = vld [vmem:[%s1155_s0 + $0x138] sm:$0xff] }
   0xd   :  { %624 = vmatpush3.msra.mxu1 %v97_v20  ;;  %569 = vmatprep.subr.mxu0 %v80_v21  ;;  %v76_v37 = vld [vmem:[%s1155_s0 + $0xb0] sm:$0xff]  ;;  %v75_v41 = vld [vmem:[%s1155_s0 + $0xa8] sm:$0xff]  ;;  %v74_v45 = vld [vmem:[%s1155_s0 + $0xa0] sm:$0xff] }
   0xe   :  { %625 = vmatprep.subr.mxu1 %v112_v22  ;;  %570 = vmatpush3.msra.mxu0 %v64_v23  ;;  %v108_v38 = vld [vmem:[%s1155_s0 + $0x1b0] sm:$0xff]  ;;  %v107_v42 = vld [vmem:[%s1155_s0 + $0x1a8] sm:$0xff]  ;;  %v106_v46 = vld [vmem:[%s1155_s0 + $0x1a0] sm:$0xff] }
   0xf   :  { %626 = vmatpush3.msra.mxu1 %v96_v24  ;;  %571 = vmatprep.subr.mxu0 %v79_v25  ;;  %v60_v39 = vld [vmem:[%s1155_s0 + $0x30] sm:$0xff]  ;;  %v59_v43 = vld [vmem:[%s1155_s0 + $0x28] sm:$0xff]  ;;  %v58_v47 = vld [vmem:[%s1155_s0 + $0x20] sm:$0xff] }
  0x10   :  { %627 = vmatprep.subr.mxu1 %v111_v26  ;;  %572 = vmatpush3.msra.mxu0 %v63_v27  ;;  %v92_v40 = vld [vmem:[%s1155_s0 + $0x130] sm:$0xff]  ;;  %v91_v44 = vld [vmem:[%s1155_s0 + $0x128] sm:$0xff]  ;;  %v90_v48 = vld [vmem:[%s1155_s0 + $0x120] sm:$0xff] }
  0x11   :  { %628 = vmatpush3.msra.mxu1 %v95_v28  ;;  %573 = vmatprep.subr.mxu0 %v78_v29  ;;  %v73_v49 = vld [vmem:[%s1155_s0 + $0x98] sm:$0xff]  ;;  %v72_v53 = vld [vmem:[%s1155_s0 + $0x90] sm:$0xff]  ;;  %v71_v57 = vld [vmem:[%s1155_s0 + $0x88] sm:$0xff] }
  0x12   :  { %629 = vmatprep.subr.mxu1 %v110_v30  ;;  %574 = vmatpush3.msra.mxu0 %v62_v31  ;;  %v105_v50 = vld [vmem:[%s1155_s0 + $0x198] sm:$0xff]  ;;  %v104_v54 = vld [vmem:[%s1155_s0 + $0x190] sm:$0xff]  ;;  %v103_v58 = vld [vmem:[%s1155_s0 + $0x188] sm:$0xff] }
  0x13   :  { %630 = vmatpush3.msra.mxu1 %v94_v32  ;;  %575 = vmatprep.subr.mxu0 %v77_v33  ;;  %v57_v51 = vld [vmem:[%s1155_s0 + $0x18] sm:$0xff]  ;;  %v56_v55 = vld [vmem:[%s1155_s0 + $0x10] sm:$0xff]  ;;  %v55_v59 = vld [vmem:[%s1155_s0 + $0x8] sm:$0xff] }
  0x14   :  { %631 = vmatprep.subr.mxu1 %v109_v34  ;;  %576 = vmatpush3.msra.mxu0 %v61_v35  ;;  %v89_v52 = vld [vmem:[%s1155_s0 + $0x118] sm:$0xff]  ;;  %v88_v56 = vld [vmem:[%s1155_s0 + $0x110] sm:$0xff]  ;;  %v87_v60 = vld [vmem:[%s1155_s0 + $0x108] sm:$0xff] }
  0x15   :  { %632 = vmatpush3.msra.mxu1 %v93_v36  ;;  %577 = vmatprep.subr.mxu0 %v76_v37  ;;  %v70_v61 = vld [vmem:[%s1155_s0 + $0x80] sm:$0xff]  ;;  %v15_v0 = vld [vmem:[%s1156_s1 + $0x8] sm:$0xff]  ;;  %v17_v2 = vld [vmem:[%s1156_s1 + $0x18] sm:$0xff] }
  0x16   :  { %633 = vmatprep.subr.mxu1 %v108_v38  ;;  %578 = vmatpush3.msra.mxu0 %v60_v39  ;;  %v102_v62 = vld [vmem:[%s1155_s0 + $0x180] sm:$0xff]  ;;  %v16_v4 = vld [vmem:[%s1156_s1 + $0x10] sm:$0xff]  ;;  %v125_v5 = vld [vmem:[%s1155_s0 + $0x238] sm:$0xff] }
  0x17   :  { %634 = vmatpush3.msra.mxu1 %v92_v40  ;;  %579 = vmatprep.subr.mxu0 %v75_v41  ;;  %v54_v63 = vld [vmem:[%s1155_s0] sm:$0xff]  ;;  %v20_v6 = vld [vmem:[%s1156_s1 + $0x30] sm:$0xff]  ;;  %v19_v8 = vld [vmem:[%s1156_s1 + $0x28] sm:$0xff] }
  0x18   :  { %635 = vmatprep.subr.mxu1 %v107_v42  ;;  %580 = vmatpush3.msra.mxu0 %v59_v43  ;;  %v86_v1 = vld [vmem:[%s1155_s0 + $0x100] sm:$0xff]  ;;  %v21_v9 = vld [vmem:[%s1156_s1 + $0x38] sm:$0xff]  ;;  %v124_v10 = vld [vmem:[%s1155_s0 + $0x230] sm:$0xff] }
  0x19   :  { %636 = vmatpush3.msra.mxu1 %v91_v44  ;;  %581 = vmatprep.subr.mxu0 %v74_v45  ;;  %v14_v3 = vld [vmem:[%s1156_s1] sm:$0xff]  ;;  %v25_v11 = vld [vmem:[%s1156_s1 + $0x58] sm:$0xff]  ;;  %v27_v12 = vld [vmem:[%s1156_s1 + $0x68] sm:$0xff] }
  0x1a   :  { %637 = vmatprep.subr.mxu1 %v106_v46  ;;  %582 = vmatpush3.msra.mxu0 %v58_v47  ;;  %v22_v7 = vld [vmem:[%s1156_s1 + $0x40] sm:$0xff]  ;;  %v24_v13 = vld [vmem:[%s1156_s1 + $0x50] sm:$0xff]  ;;  %v123_v15 = vld [vmem:[%s1155_s0 + $0x228] sm:$0xff] }
  0x1b   :  { %638 = vmatpush3.msra.mxu1 %v90_v48  ;;  %583 = vmatprep.subr.mxu0 %v73_v49  ;;  %v26_v14 = vld [vmem:[%s1156_s1 + $0x60] sm:$0xff]  ;;  %v32_v17 = vld [vmem:[%s1156_s1 + $0x90] sm:$0xff]  ;;  %v29_v18 = vld [vmem:[%s1156_s1 + $0x78] sm:$0xff] }
  0x1c   :  { %639 = vmatprep.subr.mxu1 %v105_v50  ;;  %584 = vmatpush3.msra.mxu0 %v57_v51  ;;  %v30_v16 = vld [vmem:[%s1156_s1 + $0x80] sm:$0xff]  ;;  %v31_v19 = vld [vmem:[%s1156_s1 + $0x88] sm:$0xff]  ;;  %v37_v22 = vld [vmem:[%s1156_s1 + $0xb8] sm:$0xff] }
  0x1d   :  { %640 = vmatpush3.msra.mxu1 %v89_v52  ;;  %585 = vmatprep.subr.mxu0 %v72_v53  ;;  %v122_v20 = vld [vmem:[%s1155_s0 + $0x220] sm:$0xff]  ;;  %v35_v21 = vld [vmem:[%s1156_s1 + $0xa8] sm:$0xff]  ;;  %v36_v24 = vld [vmem:[%s1156_s1 + $0xb0] sm:$0xff] }
  0x1e   :  { %641 = vmatprep.subr.mxu1 %v104_v54  ;;  %586 = vmatpush3.msra.mxu0 %v56_v55  ;;  %v34_v23 = vld [vmem:[%s1156_s1 + $0xa0] sm:$0xff]  ;;  %v121_v25 = vld [vmem:[%s1155_s0 + $0x218] sm:$0xff]  ;;  %v40_v26 = vld [vmem:[%s1156_s1 + $0xd0] sm:$0xff] }
  0x1f   :  { %642 = vmatpush3.msra.mxu1 %v88_v56  ;;  %587 = vmatprep.subr.mxu0 %v71_v57  ;;  %v42_v27 = vld [vmem:[%s1156_s1 + $0xe0] sm:$0xff]  ;;  %v39_v28 = vld [vmem:[%s1156_s1 + $0xc8] sm:$0xff]  ;;  %v41_v29 = vld [vmem:[%s1156_s1 + $0xd8] sm:$0xff] }
  0x20   :  { %643 = vmatprep.subr.mxu1 %v103_v58  ;;  %588 = vmatpush3.msra.mxu0 %v55_v59  ;;  %v120_v30 = vld [vmem:[%s1155_s0 + $0x210] sm:$0xff]  ;;  %v45_v31 = vld [vmem:[%s1156_s1 + $0xf8] sm:$0xff]  ;;  %v47_v32 = vld [vmem:[%s1156_s1 + $0x108] sm:$0xff] }
  0x21   :  { %644 = vmatpush3.msra.mxu1 %v87_v60  ;;  %589 = vmatprep.subr.mxu0 %v70_v61  ;;  %v44_v33 = vld [vmem:[%s1156_s1 + $0xf0] sm:$0xff]  ;;  %v46_v34 = vld [vmem:[%s1156_s1 + $0x100] sm:$0xff]  ;;  %v119_v35 = vld [vmem:[%s1155_s0 + $0x208] sm:$0xff] }
  0x22   :  { %645 = vmatprep.subr.mxu1 %v102_v62  ;;  %590 = vmatpush3.msra.mxu0 %v54_v63  ;;  %v50_v36 = vld [vmem:[%s1156_s1 + $0x120] sm:$0xff]  ;;  %v52_v37 = vld [vmem:[%s1156_s1 + $0x130] sm:$0xff]  ;;  %v49_v38 = vld [vmem:[%s1156_s1 + $0x118] sm:$0xff] }
  0x23   :  { %263 = vmatprep.mubr.f32.mxu0 %v15_v0  ;;  %646 = vmatpush3.msra.mxu1 %v86_v1  ;;  %v51_v39 = vld [vmem:[%s1156_s1 + $0x128] sm:$0xff]  ;;  %v118_v40 = vld [vmem:[%s1155_s0 + $0x200] sm:$0xff]  ;;  %v28_v45 = vld [vmem:[%s1156_s1 + $0x70] sm:$0xff] }
  0x24   :  { %368 = vmatprep.mubr.f32.mxu1 %v17_v2  ;;  %264 = vmatmul.mubr.f32.vlgmr.msra.gmra.mxu0 %v14_v3  ;;  %v18_v41 = vld [vmem:[%s1156_s1 + $0x20] sm:$0xff]  ;;  %v23_v43 = vld [vmem:[%s1156_s1 + $0x48] sm:$0xff]  ;;  %v48_v46 = vld [vmem:[%s1156_s1 + $0x110] sm:$0xff] }
  0x25   :  { %369 = vmatmul.mubr.f32.vlgmr.msra.gmra.mxu1 %v16_v4  ;;  %687 = vmatprep.subr.mxu0 %v125_v5  ;;  %v38_v42 = vld [vmem:[%s1156_s1 + $0xc0] sm:$0xff]  ;;  %v43_v44 = vld [vmem:[%s1156_s1 + $0xe8] sm:$0xff]  ;;  %v128_v48 = vld [vmem:[%s1157_s2 + $0x10] sm:$0xff] }
  0x26   :  { %715 = vmatprep.subr.mxu1 %v125_v5  ;;  %688 = vmatpush3.msra.mxu0 %v125_v5  ;;  %v126_v47 = vld [vmem:[%s1157_s2] sm:$0xff]  ;;  %v33_v49 = vld [vmem:[%s1156_s1 + $0x98] sm:$0xff]  ;;  %v127_v51 = vld [vmem:[%s1157_s2 + $0x8] sm:$0xff] }
  0x27   :  { %723 = vmatpush3.msra.mxu1 %v125_v5  ;;  %268 = vmatprep.mubr.f32.mxu0 %v20_v6  ;;  %v53_v50 = vld [vmem:[%s1156_s1 + $0x138] sm:$0xff]  ;;  %v131_v53 = vld [vmem:[%s1157_s2 + $0x28] sm:$0xff]  ;;  %v130_v54 = vld [vmem:[%s1157_s2 + $0x20] sm:$0xff] }
  0x28   :  { %373 = vmatprep.mubr.f32.mxu1 %v22_v7  ;;  %269 = vmatmul.mubr.f32.gmra.mxu0 %v19_v8  ;;  %v129_v52 = vld [vmem:[%s1157_s2 + $0x18] sm:$0xff]  ;;  %v132_v56 = vld [vmem:[%s1157_s2 + $0x30] sm:$0xff] }
  0x29   :  { %374 = vmatmul.mubr.f32.gmra.mxu1 %v21_v9  ;;  %689 = vmatprep.subr.mxu0 %v124_v10  ;;  %v133_v55 = vld [vmem:[%s1157_s2 + $0x38] sm:$0xff] }
  0x2a   :  { %716 = vmatprep.subr.mxu1 %v124_v10  ;;  %690 = vmatpush3.msra.mxu0 %v124_v10 }
  0x2b   :  { %724 = vmatpush3.msra.mxu1 %v124_v10  ;;  %273 = vmatprep.mubr.f32.mxu0 %v25_v11 }
  0x2c   :  { %378 = vmatprep.mubr.f32.mxu1 %v27_v12  ;;  %274 = vmatmul.mubr.f32.gmra.mxu0 %v24_v13 }
  0x2d   :  { %379 = vmatmul.mubr.f32.gmra.mxu1 %v26_v14  ;;  %691 = vmatprep.subr.mxu0 %v123_v15 }
  0x2e   :  { %717 = vmatprep.subr.mxu1 %v123_v15  ;;  %692 = vmatpush3.msra.mxu0 %v123_v15 }
  0x2f   :  { %725 = vmatpush3.msra.mxu1 %v123_v15  ;;  %278 = vmatprep.mubr.f32.mxu0 %v30_v16 }
  0x30   :  { %383 = vmatprep.mubr.f32.mxu1 %v32_v17  ;;  %279 = vmatmul.mubr.f32.gmra.mxu0 %v29_v18 }
  0x31   :  { %384 = vmatmul.mubr.f32.gmra.mxu1 %v31_v19  ;;  %693 = vmatprep.subr.mxu0 %v122_v20 }
  0x32   :  { %718 = vmatprep.subr.mxu1 %v122_v20  ;;  %694 = vmatpush3.msra.mxu0 %v122_v20 }
  0x33   :  { %726 = vmatpush3.msra.mxu1 %v122_v20  ;;  %283 = vmatprep.mubr.f32.mxu0 %v35_v21 }
  0x34   :  { %388 = vmatprep.mubr.f32.mxu1 %v37_v22  ;;  %284 = vmatmul.mubr.f32.gmra.mxu0 %v34_v23 }
  0x35   :  { %389 = vmatmul.mubr.f32.gmra.mxu1 %v36_v24  ;;  %695 = vmatprep.subr.mxu0 %v121_v25 }
  0x36   :  { %719 = vmatprep.subr.mxu1 %v121_v25  ;;  %696 = vmatpush3.msra.mxu0 %v121_v25 }
  0x37   :  { %727 = vmatpush3.msra.mxu1 %v121_v25  ;;  %288 = vmatprep.mubr.f32.mxu0 %v40_v26 }
  0x38   :  { %393 = vmatprep.mubr.f32.mxu1 %v42_v27  ;;  %289 = vmatmul.mubr.f32.gmra.mxu0 %v39_v28 }
  0x39   :  { %394 = vmatmul.mubr.f32.gmra.mxu1 %v41_v29  ;;  %697 = vmatprep.subr.mxu0 %v120_v30 }
  0x3a   :  { %720 = vmatprep.subr.mxu1 %v120_v30  ;;  %698 = vmatpush3.msra.mxu0 %v120_v30 }
  0x3b   :  { %728 = vmatpush3.msra.mxu1 %v120_v30  ;;  %293 = vmatprep.mubr.f32.mxu0 %v45_v31 }
  0x3c   :  { %398 = vmatprep.mubr.f32.mxu1 %v47_v32  ;;  %294 = vmatmul.mubr.f32.gmra.mxu0 %v44_v33 }
  0x3d   :  { %399 = vmatmul.mubr.f32.gmra.mxu1 %v46_v34  ;;  %699 = vmatprep.subr.mxu0 %v119_v35 }
  0x3e   :  { %721 = vmatprep.subr.mxu1 %v119_v35  ;;  %700 = vmatpush3.msra.mxu0 %v119_v35 }
  0x3f   :  { %729 = vmatpush3.msra.mxu1 %v119_v35  ;;  %298 = vmatprep.mubr.f32.mxu0 %v50_v36 }
  0x40   :  { %403 = vmatprep.mubr.f32.mxu1 %v52_v37  ;;  %299 = vmatmul.mubr.f32.gmra.mxu0 %v49_v38 }
  0x41   :  { %404 = vmatmul.mubr.f32.gmra.mxu1 %v51_v39  ;;  %701 = vmatprep.subr.mxu0 %v118_v40 }
  0x42   :  { %722 = vmatprep.subr.mxu1 %v118_v40  ;;  %702 = vmatpush3.msra.mxu0 %v118_v40 }
  0x43   :  { %730 = vmatpush3.msra.mxu1 %v118_v40  ;;  %703 = vmatprep.mubr.msk.f32.mxu0 %vm174_vm0, %v18_v41 }
  0x44   :  { %709 = vmatprep.mubr.msk.f32.mxu1 %vm174_vm0, %v38_v42  ;;  %704 = vmatmul.mubr.msk.f32.vlgmr.msra.gmra.mxu0 %vm174_vm0, %v23_v43 }
  0x45   :  { %710 = vmatmul.mubr.msk.f32.vlgmr.msra.gmra.mxu1 %vm174_vm0, %v43_v44  ;;  %706 = vmatprep.mubr.msk.f32.mxu0 %vm174_vm0, %v28_v45 }
  0x46   :  { %712 = vmatprep.mubr.msk.f32.mxu1 %vm174_vm0, %v48_v46  ;;  %136 = vperm.xlu0 %732, %v126_v47  }
  0x47   :  { %146 = vperm.xlu1 %733, %v128_v48  }
  0x48   :  { %707 = vmatmul.mubr.msk.f32.gmra.mxu0 %vm174_vm0, %v33_v49 }
  0x49   :  { %713 = vmatmul.mubr.msk.f32.gmra.mxu1 %vm174_vm0, %v53_v50 }
  0x4a   :  { %141 = vperm.xlu0 %732, %v127_v51  }
  0x4b   :  { %151 = vperm.xlu1 %733, %v129_v52  }
  0x4e   :  { %156 = vperm.xlu0 %732, %v130_v54  }
  0x4f   :  { %161 = vperm.xlu1 %733, %v131_v53  }
  0x52   :  { %166 = vperm.xlu0 %732, %v132_v56  }
  0x53   :  { %171 = vperm.xlu1 %733, %v133_v55  }
  0xc1   :  { %v137_v10 = vpop.permute.xlu0 %136 }
  0xc2   :  { %v147_v7 = vpop.permute.xlu1 %146 }
  0xc5   :  { %v142_v18 = vpop.permute.xlu0 %141 }
  0xc6   :  { %v152_v15 = vpop.permute.xlu1 %151 }
  0xc9   :  { %v157_v27 = vpop.permute.xlu0 %156 }
  0xca   :  { %v162_v26 = vpop.permute.xlu1 %161 }
  0xcd   :  { %v167_v47 = vpop.permute.xlu0 %166 }
  0xce   :  { %v172_v46 = vpop.permute.xlu1 %171 }
  0xe4   :  { %v591_v57 = vpop.f32.mrf.mxu0 }
  0xe5   :  { %v647_v58 = vpop.f32.mrf.mxu1 }
  0xe6   :  { %v592_v59 = vpop.f32.mrf.mxu0 }
  0xe7   :  { %v648_v60 = vpop.f32.mrf.mxu1  ;;  %v593_v21 = vadd.f32 %v592_v59, %v591_v57 }
  0xe8   :  { %v594_v61 = vpop.f32.mrf.mxu0  ;;  %v649_v38 = vadd.f32 %v648_v60, %v647_v58 }
  0xe9   :  { %v650_v62 = vpop.f32.mrf.mxu1  ;;  %v266_v32 = vadd.f32 %v593_v21, %v137_v10 }
  0xea   :  { %v595_v63 = vpop.f32.mrf.mxu0 }
  0xeb   :  { %v651_v0 = vpop.f32.mrf.mxu1  ;;  %v596_v22 = vadd.f32 %v595_v63, %v594_v61  ;;  %v371_v51 = vadd.f32 %v649_v38, %v266_v32 }
  0xec   :  { %v597_v1 = vpop.f32.mrf.mxu0  ;;  %v652_v39 = vadd.f32 %v651_v0, %v650_v62 }
  0xed   :  { %v653_v2 = vpop.f32.mrf.mxu1  ;;  %v271_v33 = vadd.f32 %v596_v22, %v142_v18 }
  0xee   :  { %v598_v3 = vpop.f32.mrf.mxu0 }
  0xef   :  { %v654_v4 = vpop.f32.mrf.mxu1  ;;  %v599_v35 = vadd.f32 %v598_v3, %v597_v1  ;;  %v376_v49 = vadd.f32 %v652_v39, %v271_v33 }
  0xf0   :  { %v600_v5 = vpop.f32.mrf.mxu0  ;;  %v655_v52 = vadd.f32 %v654_v4, %v653_v2 }
  0xf1   :  { %v656_v6 = vpop.f32.mrf.mxu1  ;;  %v276_v53 = vadd.f32 %v599_v35, %v147_v7 }
  0xf2   :  { %v601_v8 = vpop.f32.mrf.mxu0 }
  0xf3   :  { %v657_v9 = vpop.f32.mrf.mxu1  ;;  %v602_v28 = vadd.f32 %v601_v8, %v600_v5 }
  0xf4   :  { %v603_v11 = vpop.f32.mrf.mxu0  ;;  %v658_v54 = vadd.f32 %v657_v9, %v656_v6 }
  0xf5   :  { %v659_v12 = vpop.f32.mrf.mxu1  ;;  %v281_v42 = vadd.f32 %v602_v28, %v152_v15 }
  0xf6   :  { %v604_v13 = vpop.f32.mrf.mxu0 }
  0xf7   :  { %v660_v14 = vpop.f32.mrf.mxu1  ;;  %v605_v29 = vadd.f32 %v604_v13, %v603_v11  ;;  %v386_v5 = vadd.f32 %v658_v54, %v281_v42  ;;  %v381_v11 = vadd.f32 %v655_v52, %v276_v53 }
  0xf8   :  { %v606_v16 = vpop.f32.mrf.mxu0  ;;  %v661_v55 = vadd.f32 %v660_v14, %v659_v12 }
  0xf9   :  { %v662_v17 = vpop.f32.mrf.mxu1  ;;  %v286_v43 = vadd.f32 %v605_v29, %v157_v27 }
  0xfa   :  { %v607_v19 = vpop.f32.mrf.mxu0 }
  0xfb   :  { %v663_v20 = vpop.f32.mrf.mxu1  ;;  %v608_v23 = vadd.f32 %v607_v19, %v606_v16  ;;  %v391_v1 = vadd.f32 %v661_v55, %v286_v43 }
  0xfc   :  { %v609_v24 = vpop.f32.mrf.mxu0  ;;  %v664_v40 = vadd.f32 %v663_v20, %v662_v17 }
  0xfd   :  { %v665_v25 = vpop.f32.mrf.mxu1  ;;  %v291_v34 = vadd.f32 %v608_v23, %v162_v26 }
  0xfe   :  { %v610_v30 = vpop.f32.mrf.mxu0 }
  0xff   :  { %v666_v31 = vpop.f32.mrf.mxu1  ;;  %v611_v41 = vadd.f32 %v610_v30, %v609_v24  ;;  %v396_v50 = vadd.f32 %v664_v40, %v291_v34 }
 0x100   :  { %v612_v36 = vpop.f32.mrf.mxu0  ;;  %v667_v62 = vadd.f32 %v666_v31, %v665_v25 }
 0x101   :  { %v668_v37 = vpop.f32.mrf.mxu1  ;;  %v296_v58 = vadd.f32 %v611_v41, %v167_v47 }
 0x102   :  { %v613_v44 = vpop.f32.mrf.mxu0 }
 0x103   :  { %v669_v45 = vpop.f32.mrf.mxu1  ;;  %v614_v48 = vadd.f32 %v613_v44, %v612_v36  ;;  %v401_v15 = vadd.f32 %v667_v62, %v296_v58 }
 0x104   :  { %v705_v56 = vpop.f32.mrf.mxu0  ;;  %v670_v63 = vadd.f32 %v669_v45, %v668_v37 }
 0x105   :  { %v711_v57 = vpop.f32.mrf.mxu1  ;;  %v301_v59 = vadd.f32 %v614_v48, %v172_v46  ;;  %v481_v60 = vadd.f32 %v705_v56, %v376_v49 }
 0x106   :  { %v501_v61 = vadd.f32 %v711_v57, %v396_v50  ;;  %v475_v0 = vpop.f32.mrf.mxu0 }
 0x107   :  { %v495_v3 = vpop.f32.mrf.mxu1  ;;  %vm515_vm2 = vcmp.ge.f32.partialorder %v481_v60, 0.0  ;;  %v523_v8 = vmul.f32 0.2, %v481_v60  ;;  %v476_v2 = vadd.f32 %v475_v0, %v371_v51  ;;  %v406_v7 = vadd.f32 %v670_v63, %v301_v59 }
 0x108   :  { %vm519_vm3 = vcmp.ge.f32.partialorder %v501_v61, 0.0  ;;  %v527_v10 = vmul.f32 0.2, %v501_v61  ;;  %v496_v4 = vadd.f32 %v495_v3, %v391_v1  ;;  %v708_v6 = vpop.f32.mrf.mxu0 }
 0x109   :  { %v714_v9 = vpop.f32.mrf.mxu1  ;;  %v531_v12 = vsel %vm515_vm2, %v481_v60, %v523_v8  ;;  %v491_v14 = vadd.f32 %v708_v6, %v386_v5  ;;  %vm514_vm4 = vcmp.ge.f32.partialorder %v476_v2, 0.0  ;;  %v522_v16 = vmul.f32 0.2, %v476_v2 }
 0x10a   :  { %v535_v13 = vsel %vm519_vm3, %v501_v61, %v527_v10  ;;  %540 = vst.msk [vmem:[%s1158_s3 + $0x8] sm:$0xff] %vm538_vm1, %v531_v12  ;;  %vm518_vm5 = vcmp.ge.f32.partialorder %v496_v4, 0.0  ;;  %v526_v17 = vmul.f32 0.2, %v496_v4  ;;  %v485_v18 = vpop.f32.mrf.mxu0  ;;  %v511_v21 = vadd.f32 %v714_v9, %v406_v7 }
 0x10b   :  { %544 = vst.msk [vmem:[%s1158_s3 + $0x28] sm:$0xff] %vm538_vm1, %v535_v13  ;;  %v505_v19 = vpop.f32.mrf.mxu1  ;;  %vm517_vm6 = vcmp.ge.f32.partialorder %v491_v14, 0.0  ;;  %v525_v20 = vmul.f32 0.2, %v491_v14  ;;  %v486_v22 = vadd.f32 %v485_v18, %v381_v11  ;;  %v530_v23 = vsel %vm514_vm4, %v476_v2, %v522_v16 }
 0x10c   :  { %v534_v24 = vsel %vm518_vm5, %v496_v4, %v526_v17  ;;  %v506_v25 = vadd.f32 %v505_v19, %v401_v15  ;;  %539 = vst.msk [vmem:[%s1158_s3] sm:$0xff] %vm538_vm1, %v530_v23  ;;  %vm521_vm7 = vcmp.ge.f32.partialorder %v511_v21, 0.0  ;;  %v529_v27 = vmul.f32 0.2, %v511_v21 }
 0x10d   :  { %543 = vst.msk [vmem:[%s1158_s3 + $0x20] sm:$0xff] %vm538_vm1, %v534_v24  ;;  %v533_v26 = vsel %vm517_vm6, %v491_v14, %v525_v20  ;;  %vm516_vm8 = vcmp.ge.f32.partialorder %v486_v22, 0.0  ;;  %v524_v28 = vmul.f32 0.2, %v486_v22 }
 0x10e   :  { %542 = vst.msk [vmem:[%s1158_s3 + $0x18] sm:$0xff] %vm538_vm1, %v533_v26  ;;  %vm520_vm9 = vcmp.ge.f32.partialorder %v506_v25, 0.0  ;;  %v528_v29 = vmul.f32 0.2, %v506_v25  ;;  %v537_v30 = vsel %vm521_vm7, %v511_v21, %v529_v27 }
 0x10f   :  { %546 = vst.msk [vmem:[%s1158_s3 + $0x38] sm:$0xff] %vm538_vm1, %v537_v30  ;;  %v532_v31 = vsel %vm516_vm8, %v486_v22, %v524_v28 }
 0x110   :  { %v536_v32 = vsel %vm520_vm9, %v506_v25, %v528_v29  ;;  %541 = vst.msk [vmem:[%s1158_s3 + $0x10] sm:$0xff] %vm538_vm1, %v532_v31 }
 0x111   :  { %545 = vst.msk [vmem:[%s1158_s3 + $0x30] sm:$0xff] %vm538_vm1, %v536_v32 }

// kernel: fpse_forward.18
= control target key start
LH: loop header
LB: loop body
LE: loop exit
PB: predicated region body
PF: predicated region fallthrough
CT: control target
= control target key end

     0   :  { %v226_v2 = vmov 0   ;;  %vm50_vm0 = vcmask 523264   ;;  %vm160_vm1 = vcmask 15360   ;;  %s311_s0 = inlined_call_operand.vmem [shape: f32[64,2], index: 0, kind: input, shape index: {}]   ;;  %s312_s1 = inlined_call_operand.vmem [shape: f32[32,64], index: 1, kind: input, shape index: {}]   ;;  %s313_s2 = inlined_call_operand.vmem [shape: f32[32,1], index: 2, kind: input, shape index: {}]   ;;  %s314_s3 = inlined_call_operand.vmem [shape: f32[32,2], index: 3, kind: output, shape index: {}]  }
   0x1   :  { %v25_v0 = vld [vmem:[%s311_s0 + $0x38] sm:$0xff]  ;;  %v24_v1 = vld [vmem:[%s311_s0 + $0x30] sm:$0xff]  ;;  %225 = vset.pattern.permute.xlu1 %v226_v2  ;;  %224 = vset.pattern.permute.xlu0 %v226_v2  ;;  %v23_v3 = vld [vmem:[%s311_s0 + $0x28] sm:$0xff] }
   0x2   :  { %185 = vmatprep.subr.mxu0 %v25_v0  ;;  %207 = vmatprep.subr.mxu1 %v25_v0  ;;  %v22_v4 = vld [vmem:[%s311_s0 + $0x20] sm:$0xff]  ;;  %v21_v5 = vld [vmem:[%s311_s0 + $0x18] sm:$0xff]  ;;  %v20_v6 = vld [vmem:[%s311_s0 + $0x10] sm:$0xff] }
   0x3   :  { %186 = vmatpush3.msra.mxu0 %v25_v0  ;;  %215 = vmatpush3.msra.mxu1 %v25_v0  ;;  %v19_v7 = vld [vmem:[%s311_s0 + $0x8] sm:$0xff]  ;;  %v18_v8 = vld [vmem:[%s311_s0] sm:$0xff]  ;;  %v16_v10 = vld [vmem:[%s312_s1 + $0x10] sm:$0xff] }
   0x4   :  { %187 = vmatprep.subr.mxu0 %v24_v1  ;;  %208 = vmatprep.subr.mxu1 %v24_v1  ;;  %v14_v9 = vld [vmem:[%s312_s1] sm:$0xff]  ;;  %v15_v11 = vld [vmem:[%s312_s1 + $0x8] sm:$0xff]  ;;  %v17_v12 = vld [vmem:[%s312_s1 + $0x18] sm:$0xff] }
   0x5   :  { %188 = vmatpush3.msra.mxu0 %v24_v1  ;;  %216 = vmatpush3.msra.mxu1 %v24_v1  ;;  %v28_v13 = vld [vmem:[%s313_s2 + $0x10] sm:$0xff]  ;;  %v26_v14 = vld [vmem:[%s313_s2] sm:$0xff]  ;;  %v29_v15 = vld [vmem:[%s313_s2 + $0x18] sm:$0xff] }
   0x6   :  { %189 = vmatprep.subr.mxu0 %v23_v3  ;;  %209 = vmatprep.subr.mxu1 %v23_v3  ;;  %v27_v16 = vld [vmem:[%s313_s2 + $0x8] sm:$0xff] }
   0x7   :  { %190 = vmatpush3.msra.mxu0 %v23_v3  ;;  %217 = vmatpush3.msra.mxu1 %v23_v3 }
   0x8   :  { %191 = vmatprep.subr.mxu0 %v22_v4  ;;  %210 = vmatprep.subr.mxu1 %v22_v4 }
   0x9   :  { %192 = vmatpush3.msra.mxu0 %v22_v4  ;;  %218 = vmatpush3.msra.mxu1 %v22_v4 }
   0xa   :  { %193 = vmatprep.subr.mxu0 %v21_v5  ;;  %211 = vmatprep.subr.mxu1 %v21_v5 }
   0xb   :  { %194 = vmatpush3.msra.mxu0 %v21_v5  ;;  %219 = vmatpush3.msra.mxu1 %v21_v5 }
   0xc   :  { %195 = vmatprep.subr.mxu0 %v20_v6  ;;  %212 = vmatprep.subr.mxu1 %v20_v6 }
   0xd   :  { %196 = vmatpush3.msra.mxu0 %v20_v6  ;;  %220 = vmatpush3.msra.mxu1 %v20_v6 }
   0xe   :  { %197 = vmatprep.subr.mxu0 %v19_v7  ;;  %213 = vmatprep.subr.mxu1 %v19_v7 }
   0xf   :  { %198 = vmatpush3.msra.mxu0 %v19_v7  ;;  %221 = vmatpush3.msra.mxu1 %v19_v7 }
  0x10   :  { %199 = vmatprep.subr.mxu0 %v18_v8  ;;  %214 = vmatprep.subr.mxu1 %v18_v8 }
  0x11   :  { %200 = vmatpush3.msra.mxu0 %v18_v8  ;;  %222 = vmatpush3.msra.mxu1 %v18_v8 }
  0x12   :  { %201 = vmatprep.mubr.msk.f32.mxu0 %vm50_vm0, %v14_v9  ;;  %204 = vmatprep.mubr.msk.f32.mxu1 %vm50_vm0, %v16_v10 }
  0x13   :  { %202 = vmatmul.mubr.msk.f32.vlgmr.msra.gmra.mxu0 %vm50_vm0, %v15_v11  ;;  %205 = vmatmul.mubr.msk.f32.vlgmr.msra.gmra.mxu1 %vm50_vm0, %v17_v12 }
  0x14   :  { %42 = vperm.xlu1 %225, %v28_v13   ;;  %32 = vperm.xlu0 %224, %v26_v14  }
  0x18   :  { %47 = vperm.xlu1 %225, %v29_v15   ;;  %37 = vperm.xlu0 %224, %v27_v16  }
  0x8f   :  { %v43_v17 = vpop.permute.xlu1 %42  ;;  %v33_v18 = vpop.permute.xlu0 %32 }
  0x93   :  { %v48_v19 = vpop.permute.xlu1 %47  ;;  %v38_v20 = vpop.permute.xlu0 %37 }
  0xd3   :  { %v203_v21 = vpop.f32.mrf.mxu0  ;;  %v206_v22 = vpop.f32.mrf.mxu1 }
  0xd4   :  { %v135_v23 = vadd.f32 %v203_v21, %v38_v20  ;;  %v145_v24 = vadd.f32 %v206_v22, %v48_v19 }
  0xd5   :  { %v129_v25 = vpop.f32.mrf.mxu0  ;;  %v139_v26 = vpop.f32.mrf.mxu1 }
  0xd6   :  { %vm149_vm2 = vcmp.ge.f32.partialorder %v135_v23, 0.0  ;;  %v153_v27 = vmul.f32 0.2, %v135_v23  ;;  %vm151_vm3 = vcmp.ge.f32.partialorder %v145_v24, 0.0  ;;  %v155_v28 = vmul.f32 0.2, %v145_v24 }
  0xd7   :  { %v130_v29 = vadd.f32 %v129_v25, %v33_v18  ;;  %v140_v30 = vadd.f32 %v139_v26, %v43_v17 }
  0xd8   :  { %v157_v31 = vsel %vm149_vm2, %v135_v23, %v153_v27  ;;  %v159_v32 = vsel %vm151_vm3, %v145_v24, %v155_v28 }
  0xd9   :  { %162 = vst.msk [vmem:[%s314_s3 + $0x8] sm:$0xff] %vm160_vm1, %v157_v31  ;;  %164 = vst.msk [vmem:[%s314_s3 + $0x18] sm:$0xff] %vm160_vm1, %v159_v32  ;;  %vm148_vm4 = vcmp.ge.f32.partialorder %v130_v29, 0.0  ;;  %v152_v33 = vmul.f32 0.2, %v130_v29  ;;  %vm150_vm5 = vcmp.ge.f32.partialorder %v140_v30, 0.0 }
  0xda   :  { %v154_v34 = vmul.f32 0.2, %v140_v30 }
  0xdb   :  { %v156_v35 = vsel %vm148_vm4, %v130_v29, %v152_v33 }
  0xdc   :  { %v158_v36 = vsel %vm150_vm5, %v140_v30, %v154_v34  ;;  %161 = vst.msk [vmem:[%s314_s3] sm:$0xff] %vm160_vm1, %v156_v35 }
  0xdd   :  { %163 = vst.msk [vmem:[%s314_s3 + $0x10] sm:$0xff] %vm160_vm1, %v158_v36 }

// kernel: fpse_forward.19
= control target key start
LH: loop header
LB: loop body
LE: loop exit
PB: predicated region body
PF: predicated region fallthrough
CT: control target
= control target key end

     0   :  { %v237_v2 = vmov 0   ;;  %vm53_vm0 = vcmask 523264   ;;  %vm171_vm3 = vcmask 64512   ;;  %s339_s0 = inlined_call_operand.vmem [shape: f32[64,8], index: 0, kind: input, shape index: {}]   ;;  %s340_s1 = inlined_call_operand.vmem [shape: f32[32,64], index: 1, kind: input, shape index: {}]   ;;  %s341_s2 = inlined_call_operand.vmem [shape: f32[32,1], index: 2, kind: input, shape index: {}]   ;;  %s342_s3 = inlined_call_operand.vmem [shape: f32[32,8], index: 3, kind: input, shape index: {}]   ;;  %s343_s4 = inlined_call_operand.vmem [shape: f32[32,8], index: 4, kind: output, shape index: {}]  }
   0x1   :  { %v28_v0 = vld [vmem:[%s339_s0 + $0x38] sm:$0xff]  ;;  %v27_v1 = vld [vmem:[%s339_s0 + $0x30] sm:$0xff]  ;;  %236 = vset.pattern.permute.xlu1 %v237_v2  ;;  %235 = vset.pattern.permute.xlu0 %v237_v2  ;;  %v26_v3 = vld [vmem:[%s339_s0 + $0x28] sm:$0xff] }
   0x2   :  { %196 = vmatprep.subr.mxu0 %v28_v0  ;;  %218 = vmatprep.subr.mxu1 %v28_v0  ;;  %v25_v4 = vld [vmem:[%s339_s0 + $0x20] sm:$0xff]  ;;  %v24_v5 = vld [vmem:[%s339_s0 + $0x18] sm:$0xff]  ;;  %v23_v6 = vld [vmem:[%s339_s0 + $0x10] sm:$0xff] }
   0x3   :  { %197 = vmatpush3.msra.mxu0 %v28_v0  ;;  %226 = vmatpush3.msra.mxu1 %v28_v0  ;;  %v22_v7 = vld [vmem:[%s339_s0 + $0x8] sm:$0xff]  ;;  %v21_v8 = vld [vmem:[%s339_s0] sm:$0xff]  ;;  %v19_v10 = vld [vmem:[%s340_s1 + $0x10] sm:$0xff] }
   0x4   :  { %198 = vmatprep.subr.mxu0 %v27_v1  ;;  %219 = vmatprep.subr.mxu1 %v27_v1  ;;  %v17_v9 = vld [vmem:[%s340_s1] sm:$0xff]  ;;  %v18_v11 = vld [vmem:[%s340_s1 + $0x8] sm:$0xff]  ;;  %v20_v12 = vld [vmem:[%s340_s1 + $0x18] sm:$0xff] }
   0x5   :  { %199 = vmatpush3.msra.mxu0 %v27_v1  ;;  %227 = vmatpush3.msra.mxu1 %v27_v1  ;;  %v31_v13 = vld [vmem:[%s341_s2 + $0x10] sm:$0xff]  ;;  %v29_v14 = vld [vmem:[%s341_s2] sm:$0xff]  ;;  %v32_v15 = vld [vmem:[%s341_s2 + $0x18] sm:$0xff] }
   0x6   :  { %200 = vmatprep.subr.mxu0 %v26_v3  ;;  %220 = vmatprep.subr.mxu1 %v26_v3  ;;  %v30_v16 = vld [vmem:[%s341_s2 + $0x8] sm:$0xff]  ;;  %v166_v26 = vld [vmem:[%s342_s3 + $0x18] sm:$0xff]  ;;  %v163_v38 = vld [vmem:[%s342_s3] sm:$0xff] }
   0x7   :  { %201 = vmatpush3.msra.mxu0 %v26_v3  ;;  %228 = vmatpush3.msra.mxu1 %v26_v3  ;;  %v164_v25 = vld [vmem:[%s342_s3 + $0x8] sm:$0xff]  ;;  %v165_v40 = vld [vmem:[%s342_s3 + $0x10] sm:$0xff] }
   0x8   :  { %202 = vmatprep.subr.mxu0 %v25_v4  ;;  %221 = vmatprep.subr.mxu1 %v25_v4 }
   0x9   :  { %203 = vmatpush3.msra.mxu0 %v25_v4  ;;  %229 = vmatpush3.msra.mxu1 %v25_v4 }
   0xa   :  { %204 = vmatprep.subr.mxu0 %v24_v5  ;;  %222 = vmatprep.subr.mxu1 %v24_v5 }
   0xb   :  { %205 = vmatpush3.msra.mxu0 %v24_v5  ;;  %230 = vmatpush3.msra.mxu1 %v24_v5 }
   0xc   :  { %206 = vmatprep.subr.mxu0 %v23_v6  ;;  %223 = vmatprep.subr.mxu1 %v23_v6 }
   0xd   :  { %207 = vmatpush3.msra.mxu0 %v23_v6  ;;  %231 = vmatpush3.msra.mxu1 %v23_v6 }
   0xe   :  { %208 = vmatprep.subr.mxu0 %v22_v7  ;;  %224 = vmatprep.subr.mxu1 %v22_v7 }
   0xf   :  { %209 = vmatpush3.msra.mxu0 %v22_v7  ;;  %232 = vmatpush3.msra.mxu1 %v22_v7 }
  0x10   :  { %210 = vmatprep.subr.mxu0 %v21_v8  ;;  %225 = vmatprep.subr.mxu1 %v21_v8 }
  0x11   :  { %211 = vmatpush3.msra.mxu0 %v21_v8  ;;  %233 = vmatpush3.msra.mxu1 %v21_v8 }
  0x12   :  { %212 = vmatprep.mubr.msk.f32.mxu0 %vm53_vm0, %v17_v9  ;;  %215 = vmatprep.mubr.msk.f32.mxu1 %vm53_vm0, %v19_v10 }
  0x13   :  { %213 = vmatmul.mubr.msk.f32.vlgmr.msra.gmra.mxu0 %vm53_vm0, %v18_v11  ;;  %216 = vmatmul.mubr.msk.f32.vlgmr.msra.gmra.mxu1 %vm53_vm0, %v20_v12 }
  0x14   :  { %45 = vperm.xlu1 %236, %v31_v13   ;;  %35 = vperm.xlu0 %235, %v29_v14  }
  0x18   :  { %50 = vperm.xlu1 %236, %v32_v15   ;;  %40 = vperm.xlu0 %235, %v30_v16  }
  0x8f   :  { %v46_v17 = vpop.permute.xlu1 %45  ;;  %v36_v18 = vpop.permute.xlu0 %35 }
  0x93   :  { %v51_v19 = vpop.permute.xlu1 %50  ;;  %v41_v20 = vpop.permute.xlu0 %40 }
  0xd3   :  { %v214_v21 = vpop.f32.mrf.mxu0  ;;  %v217_v22 = vpop.f32.mrf.mxu1 }
  0xd4   :  { %v138_v23 = vadd.f32 %v214_v21, %v41_v20  ;;  %v148_v24 = vadd.f32 %v217_v22, %v51_v19 }
  0xd5   :  { %v132_v27 = vpop.f32.mrf.mxu0  ;;  %v142_v28 = vpop.f32.mrf.mxu1 }
  0xd6   :  { %vm152_vm1 = vcmp.ge.f32.partialorder %v138_v23, 0.0  ;;  %v156_v29 = vmul.f32 0.2, %v138_v23  ;;  %vm154_vm2 = vcmp.ge.f32.partialorder %v148_v24, 0.0  ;;  %v158_v30 = vmul.f32 0.2, %v148_v24 }
  0xd7   :  { %v133_v31 = vadd.f32 %v132_v27, %v36_v18  ;;  %v143_v32 = vadd.f32 %v142_v28, %v46_v17 }
  0xd8   :  { %v160_v33 = vsel %vm152_vm1, %v138_v23, %v156_v29  ;;  %v162_v34 = vsel %vm154_vm2, %v148_v24, %v158_v30 }
  0xd9   :  { %v168_v35 = vadd.f32 %v164_v25, %v160_v33  ;;  %v170_v36 = vadd.f32 %v166_v26, %v162_v34  ;;  %vm151_vm4 = vcmp.ge.f32.partialorder %v133_v31, 0.0  ;;  %v155_v37 = vmul.f32 0.2, %v133_v31 }
  0xda   :  { %vm153_vm5 = vcmp.ge.f32.partialorder %v143_v32, 0.0  ;;  %v157_v39 = vmul.f32 0.2, %v143_v32 }
  0xdb   :  { %173 = vst.msk [vmem:[%s343_s4 + $0x8] sm:$0xff] %vm171_vm3, %v168_v35  ;;  %175 = vst.msk [vmem:[%s343_s4 + $0x18] sm:$0xff] %vm171_vm3, %v170_v36  ;;  %v159_v41 = vsel %vm151_vm4, %v133_v31, %v155_v37 }
  0xdc   :  { %v167_v42 = vadd.f32 %v163_v38, %v159_v41  ;;  %v161_v43 = vsel %vm153_vm5, %v143_v32, %v157_v39 }
  0xdd   :  { %v169_v44 = vadd.f32 %v165_v40, %v161_v43 }
  0xde   :  { %172 = vst.msk [vmem:[%s343_s4] sm:$0xff] %vm171_vm3, %v167_v42 }
  0xdf   :  { %174 = vst.msk [vmem:[%s343_s4 + $0x10] sm:$0xff] %vm171_vm3, %v169_v44 }

// kernel: fpse_forward.20
= control target key start
LH: loop header
LB: loop body
LE: loop exit
PB: predicated region body
PF: predicated region fallthrough
CT: control target
= control target key end

     0   :  { %v212_v2 = vmov 0   ;;  %vm49_vm0 = vcmask 261120   ;;  %s306_s0 = inlined_call_operand.vmem [shape: f32[32,32], index: 0, kind: input, shape index: {}]   ;;  %s307_s1 = inlined_call_operand.vmem [shape: f32[32,32], index: 1, kind: input, shape index: {}]   ;;  %s308_s2 = inlined_call_operand.vmem [shape: f32[32,1], index: 2, kind: input, shape index: {}]   ;;  %s309_s3 = inlined_call_operand.vmem [shape: f32[32,32], index: 3, kind: input, shape index: {}]   ;;  %s310_s4 = inlined_call_operand.vmem [shape: f32[32,32], index: 4, kind: output, shape index: {}]  }
   0x1   :  { %v24_v0 = vld [vmem:[%s306_s0 + $0x18] sm:$0xff]  ;;  %v23_v1 = vld [vmem:[%s306_s0 + $0x10] sm:$0xff]  ;;  %211 = vset.pattern.permute.xlu1 %v212_v2  ;;  %210 = vset.pattern.permute.xlu0 %v212_v2  ;;  %v22_v3 = vld [vmem:[%s306_s0 + $0x8] sm:$0xff] }
   0x2   :  { %187 = vmatprep.subr.mxu0 %v24_v0  ;;  %201 = vmatprep.subr.mxu1 %v24_v0  ;;  %v21_v4 = vld [vmem:[%s306_s0] sm:$0xff]  ;;  %v19_v6 = vld [vmem:[%s307_s1 + $0x10] sm:$0xff]  ;;  %v18_v7 = vld [vmem:[%s307_s1 + $0x8] sm:$0xff] }
   0x3   :  { %188 = vmatpush3.msra.mxu0 %v24_v0  ;;  %205 = vmatpush3.msra.mxu1 %v24_v0  ;;  %v17_v5 = vld [vmem:[%s307_s1] sm:$0xff]  ;;  %v20_v8 = vld [vmem:[%s307_s1 + $0x18] sm:$0xff]  ;;  %v27_v9 = vld [vmem:[%s308_s2 + $0x10] sm:$0xff] }
   0x4   :  { %189 = vmatprep.subr.mxu0 %v23_v1  ;;  %202 = vmatprep.subr.mxu1 %v23_v1  ;;  %v25_v10 = vld [vmem:[%s308_s2] sm:$0xff]  ;;  %v28_v11 = vld [vmem:[%s308_s2 + $0x18] sm:$0xff]  ;;  %v26_v12 = vld [vmem:[%s308_s2 + $0x8] sm:$0xff] }
   0x5   :  { %190 = vmatpush3.msra.mxu0 %v23_v1  ;;  %206 = vmatpush3.msra.mxu1 %v23_v1  ;;  %v160_v21 = vld [vmem:[%s309_s3 + $0x8] sm:$0xff]  ;;  %v162_v22 = vld [vmem:[%s309_s3 + $0x18] sm:$0xff]  ;;  %v159_v34 = vld [vmem:[%s309_s3] sm:$0xff] }
   0x6   :  { %191 = vmatprep.subr.mxu0 %v22_v3  ;;  %203 = vmatprep.subr.mxu1 %v22_v3  ;;  %v161_v36 = vld [vmem:[%s309_s3 + $0x10] sm:$0xff] }
   0x7   :  { %192 = vmatpush3.msra.mxu0 %v22_v3  ;;  %207 = vmatpush3.msra.mxu1 %v22_v3 }
   0x8   :  { %193 = vmatprep.subr.mxu0 %v21_v4  ;;  %204 = vmatprep.subr.mxu1 %v21_v4 }
   0x9   :  { %194 = vmatpush3.msra.mxu0 %v21_v4  ;;  %208 = vmatpush3.msra.mxu1 %v21_v4 }
   0xa   :  { %195 = vmatprep.mubr.msk.f32.mxu0 %vm49_vm0, %v17_v5  ;;  %198 = vmatprep.mubr.msk.f32.mxu1 %vm49_vm0, %v19_v6 }
   0xb   :  { %196 = vmatmul.mubr.msk.f32.vlgmr.msra.gmra.mxu0 %vm49_vm0, %v18_v7  ;;  %199 = vmatmul.mubr.msk.f32.vlgmr.msra.gmra.mxu1 %vm49_vm0, %v20_v8 }
   0xc   :  { %41 = vperm.xlu1 %211, %v27_v9   ;;  %31 = vperm.xlu0 %210, %v25_v10  }
  0x10   :  { %46 = vperm.xlu1 %211, %v28_v11   ;;  %36 = vperm.xlu0 %210, %v26_v12  }
  0x87   :  { %v42_v13 = vpop.permute.xlu1 %41  ;;  %v32_v14 = vpop.permute.xlu0 %31 }
  0x8b   :  { %v47_v15 = vpop.permute.xlu1 %46  ;;  %v37_v16 = vpop.permute.xlu0 %36 }
  0xcb   :  { %v197_v17 = vpop.f32.mrf.mxu0  ;;  %v200_v18 = vpop.f32.mrf.mxu1 }
  0xcc   :  { %v134_v19 = vadd.f32 %v197_v17, %v37_v16  ;;  %v144_v20 = vadd.f32 %v200_v18, %v47_v15 }
  0xcd   :  { %v128_v23 = vpop.f32.mrf.mxu0  ;;  %v138_v24 = vpop.f32.mrf.mxu1 }
  0xce   :  { %vm148_vm1 = vcmp.ge.f32.partialorder %v134_v19, 0.0  ;;  %v152_v25 = vmul.f32 0.2, %v134_v19  ;;  %vm150_vm2 = vcmp.ge.f32.partialorder %v144_v20, 0.0  ;;  %v154_v26 = vmul.f32 0.2, %v144_v20 }
  0xcf   :  { %v129_v27 = vadd.f32 %v128_v23, %v32_v14  ;;  %v139_v28 = vadd.f32 %v138_v24, %v42_v13 }
  0xd0   :  { %v156_v29 = vsel %vm148_vm1, %v134_v19, %v152_v25  ;;  %v158_v30 = vsel %vm150_vm2, %v144_v20, %v154_v26 }
  0xd1   :  { %v164_v31 = vadd.f32 %v160_v21, %v156_v29  ;;  %v166_v32 = vadd.f32 %v162_v22, %v158_v30  ;;  %vm147_vm3 = vcmp.ge.f32.partialorder %v129_v27, 0.0  ;;  %v151_v33 = vmul.f32 0.2, %v129_v27 }
  0xd2   :  { %vm149_vm4 = vcmp.ge.f32.partialorder %v139_v28, 0.0  ;;  %v153_v35 = vmul.f32 0.2, %v139_v28 }
  0xd3   :  { %168 = vst.msk [vmem:[%s310_s4 + $0x8] sm:$0xff] %vm49_vm0, %v164_v31  ;;  %170 = vst.msk [vmem:[%s310_s4 + $0x18] sm:$0xff] %vm49_vm0, %v166_v32  ;;  %v155_v37 = vsel %vm147_vm3, %v129_v27, %v151_v33 }
  0xd4   :  { %v163_v38 = vadd.f32 %v159_v34, %v155_v37  ;;  %v157_v39 = vsel %vm149_vm4, %v139_v28, %v153_v35 }
  0xd5   :  { %v165_v40 = vadd.f32 %v161_v36, %v157_v39 }
  0xd6   :  { %167 = vst.msk [vmem:[%s310_s4] sm:$0xff] %vm49_vm0, %v163_v38 }
  0xd7   :  { %169 = vst.msk [vmem:[%s310_s4 + $0x10] sm:$0xff] %vm49_vm0, %v165_v40 }

// kernel: fpse_forward.21
= control target key start
LH: loop header
LB: loop body
LE: loop exit
PB: predicated region body
PF: predicated region fallthrough
CT: control target
= control target key end

     0   :  { %v200_v2 = vmov 0   ;;  %vm47_vm0 = vcmask 130048   ;;  %s280_s0 = inlined_call_operand.vmem [shape: f32[16,128], index: 0, kind: input, shape index: {}]   ;;  %s281_s1 = inlined_call_operand.vmem [shape: f32[32,16], index: 1, kind: input, shape index: {}]   ;;  %s282_s2 = inlined_call_operand.vmem [shape: f32[32,1], index: 2, kind: input, shape index: {}]   ;;  %s283_s3 = inlined_call_operand.vmem [shape: f32[32,128], index: 3, kind: input, shape index: {}]   ;;  %s284_s4 = inlined_call_operand.vmem [shape: f32[32,128], index: 4, kind: output, shape index: {}]  }
   0x1   :  { %v22_v0 = vld [vmem:[%s280_s0 + $0x8] sm:$0xff]  ;;  %v21_v1 = vld [vmem:[%s280_s0] sm:$0xff]  ;;  %199 = vset.pattern.permute.xlu1 %v200_v2  ;;  %198 = vset.pattern.permute.xlu0 %v200_v2  ;;  %v19_v4 = vld [vmem:[%s281_s1 + $0x10] sm:$0xff] }
   0x2   :  { %183 = vmatprep.subr.mxu0 %v22_v0  ;;  %193 = vmatprep.subr.mxu1 %v22_v0  ;;  %v17_v3 = vld [vmem:[%s281_s1] sm:$0xff]  ;;  %v18_v5 = vld [vmem:[%s281_s1 + $0x8] sm:$0xff]  ;;  %v20_v6 = vld [vmem:[%s281_s1 + $0x18] sm:$0xff] }
   0x3   :  { %184 = vmatpush3.msra.mxu0 %v22_v0  ;;  %195 = vmatpush3.msra.mxu1 %v22_v0  ;;  %v25_v7 = vld [vmem:[%s282_s2 + $0x10] sm:$0xff]  ;;  %v23_v8 = vld [vmem:[%s282_s2] sm:$0xff]  ;;  %v26_v9 = vld [vmem:[%s282_s2 + $0x18] sm:$0xff] }
   0x4   :  { %185 = vmatprep.subr.mxu0 %v21_v1  ;;  %194 = vmatprep.subr.mxu1 %v21_v1  ;;  %v24_v10 = vld [vmem:[%s282_s2 + $0x8] sm:$0xff]  ;;  %v160_v20 = vld [vmem:[%s283_s3 + $0x18] sm:$0xff]  ;;  %v157_v32 = vld [vmem:[%s283_s3] sm:$0xff] }
   0x5   :  { %186 = vmatpush3.msra.mxu0 %v21_v1  ;;  %196 = vmatpush3.msra.mxu1 %v21_v1  ;;  %v158_v19 = vld [vmem:[%s283_s3 + $0x8] sm:$0xff]  ;;  %v159_v34 = vld [vmem:[%s283_s3 + $0x10] sm:$0xff] }
   0x6   :  { %187 = vmatprep.mubr.msk.f32.mxu0 %vm47_vm0, %v17_v3  ;;  %190 = vmatprep.mubr.msk.f32.mxu1 %vm47_vm0, %v19_v4 }
   0x7   :  { %188 = vmatmul.mubr.msk.f32.vlgmr.msra.gmra.mxu0 %vm47_vm0, %v18_v5  ;;  %191 = vmatmul.mubr.msk.f32.vlgmr.msra.gmra.mxu1 %vm47_vm0, %v20_v6 }
   0x8   :  { %39 = vperm.xlu1 %199, %v25_v7   ;;  %29 = vperm.xlu0 %198, %v23_v8  }
   0xc   :  { %44 = vperm.xlu1 %199, %v26_v9   ;;  %34 = vperm.xlu0 %198, %v24_v10  }
  0x83   :  { %v40_v11 = vpop.permute.xlu1 %39  ;;  %v30_v12 = vpop.permute.xlu0 %29 }
  0x87   :  { %v45_v13 = vpop.permute.xlu1 %44  ;;  %v35_v14 = vpop.permute.xlu0 %34 }
  0xc7   :  { %v189_v15 = vpop.f32.mrf.mxu0  ;;  %v192_v16 = vpop.f32.mrf.mxu1 }
  0xc8   :  { %v132_v17 = vadd.f32 %v189_v15, %v35_v14  ;;  %v142_v18 = vadd.f32 %v192_v16, %v45_v13 }
  0xc9   :  { %v126_v21 = vpop.f32.mrf.mxu0  ;;  %v136_v22 = vpop.f32.mrf.mxu1 }
  0xca   :  { %vm146_vm1 = vcmp.ge.f32.partialorder %v132_v17, 0.0  ;;  %v150_v23 = vmul.f32 0.2, %v132_v17  ;;  %vm148_vm2 = vcmp.ge.f32.partialorder %v142_v18, 0.0  ;;  %v152_v24 = vmul.f32 0.2, %v142_v18 }
  0xcb   :  { %v127_v25 = vadd.f32 %v126_v21, %v30_v12  ;;  %v137_v26 = vadd.f32 %v136_v22, %v40_v11 }
  0xcc   :  { %v154_v27 = vsel %vm146_vm1, %v132_v17, %v150_v23  ;;  %v156_v28 = vsel %vm148_vm2, %v142_v18, %v152_v24 }
  0xcd   :  { %v162_v29 = vadd.f32 %v158_v19, %v154_v27  ;;  %v164_v30 = vadd.f32 %v160_v20, %v156_v28  ;;  %vm145_vm3 = vcmp.ge.f32.partialorder %v127_v25, 0.0  ;;  %v149_v31 = vmul.f32 0.2, %v127_v25 }
  0xce   :  { %vm147_vm4 = vcmp.ge.f32.partialorder %v137_v26, 0.0  ;;  %v151_v33 = vmul.f32 0.2, %v137_v26 }
  0xcf   :  { %166 = vst [vmem:[%s284_s4 + $0x8] sm:$0xff] %v162_v29  ;;  %168 = vst [vmem:[%s284_s4 + $0x18] sm:$0xff] %v164_v30  ;;  %v153_v35 = vsel %vm145_vm3, %v127_v25, %v149_v31 }
  0xd0   :  { %v161_v36 = vadd.f32 %v157_v32, %v153_v35  ;;  %v155_v37 = vsel %vm147_vm4, %v137_v26, %v151_v33 }
  0xd1   :  { %v163_v38 = vadd.f32 %v159_v34, %v155_v37 }
  0xd2   :  { %165 = vst [vmem:[%s284_s4] sm:$0xff] %v161_v36 }
  0xd3   :  { %167 = vst [vmem:[%s284_s4 + $0x10] sm:$0xff] %v163_v38 }

// kernel: fpse_forward.22
= control target key start
LH: loop header
LB: loop body
LE: loop exit
PB: predicated region body
PF: predicated region fallthrough
CT: control target
= control target key end

     0   :  { %s756_s12 = smov 0   ;;  %s758_s13 = smov 0   ;;  %s868_s0 = inlined_call_operand.vmem [shape: f32[4,2048], index: 0, kind: input, shape index: {}]   ;;  %s869_s1 = inlined_call_operand.vmem [shape: f32[16,4], index: 1, kind: input, shape index: {}]   ;;  %s870_s2 = inlined_call_operand.vmem [shape: f32[16,1], index: 2, kind: input, shape index: {}]   ;;  %s871_s3 = inlined_call_operand.vmem [shape: f32[16,2048], index: 3, kind: output, shape index: {}]  }
   0x1   :  { %s760_s14 = smov 0  }
   0x2 LB: > { %s769_s15 = sadd.s32 4294967295, %s732_s14   ;;  %s771_s16 = sadd.s32 1, %s732_s14   ;;  %s732_s14 = sphi %s760_s14, %s875_s14   ;;  %s728_s13 = sphi %s758_s13, %s874_s13   ;;  %s724_s12 = sphi %s756_s12, %s873_s12  }
   0x3   : > { %s85_s17 = ssub.s32 %s732_s14, %s771_s16  ;;  %s88_s18 = sadd.s32 1, %s728_s13 }
   0x4   : > { %p86_p0 = scmp.eq.s32.totalorder %s85_s17, 0  ;;  %p98_p1 = scmp.ne.s32.totalorder %s728_s13, %s724_s12 }
   0x5   : > { %p99_p2 = scmp.eq.s32.totalorder %s769_s15, 1  ;;  %p653_p3 = scmp.ge.s32.totalorder %s732_s14, 1 }
   0x6   : > { %s779_s19 = scalar_select %p86_p0, %s728_s13, %s88_s18  }
   0x7   : > { %p781_p4 = por %p99_p2, %p98_p1  ;;  %p138_p5 = scmp.lt.s32.totalorder %s732_s14, 3 }
   0x9   : > { %p139_p6 = pnand %p653_p3, %p138_p5 }
   0xa   : > { %s655_s21 = sshll.u32 (!%p139_p6), %s769_s15, 3  ;;  %s158_s7 = sand.u32 (!%p139_p6), 1, %s724_s12  }
   0xb   : > { %142 = sbr.rel (%p139_p6) target bundleno = 243 (0xf3), region = 32  ;;  %p162_p7 = scmp.lt.s32.totalorder (!%p139_p6), %s655_s21, 15 }
   0xc   : > { %s654_s8 = sshll.u32 (!%p139_p6), %s158_s7, 7 }
   0xd   : > { %s818_s9 = scalar_lea.vmem (!%p139_p6), [#allocation2], %s654_s8 }
  0x10   : > { %v734_v0 = vmov 0.0   ;;  %v174_v1 = vld [vmem:[%s870_s2] sm:$0xff]  ;;  %v735_v2 = vmov 0   ;;  %s877_s21 = smov (!%p162_p7, %s655_s21), 15  ;;  %v175_v3 = vld [vmem:[%s870_s2 + $0x8] sm:$0xff]  ;;  %vm201_vm0 = vcmask 1043456  }
  0x11   : > { %282 = vmatprep.mubr.f32.mxu0 %v734_v0  ;;  %359 = vmatprep.mubr.f32.mxu1 %v734_v0  ;;  %s656_s26 = sshll.u32 %s877_s21, 2  ;;  %v168_v10 = vld [vmem:[%s869_s1] sm:$0xff]  ;;  %vm194_vm1 = vcmask 31744   ;;  %v169_v13 = vld [vmem:[%s869_s1 + $0x8] sm:$0xff]  ;;  %s678_s10 = sshll.u32 (%p781_p4), %s769_s15, 6 }
  0x12   : > { %705 = vset.pattern.permute.xlu0 %v735_v2  ;;  %s165_s29 = scalar_lea.vmem %s868_s0, %s656_s26  ;;  %s551_s14 = scalar_lea.vmem (%p781_p4), %s871_s3, %s678_s10 }
  0x13   : > { %178 = vperm.xlu0 %705, %v174_v1   ;;  %v170_v4 = vld [vmem:[%s165_s29] sm:$0xff]  ;;  %v171_v5 = vld [vmem:[%s165_s29 + $0x8] sm:$0xff]  ;;  %v172_v6 = vld [vmem:[%s165_s29 + $0x10] sm:$0xff] }
  0x14   : > { %v190_v7 = vcombine.high %v170_v4, %v170_v4  ;;  %v191_v8 = vcombine.high %v171_v5, %v171_v5  ;;  %v173_v9 = vld [vmem:[%s165_s29 + $0x18] sm:$0xff]  ;;  %v192_v11 = vcombine.high %v172_v6, %v172_v6 }
  0x15   : > { %v193_v12 = vcombine.high %v173_v9, %v173_v9 }
  0x16   : > { %657 = vmatprep.subr.msk.mxu0 %vm201_vm0, %v190_v7  ;;  %661 = vmatprep.subr.msk.mxu1 %vm201_vm0, %v191_v8 }
  0x17   : > { %183 = vperm.xlu0 %705, %v175_v3   ;;  %658 = vmatpush1.msk.msra.mxu0 %vm201_vm0, %v170_v4 }
  0x18   : > { %662 = vmatpush1.msk.msra.mxu1 %vm201_vm0, %v171_v5  ;;  %659 = vmatmul.mubr.msk.f32.vlgmr.msra.gmra.mxu0 %vm194_vm1, %v168_v10 }
  0x19   : > { %663 = vmatmul.mubr.msk.f32.vlgmr.msra.gmra.mxu1 %vm194_vm1, %v168_v10  ;;  %665 = vmatprep.subr.msk.mxu0 %vm201_vm0, %v192_v11 }
  0x1a   : > { %669 = vmatprep.subr.msk.mxu1 %vm201_vm0, %v193_v12  ;;  %666 = vmatpush1.msk.msra.mxu0 %vm201_vm0, %v172_v6 }
  0x1b   : > { %670 = vmatpush1.msk.msra.mxu1 %vm201_vm0, %v173_v9  ;;  %288 = vmatprep.mubr.f32.mxu0 %v734_v0 }
  0x1c   : > { %365 = vmatprep.mubr.f32.mxu1 %v734_v0  ;;  %660 = vmatmul.mubr.msk.f32.gmra.mxu0 %vm194_vm1, %v169_v13 }
  0x1d   : > { %664 = vmatmul.mubr.msk.f32.gmra.mxu1 %vm194_vm1, %v169_v13  ;;  %436 = vmatprep.mubr.f32.mxu0 %v734_v0 }
  0x1e   : > { %513 = vmatprep.mubr.f32.mxu1 %v734_v0 }
  0x20   : > { %667 = vmatmul.mubr.msk.f32.vlgmr.msra.gmra.mxu0 %vm194_vm1, %v168_v10 }
  0x21   : > { %671 = vmatmul.mubr.msk.f32.vlgmr.msra.gmra.mxu1 %vm194_vm1, %v168_v10  ;;  %442 = vmatprep.mubr.f32.mxu0 %v734_v0 }
  0x22   : > { %519 = vmatprep.mubr.f32.mxu1 %v734_v0 }
  0x24   : > { %668 = vmatmul.mubr.msk.f32.gmra.mxu0 %vm194_vm1, %v169_v13 }
  0x25   : > { %672 = vmatmul.mubr.msk.f32.gmra.mxu1 %vm194_vm1, %v169_v13 }
  0x8e   : > { %v179_v14 = vpop.permute.xlu0 %178 }
  0x92   : > { %v184_v19 = vpop.permute.xlu0 %183 }
  0xd8   : > { %v284_v15 = vpop.f32.mrf.mxu0 }
  0xd9   : > { %v361_v16 = vpop.f32.mrf.mxu1  ;;  %v285_v17 = vadd.f32 %v284_v15, %v179_v14 }
  0xda   : > { %v362_v18 = vadd.f32 %v361_v16, %v179_v14  ;;  %v286_v20 = vpop.f32.mrf.mxu0 }
  0xdb   : > { %v363_v21 = vpop.f32.mrf.mxu1  ;;  %526 = vst [vmem:[%s818_s9] sm:$0xff] %v285_v17  ;;  %v287_v22 = vadd.f32 %v286_v20, %v179_v14 }
  0xdc   : > { %528 = vst [vmem:[%s818_s9 + $0x10] sm:$0xff] %v362_v18  ;;  %v364_v23 = vadd.f32 %v363_v21, %v179_v14  ;;  %v290_v24 = vpop.f32.mrf.mxu0 }
  0xdd   : > { %v367_v25 = vpop.f32.mrf.mxu1  ;;  %527 = vst [vmem:[%s818_s9 + $0x8] sm:$0xff] %v287_v22  ;;  %v291_v26 = vadd.f32 %v290_v24, %v184_v19 }
  0xde   : > { %529 = vst [vmem:[%s818_s9 + $0x18] sm:$0xff] %v364_v23  ;;  %v368_v27 = vadd.f32 %v367_v25, %v184_v19  ;;  %v292_v28 = vpop.f32.mrf.mxu0 }
  0xdf   : > { %v369_v29 = vpop.f32.mrf.mxu1  ;;  %534 = vst [vmem:[%s818_s9 + $0x40] sm:$0xff] %v291_v26  ;;  %v293_v30 = vadd.f32 %v292_v28, %v184_v19 }
  0xe0   : > { %536 = vst [vmem:[%s818_s9 + $0x50] sm:$0xff] %v368_v27  ;;  %v370_v31 = vadd.f32 %v369_v29, %v184_v19  ;;  %v438_v32 = vpop.f32.mrf.mxu0 }
  0xe1   : > { %v515_v33 = vpop.f32.mrf.mxu1  ;;  %535 = vst [vmem:[%s818_s9 + $0x48] sm:$0xff] %v293_v30  ;;  %v439_v34 = vadd.f32 %v438_v32, %v179_v14 }
  0xe2   : > { %537 = vst [vmem:[%s818_s9 + $0x58] sm:$0xff] %v370_v31  ;;  %v516_v35 = vadd.f32 %v515_v33, %v179_v14  ;;  %v440_v36 = vpop.f32.mrf.mxu0  ;;  %v564_v48 = vld [vmem:[%s818_s9] sm:$0xff] (%p781_p4) }
  0xe3   : > { %v517_v37 = vpop.f32.mrf.mxu1  ;;  %530 = vst [vmem:[%s818_s9 + $0x20] sm:$0xff] %v439_v34  ;;  %v441_v38 = vadd.f32 %v440_v36, %v179_v14  ;;  %v568_v50 = vld [vmem:[%s818_s9 + $0x10] sm:$0xff] (%p781_p4)  ;;  %565 = vst [vmem:[%s551_s14] sm:$0xff] (%p781_p4), %v564_v48 }
  0xe4   : > { %532 = vst [vmem:[%s818_s9 + $0x30] sm:$0xff] %v516_v35  ;;  %v518_v39 = vadd.f32 %v517_v37, %v179_v14  ;;  %v444_v40 = vpop.f32.mrf.mxu0  ;;  %v566_v49 = vld [vmem:[%s818_s9 + $0x8] sm:$0xff] (%p781_p4)  ;;  %569 = vst [vmem:[%s551_s14 + $0x10] sm:$0xff] (%p781_p4), %v568_v50 }
  0xe5   : > { %v521_v41 = vpop.f32.mrf.mxu1  ;;  %531 = vst [vmem:[%s818_s9 + $0x28] sm:$0xff] %v441_v38  ;;  %v445_v42 = vadd.f32 %v444_v40, %v184_v19  ;;  %v570_v51 = vld [vmem:[%s818_s9 + $0x18] sm:$0xff] (%p781_p4)  ;;  %567 = vst [vmem:[%s551_s14 + $0x8] sm:$0xff] (%p781_p4), %v566_v49 }
  0xe6   : > { %533 = vst [vmem:[%s818_s9 + $0x38] sm:$0xff] %v518_v39  ;;  %v522_v43 = vadd.f32 %v521_v41, %v184_v19  ;;  %v446_v44 = vpop.f32.mrf.mxu0  ;;  %548 = sbr.rel (!%p781_p4) target bundleno = 243 (0xf3), region = 36  ;;  %571 = vst [vmem:[%s551_s14 + $0x18] sm:$0xff] (%p781_p4), %v570_v51  ;;  %v580_v56 = vld [vmem:[%s818_s9 + $0x40] sm:$0xff] (%p781_p4) }
  0xe7   : > { %v523_v45 = vpop.f32.mrf.mxu1  ;;  %538 = vst [vmem:[%s818_s9 + $0x60] sm:$0xff] %v445_v42  ;;  %v447_v46 = vadd.f32 %v446_v44, %v184_v19  ;;  %581 = vst [vmem:[%s551_s14 + $0x80] sm:$0xff] (%p781_p4), %v580_v56  ;;  %v584_v58 = vld [vmem:[%s818_s9 + $0x50] sm:$0xff] (%p781_p4) }
  0xe8   : > { %540 = vst [vmem:[%s818_s9 + $0x70] sm:$0xff] %v522_v43  ;;  %v524_v47 = vadd.f32 %v523_v45, %v184_v19  ;;  %v582_v57 = vld [vmem:[%s818_s9 + $0x48] sm:$0xff] (%p781_p4)  ;;  %585 = vst [vmem:[%s551_s14 + $0x90] sm:$0xff] (%p781_p4), %v584_v58 }
  0xe9   : > { %539 = vst [vmem:[%s818_s9 + $0x68] sm:$0xff] %v447_v46  ;;  %v586_v59 = vld [vmem:[%s818_s9 + $0x58] sm:$0xff] (%p781_p4)  ;;  %583 = vst [vmem:[%s551_s14 + $0x88] sm:$0xff] (%p781_p4), %v582_v57 }
  0xea   : > { %541 = vst [vmem:[%s818_s9 + $0x78] sm:$0xff] %v524_v47  ;;  %v572_v52 = vld [vmem:[%s818_s9 + $0x20] sm:$0xff] (%p781_p4)  ;;  %587 = vst [vmem:[%s551_s14 + $0x98] sm:$0xff] (%p781_p4), %v586_v59 }
  0xeb   : > { %573 = vst [vmem:[%s551_s14 + $0x20] sm:$0xff] %v572_v52  ;;  %v576_v54 = vld [vmem:[%s818_s9 + $0x30] sm:$0xff] }
  0xec   : > { %v574_v53 = vld [vmem:[%s818_s9 + $0x28] sm:$0xff]  ;;  %577 = vst [vmem:[%s551_s14 + $0x30] sm:$0xff] %v576_v54 }
  0xed   : > { %575 = vst [vmem:[%s551_s14 + $0x28] sm:$0xff] %v574_v53  ;;  %v578_v55 = vld [vmem:[%s818_s9 + $0x38] sm:$0xff] }
  0xee   : > { %579 = vst [vmem:[%s551_s14 + $0x38] sm:$0xff] %v578_v55  ;;  %v588_v60 = vld [vmem:[%s818_s9 + $0x60] sm:$0xff] }
  0xef   : > { %v592_v62 = vld [vmem:[%s818_s9 + $0x70] sm:$0xff]  ;;  %589 = vst [vmem:[%s551_s14 + $0xa0] sm:$0xff] %v588_v60 }
  0xf0   : > { %v590_v61 = vld [vmem:[%s818_s9 + $0x68] sm:$0xff]  ;;  %593 = vst [vmem:[%s551_s14 + $0xb0] sm:$0xff] %v592_v62 }
  0xf1   : > { %591 = vst [vmem:[%s551_s14 + $0xa8] sm:$0xff] %v590_v61  ;;  %v594_v63 = vld [vmem:[%s818_s9 + $0x78] sm:$0xff] }
  0xf2   : > { %595 = vst [vmem:[%s551_s14 + $0xb8] sm:$0xff] %v594_v63 }
  0xf3 PF: > { %p10_p8 = scmp.ge.s32.totalorder %s771_s16, 4   ;;  %s873_s12 = smov %s728_s13 }
  0xf4   : > { %s874_s13 = smov %s779_s19  ;;  %s875_s14 = smov %s771_s16 }
  0xf5   :  { %12 = sbr.rel (!%p10_p8) target bundleno = 2 (0x2), region = 85 }

// kernel: fpse_forward.23
= control target key start
LH: loop header
LB: loop body
LE: loop exit
PB: predicated region body
PF: predicated region fallthrough
CT: control target
= control target key end

     0   :  { %v451_v3 = vmov 0   ;;  %vm77_vm0 = vcmask 261120   ;;  %v452_v46 = vmov 0.0   ;;  %vm453_vm1 = vmmov 0   ;;  %s651_s0 = inlined_call_operand.vmem [shape: f32[288,128], index: 0, kind: input, shape index: {}]   ;;  %s652_s2 = inlined_call_operand.vmem [shape: f32[16,288], index: 2, kind: input, shape index: {}]   ;;  %s653_s3 = inlined_call_operand.vmem [shape: f32[16,1], index: 3, kind: input, shape index: {}]   ;;  %s654_s5 = inlined_call_operand.vmem [shape: f32[17,1], index: 5, kind: input, shape index: {}]   ;;  %s655_s4 = inlined_call_operand.vmem [shape: f32[17,16], index: 4, kind: input, shape index: {}]   ;;  %s656_s1 = inlined_call_operand.vmem [shape: f32[16,128], index: 1, kind: input, shape index: {}]   ;;  %s657_s6 = inlined_call_operand.vmem [shape: f32[1,128], index: 6, kind: output, shape index: {}]  }
   0x1   :  { %v60_v0 = vld [vmem:[%s651_s0 + $0xf8] sm:$0xff]  ;;  %v59_v2 = vld [vmem:[%s651_s0 + $0xf0] sm:$0xff]  ;;  %449 = vset.pattern.permute.xlu0 %v451_v3  ;;  %450 = vset.pattern.permute.xlu1 %v451_v3  ;;  %v58_v5 = vld [vmem:[%s651_s0 + $0xe8] sm:$0xff]  ;;  %vm261_vm4 = vcmask 130048  }
   0x2   :  { %v44_v1 = vld [vmem:[%s651_s0 + $0x78] sm:$0xff]  ;;  %373 = vmatprep.subr.mxu0 %v60_v0  ;;  %v43_v4 = vld [vmem:[%s651_s0 + $0x70] sm:$0xff]  ;;  %v42_v6 = vld [vmem:[%s651_s0 + $0x68] sm:$0xff] }
   0x3   :  { %374 = vmatpush3.msra.mxu0 %v44_v1  ;;  %v57_v7 = vld [vmem:[%s651_s0 + $0xe0] sm:$0xff]  ;;  %v56_v9 = vld [vmem:[%s651_s0 + $0xd8] sm:$0xff]  ;;  %v55_v11 = vld [vmem:[%s651_s0 + $0xd0] sm:$0xff] }
   0x4   :  { %375 = vmatprep.subr.mxu0 %v59_v2  ;;  %v41_v8 = vld [vmem:[%s651_s0 + $0x60] sm:$0xff]  ;;  %v40_v10 = vld [vmem:[%s651_s0 + $0x58] sm:$0xff]  ;;  %v39_v12 = vld [vmem:[%s651_s0 + $0x50] sm:$0xff] }
   0x5   :  { %376 = vmatpush3.msra.mxu0 %v43_v4  ;;  %v64_v13 = vld [vmem:[%s651_s0 + $0x118] sm:$0xff]  ;;  %v54_v14 = vld [vmem:[%s651_s0 + $0xc8] sm:$0xff]  ;;  %v63_v15 = vld [vmem:[%s651_s0 + $0x110] sm:$0xff] }
   0x6   :  { %377 = vmatprep.subr.mxu0 %v58_v5  ;;  %422 = vmatprep.subr.mxu1 %v64_v13  ;;  %v38_v16 = vld [vmem:[%s651_s0 + $0x48] sm:$0xff]  ;;  %v53_v18 = vld [vmem:[%s651_s0 + $0xc0] sm:$0xff]  ;;  %v52_v21 = vld [vmem:[%s651_s0 + $0xb8] sm:$0xff] }
   0x7   :  { %378 = vmatpush3.msra.mxu0 %v42_v6  ;;  %423 = vmatpush3.msra.mxu1 %v64_v13  ;;  %v24_v17 = vld [vmem:[%s652_s2 + $0x8] sm:$0xff]  ;;  %v37_v20 = vld [vmem:[%s651_s0 + $0x40] sm:$0xff]  ;;  %v36_v23 = vld [vmem:[%s651_s0 + $0x38] sm:$0xff] }
   0x8   :  { %379 = vmatprep.subr.mxu0 %v57_v7  ;;  %424 = vmatprep.subr.mxu1 %v63_v15  ;;  %v62_v19 = vld [vmem:[%s651_s0 + $0x108] sm:$0xff]  ;;  %v61_v22 = vld [vmem:[%s651_s0 + $0x100] sm:$0xff]  ;;  %v51_v24 = vld [vmem:[%s651_s0 + $0xb0] sm:$0xff] }
   0x9   :  { %380 = vmatpush3.msra.mxu0 %v41_v8  ;;  %148 = vmatprep.mubr.f32.mxu0 %v24_v17  ;;  %v25_v25 = vld [vmem:[%s652_s2 + $0x10] sm:$0xff]  ;;  %v28_v27 = vld [vmem:[%s652_s2 + $0x28] sm:$0xff]  ;;  %v49_v31 = vld [vmem:[%s651_s0 + $0xa0] sm:$0xff] }
   0xa   :  { %381 = vmatprep.subr.mxu0 %v56_v9  ;;  %425 = vmatpush3.msra.mxu1 %v63_v15  ;;  %v35_v26 = vld [vmem:[%s651_s0 + $0x30] sm:$0xff]  ;;  %v50_v28 = vld [vmem:[%s651_s0 + $0xa8] sm:$0xff]  ;;  %v33_v32 = vld [vmem:[%s651_s0 + $0x20] sm:$0xff] }
   0xb   :  { %382 = vmatpush3.msra.mxu0 %v40_v10  ;;  %426 = vmatprep.subr.mxu1 %v62_v19  ;;  %v66_v29 = vld [vmem:[%s653_s3 + $0x8] sm:$0xff]  ;;  %v48_v33 = vld [vmem:[%s651_s0 + $0x98] sm:$0xff]  ;;  %v65_v34 = vld [vmem:[%s653_s3] sm:$0xff] }
   0xc   :  { %383 = vmatprep.subr.mxu0 %v55_v11  ;;  %427 = vmatpush3.msra.mxu1 %v62_v19  ;;  %v34_v30 = vld [vmem:[%s651_s0 + $0x28] sm:$0xff]  ;;  %v32_v35 = vld [vmem:[%s651_s0 + $0x18] sm:$0xff]  ;;  %v47_v36 = vld [vmem:[%s651_s0 + $0x90] sm:$0xff] }
   0xd   :  { %384 = vmatpush3.msra.mxu0 %v39_v12  ;;  %428 = vmatprep.subr.mxu1 %v61_v22  ;;  %v31_v37 = vld [vmem:[%s651_s0 + $0x10] sm:$0xff]  ;;  %v46_v38 = vld [vmem:[%s651_s0 + $0x88] sm:$0xff]  ;;  %v45_v41 = vld [vmem:[%s651_s0 + $0x80] sm:$0xff] }
   0xe   :  { %385 = vmatprep.subr.mxu0 %v54_v14  ;;  %429 = vmatpush3.msra.mxu1 %v61_v22  ;;  %v245_v39 = vld [vmem:[%s654_s5 + $0x10] sm:$0x1]  ;;  %v30_v40 = vld [vmem:[%s651_s0 + $0x8] sm:$0xff]  ;;  %v29_v42 = vld [vmem:[%s651_s0] sm:$0xff] }
   0xf   :  { %386 = vmatpush3.msra.mxu0 %v38_v16  ;;  %430 = vmatprep.mubr.msk.f32.mxu1 %vm77_vm0, %v25_v25  ;;  %v23_v43 = vld [vmem:[%s652_s2] sm:$0xff]  ;;  %v26_v45 = vld [vmem:[%s652_s2 + $0x18] sm:$0xff]  ;;  %v244_v48 = vld [vmem:[%s654_s5 + $0x8] sm:$0xff] }
  0x10   :  { %387 = vmatprep.subr.mxu0 %v53_v18  ;;  %431 = vmatmul.mubr.msk.f32.vlgmr.msra.gmra.mxu1 %vm77_vm0, %v28_v27  ;;  %v27_v44 = vld [vmem:[%s652_s2 + $0x20] sm:$0xff]  ;;  %v241_v4 = vld [vmem:[%s655_s4 + $0x8] sm:$0xff]  ;;  %v242_v5 = vld [vmem:[%s655_s4 + $0x10] sm:$0x1] }
  0x11   :  { %388 = vmatpush3.msra.mxu0 %v37_v20  ;;  %74 = vperm.xlu0 %449, %v66_v29   ;;  %v243_v47 = vld [vmem:[%s654_s5] sm:$0xff]  ;;  %v352_v13 = vld [vmem:[%s656_s1 + $0x8] sm:$0xff] }
  0x12   :  { %389 = vmatprep.subr.mxu0 %v52_v21  ;;  %433 = vmatprep.subr.mxu1 %v452_v46  ;;  %v240_v2 = vld [vmem:[%s655_s4] sm:$0xff] }
  0x13   :  { %390 = vmatpush3.msra.mxu0 %v36_v23  ;;  %437 = vmatprep.mubr.msk.f32.mxu1 %vm453_vm1, %v452_v46  ;;  %v351_v10 = vld [vmem:[%s656_s1] sm:$0xff] }
  0x14   :  { %391 = vmatprep.subr.mxu0 %v51_v24  ;;  %248 = vperm.xlu1 %450, %v243_v47  }
  0x15   :  { %392 = vmatpush3.msra.mxu0 %v35_v26  ;;  %69 = vperm.xlu0 %449, %v65_v34  }
  0x16   :  { %393 = vmatprep.subr.mxu0 %v50_v28 }
  0x17   :  { %394 = vmatpush3.msra.mxu0 %v34_v30 }
  0x18   :  { %395 = vmatprep.subr.mxu0 %v49_v31  ;;  %253 = vperm.xlu1 %450, %v244_v48  }
  0x19   :  { %396 = vmatpush3.msra.mxu0 %v33_v32  ;;  %258 = vperm.xlu0 %449, %v245_v39  }
  0x1a   :  { %397 = vmatprep.subr.mxu0 %v48_v33 }
  0x1b   :  { %398 = vmatpush3.msra.mxu0 %v32_v35 }
  0x1c   :  { %399 = vmatprep.subr.mxu0 %v47_v36 }
  0x1d   :  { %400 = vmatpush3.msra.mxu0 %v31_v37 }
  0x1e   :  { %401 = vmatprep.subr.mxu0 %v46_v38 }
  0x1f   :  { %402 = vmatpush3.msra.mxu0 %v30_v40 }
  0x20   :  { %403 = vmatprep.subr.mxu0 %v45_v41 }
  0x21   :  { %404 = vmatpush3.msra.mxu0 %v29_v42 }
  0x22   :  { %149 = vmatmul.mubr.f32.vlgmr.msra.gmra.mxu0 %v23_v43 }
  0x23   :  { %153 = vmatprep.mubr.f32.mxu0 %v27_v44 }
  0x26   :  { %154 = vmatmul.mubr.f32.gmra.mxu0 %v26_v45 }
  0x8c   :  { %v75_v49 = vpop.permute.xlu0 %74 }
  0x8f   :  { %v249_v6 = vpop.permute.xlu1 %248 }
  0x90   :  { %v70_v54 = vpop.permute.xlu0 %69 }
  0x93   :  { %v254_v11 = vpop.permute.xlu1 %253 }
  0x94   :  { %v259_v26 = vpop.permute.xlu0 %258 }
  0xd0   :  { %v432_v52 = vpop.f32.mrf.mxu1 }
  0xd2   :  { %v225_v58 = vpop.f32.mrf.mxu1 }
  0xe2   :  { %v405_v50 = vpop.f32.mrf.mxu0 }
  0xe4   :  { %v406_v51 = vpop.f32.mrf.mxu0 }
  0xe5   :  { %v407_v53 = vadd.f32 %v406_v51, %v405_v50 }
  0xe6   :  { %v408_v55 = vpop.f32.mrf.mxu0 }
  0xe7   :  { %v151_v56 = vadd.f32 %v407_v53, %v70_v54 }
  0xe8   :  { %v409_v57 = vpop.f32.mrf.mxu0 }
  0xe9   :  { %v410_v59 = vadd.f32 %v409_v57, %v408_v55  ;;  %v226_v61 = vadd.f32 %v225_v58, %v151_v56 }
  0xeb   :  { %v156_v60 = vadd.f32 %v410_v59, %v75_v49  ;;  %v236_v63 = vmul.f32 0.2, %v226_v61  ;;  %vm234_vm3 = vcmp.ge.f32.partialorder %v226_v61, 0.0 }
  0xed   :  { %v231_v62 = vadd.f32 %v432_v52, %v156_v60  ;;  %v238_v3 = vsel %vm234_vm3, %v226_v61, %v236_v63 }
  0xef   :  { %vm235_vm2 = vcmp.ge.f32.partialorder %v231_v62, 0.0  ;;  %v237_v0 = vmul.f32 0.2, %v231_v62 }
  0xf1   :  { %v239_v1 = vsel %vm235_vm2, %v231_v62, %v237_v0 }
  0xf2   :  { %434 = vmatpush3.msra.mxu1 %v239_v1 }
  0xf3   :  { %435 = vmatprep.subr.mxu1 %v452_v46 }
  0xf4   :  { %436 = vmatpush3.msra.mxu1 %v238_v3 }
  0xf5   :  { %438 = vmatmul.mubr.msk.f32.vlgmr.msra.gmra.mxu1 %vm261_vm4, %v240_v2 }
  0xf6   :  { %440 = vmatprep.mubr.msk.f32.mxu1 %vm453_vm1, %v452_v46 }
  0xf9   :  { %441 = vmatmul.mubr.msk.f32.gmra.mxu1 %vm261_vm4, %v241_v4 }
  0xfa   :  { %443 = vmatprep.mubr.msk.f32.mxu1 %vm453_vm1, %v452_v46 }
  0xfd   :  { %444 = vmatmul.mubr.msk.f32.gmra.mxu1 %vm261_vm4, %v242_v5 }
 0x1b5   :  { %v337_v7 = vpop.f32.mrf.mxu1 }
 0x1b6   :  { %v338_v9 = vadd.f32 %v337_v7, %v249_v6 }
 0x1b7   :  { %v439_v8 = vpop.f32.mrf.mxu1 }
 0x1b8   :  { %v353_v16 = vmul.f32 %v351_v10, %v338_v9 }
 0x1b9   :  { %v342_v12 = vpop.f32.mrf.mxu1 }
 0x1ba   :  { %v343_v14 = vadd.f32 %v342_v12, %v254_v11 }
 0x1bb   :  { %v442_v15 = vpop.f32.mrf.mxu1 }
 0x1bc   :  { %v354_v17 = vmul.f32 %v352_v13, %v343_v14 }
 0x1bd   :  { %v347_v18 = vpop.f32.mrf.mxu1 }
 0x1be   :  { %v355_v19 = vadd.f32 %v354_v17, %v353_v16  ;;  %v348_v27 = vadd.f32 %v347_v18, %v259_v26 }
 0x1bf   :  { %v445_v20 = vpop.f32.mrf.mxu1 }
 0x1c0   :  { %v356_v21 = vrot.slane %v355_v19, 4 }
 0x1c2   :  { %v357_v22 = vadd.f32 %v356_v21, %v355_v19 }
 0x1c4   :  { %v358_v23 = vrot.slane %v357_v22, 2 }
 0x1c6   :  { %v359_v24 = vadd.f32 %v358_v23, %v357_v22 }
 0x1c8   :  { %v360_v25 = vrot.slane %v359_v24, 1 }
 0x1ca   :  { %v361_v28 = vadd.f32 %v360_v25, %v359_v24 }
 0x1cc   :  { %v362_v29 = vadd.f32 %v361_v28, %v348_v27 }
 0x1ce   :  { %363 = vst [vmem:[%s657_s6] sm:$0x1] %v362_v29 }

// kernel: fpse_forward.24
= control target key start
LH: loop header
LB: loop body
LE: loop exit
PB: predicated region body
PF: predicated region fallthrough
CT: control target
= control target key end

     0   :  { %v454_v3 = vmov 0   ;;  %vm77_vm0 = vcmask 261120   ;;  %v455_v46 = vmov 0.0   ;;  %vm456_vm1 = vmmov 0   ;;  %s658_s0 = inlined_call_operand.vmem [shape: f32[288,32], index: 0, kind: input, shape index: {}]   ;;  %s659_s2 = inlined_call_operand.vmem [shape: f32[16,288], index: 2, kind: input, shape index: {}]   ;;  %s660_s3 = inlined_call_operand.vmem [shape: f32[16,1], index: 3, kind: input, shape index: {}]   ;;  %s661_s5 = inlined_call_operand.vmem [shape: f32[17,1], index: 5, kind: input, shape index: {}]   ;;  %s662_s4 = inlined_call_operand.vmem [shape: f32[17,16], index: 4, kind: input, shape index: {}]   ;;  %s663_s1 = inlined_call_operand.vmem [shape: f32[16,32], index: 1, kind: input, shape index: {}]   ;;  %s664_s6 = inlined_call_operand.vmem [shape: f32[1,32], index: 6, kind: output, shape index: {}]  }
   0x1   :  { %v60_v0 = vld [vmem:[%s658_s0 + $0xf8] sm:$0xff]  ;;  %v59_v2 = vld [vmem:[%s658_s0 + $0xf0] sm:$0xff]  ;;  %452 = vset.pattern.permute.xlu0 %v454_v3  ;;  %453 = vset.pattern.permute.xlu1 %v454_v3  ;;  %v58_v5 = vld [vmem:[%s658_s0 + $0xe8] sm:$0xff]  ;;  %vm261_vm4 = vcmask 130048   ;;  %vm365_vm5 = vcmask 253952  }
   0x2   :  { %v44_v1 = vld [vmem:[%s658_s0 + $0x78] sm:$0xff]  ;;  %376 = vmatprep.subr.mxu0 %v60_v0  ;;  %v43_v4 = vld [vmem:[%s658_s0 + $0x70] sm:$0xff]  ;;  %v42_v6 = vld [vmem:[%s658_s0 + $0x68] sm:$0xff] }
   0x3   :  { %377 = vmatpush3.msra.mxu0 %v44_v1  ;;  %v57_v7 = vld [vmem:[%s658_s0 + $0xe0] sm:$0xff]  ;;  %v56_v9 = vld [vmem:[%s658_s0 + $0xd8] sm:$0xff]  ;;  %v55_v11 = vld [vmem:[%s658_s0 + $0xd0] sm:$0xff] }
   0x4   :  { %378 = vmatprep.subr.mxu0 %v59_v2  ;;  %v41_v8 = vld [vmem:[%s658_s0 + $0x60] sm:$0xff]  ;;  %v40_v10 = vld [vmem:[%s658_s0 + $0x58] sm:$0xff]  ;;  %v39_v12 = vld [vmem:[%s658_s0 + $0x50] sm:$0xff] }
   0x5   :  { %379 = vmatpush3.msra.mxu0 %v43_v4  ;;  %v64_v13 = vld [vmem:[%s658_s0 + $0x118] sm:$0xff]  ;;  %v54_v14 = vld [vmem:[%s658_s0 + $0xc8] sm:$0xff]  ;;  %v63_v15 = vld [vmem:[%s658_s0 + $0x110] sm:$0xff] }
   0x6   :  { %380 = vmatprep.subr.mxu0 %v58_v5  ;;  %425 = vmatprep.subr.mxu1 %v64_v13  ;;  %v38_v16 = vld [vmem:[%s658_s0 + $0x48] sm:$0xff]  ;;  %v53_v18 = vld [vmem:[%s658_s0 + $0xc0] sm:$0xff]  ;;  %v52_v21 = vld [vmem:[%s658_s0 + $0xb8] sm:$0xff] }
   0x7   :  { %381 = vmatpush3.msra.mxu0 %v42_v6  ;;  %426 = vmatpush3.msra.mxu1 %v64_v13  ;;  %v24_v17 = vld [vmem:[%s659_s2 + $0x8] sm:$0xff]  ;;  %v37_v20 = vld [vmem:[%s658_s0 + $0x40] sm:$0xff]  ;;  %v36_v23 = vld [vmem:[%s658_s0 + $0x38] sm:$0xff] }
   0x8   :  { %382 = vmatprep.subr.mxu0 %v57_v7  ;;  %427 = vmatprep.subr.mxu1 %v63_v15  ;;  %v62_v19 = vld [vmem:[%s658_s0 + $0x108] sm:$0xff]  ;;  %v61_v22 = vld [vmem:[%s658_s0 + $0x100] sm:$0xff]  ;;  %v51_v24 = vld [vmem:[%s658_s0 + $0xb0] sm:$0xff] }
   0x9   :  { %383 = vmatpush3.msra.mxu0 %v41_v8  ;;  %148 = vmatprep.mubr.f32.mxu0 %v24_v17  ;;  %v25_v25 = vld [vmem:[%s659_s2 + $0x10] sm:$0xff]  ;;  %v28_v27 = vld [vmem:[%s659_s2 + $0x28] sm:$0xff]  ;;  %v49_v31 = vld [vmem:[%s658_s0 + $0xa0] sm:$0xff] }
   0xa   :  { %384 = vmatprep.subr.mxu0 %v56_v9  ;;  %428 = vmatpush3.msra.mxu1 %v63_v15  ;;  %v35_v26 = vld [vmem:[%s658_s0 + $0x30] sm:$0xff]  ;;  %v50_v28 = vld [vmem:[%s658_s0 + $0xa8] sm:$0xff]  ;;  %v33_v32 = vld [vmem:[%s658_s0 + $0x20] sm:$0xff] }
   0xb   :  { %385 = vmatpush3.msra.mxu0 %v40_v10  ;;  %429 = vmatprep.subr.mxu1 %v62_v19  ;;  %v66_v29 = vld [vmem:[%s660_s3 + $0x8] sm:$0xff]  ;;  %v48_v33 = vld [vmem:[%s658_s0 + $0x98] sm:$0xff]  ;;  %v65_v34 = vld [vmem:[%s660_s3] sm:$0xff] }
   0xc   :  { %386 = vmatprep.subr.mxu0 %v55_v11  ;;  %430 = vmatpush3.msra.mxu1 %v62_v19  ;;  %v34_v30 = vld [vmem:[%s658_s0 + $0x28] sm:$0xff]  ;;  %v32_v35 = vld [vmem:[%s658_s0 + $0x18] sm:$0xff]  ;;  %v47_v36 = vld [vmem:[%s658_s0 + $0x90] sm:$0xff] }
   0xd   :  { %387 = vmatpush3.msra.mxu0 %v39_v12  ;;  %431 = vmatprep.subr.mxu1 %v61_v22  ;;  %v31_v37 = vld [vmem:[%s658_s0 + $0x10] sm:$0xff]  ;;  %v46_v38 = vld [vmem:[%s658_s0 + $0x88] sm:$0xff]  ;;  %v45_v41 = vld [vmem:[%s658_s0 + $0x80] sm:$0xff] }
   0xe   :  { %388 = vmatprep.subr.mxu0 %v54_v14  ;;  %432 = vmatpush3.msra.mxu1 %v61_v22  ;;  %v245_v39 = vld [vmem:[%s661_s5 + $0x10] sm:$0x1]  ;;  %v30_v40 = vld [vmem:[%s658_s0 + $0x8] sm:$0xff]  ;;  %v29_v42 = vld [vmem:[%s658_s0] sm:$0xff] }
   0xf   :  { %389 = vmatpush3.msra.mxu0 %v38_v16  ;;  %433 = vmatprep.mubr.msk.f32.mxu1 %vm77_vm0, %v25_v25  ;;  %v23_v43 = vld [vmem:[%s659_s2] sm:$0xff]  ;;  %v26_v45 = vld [vmem:[%s659_s2 + $0x18] sm:$0xff]  ;;  %v244_v48 = vld [vmem:[%s661_s5 + $0x8] sm:$0xff] }
  0x10   :  { %390 = vmatprep.subr.mxu0 %v53_v18  ;;  %434 = vmatmul.mubr.msk.f32.vlgmr.msra.gmra.mxu1 %vm77_vm0, %v28_v27  ;;  %v27_v44 = vld [vmem:[%s659_s2 + $0x20] sm:$0xff]  ;;  %v241_v4 = vld [vmem:[%s662_s4 + $0x8] sm:$0xff]  ;;  %v242_v5 = vld [vmem:[%s662_s4 + $0x10] sm:$0x1] }
  0x11   :  { %391 = vmatpush3.msra.mxu0 %v37_v20  ;;  %74 = vperm.xlu0 %452, %v66_v29   ;;  %v243_v47 = vld [vmem:[%s661_s5] sm:$0xff]  ;;  %v352_v13 = vld [vmem:[%s663_s1 + $0x8] sm:$0xff] }
  0x12   :  { %392 = vmatprep.subr.mxu0 %v52_v21  ;;  %436 = vmatprep.subr.mxu1 %v455_v46  ;;  %v240_v2 = vld [vmem:[%s662_s4] sm:$0xff] }
  0x13   :  { %393 = vmatpush3.msra.mxu0 %v36_v23  ;;  %440 = vmatprep.mubr.msk.f32.mxu1 %vm456_vm1, %v455_v46  ;;  %v351_v9 = vld [vmem:[%s663_s1] sm:$0xff] }
  0x14   :  { %394 = vmatprep.subr.mxu0 %v51_v24  ;;  %248 = vperm.xlu1 %453, %v243_v47  }
  0x15   :  { %395 = vmatpush3.msra.mxu0 %v35_v26  ;;  %69 = vperm.xlu0 %452, %v65_v34  }
  0x16   :  { %396 = vmatprep.subr.mxu0 %v50_v28 }
  0x17   :  { %397 = vmatpush3.msra.mxu0 %v34_v30 }
  0x18   :  { %398 = vmatprep.subr.mxu0 %v49_v31  ;;  %253 = vperm.xlu1 %453, %v244_v48  }
  0x19   :  { %399 = vmatpush3.msra.mxu0 %v33_v32  ;;  %258 = vperm.xlu0 %452, %v245_v39  }
  0x1a   :  { %400 = vmatprep.subr.mxu0 %v48_v33 }
  0x1b   :  { %401 = vmatpush3.msra.mxu0 %v32_v35 }
  0x1c   :  { %402 = vmatprep.subr.mxu0 %v47_v36 }
  0x1d   :  { %403 = vmatpush3.msra.mxu0 %v31_v37 }
  0x1e   :  { %404 = vmatprep.subr.mxu0 %v46_v38 }
  0x1f   :  { %405 = vmatpush3.msra.mxu0 %v30_v40 }
  0x20   :  { %406 = vmatprep.subr.mxu0 %v45_v41 }
  0x21   :  { %407 = vmatpush3.msra.mxu0 %v29_v42 }
  0x22   :  { %149 = vmatmul.mubr.f32.vlgmr.msra.gmra.mxu0 %v23_v43 }
  0x23   :  { %153 = vmatprep.mubr.f32.mxu0 %v27_v44 }
  0x26   :  { %154 = vmatmul.mubr.f32.gmra.mxu0 %v26_v45 }
  0x8c   :  { %v75_v49 = vpop.permute.xlu0 %74 }
  0x8f   :  { %v249_v6 = vpop.permute.xlu1 %248 }
  0x90   :  { %v70_v54 = vpop.permute.xlu0 %69 }
  0x93   :  { %v254_v11 = vpop.permute.xlu1 %253 }
  0x94   :  { %v259_v28 = vpop.permute.xlu0 %258 }
  0xd0   :  { %v435_v52 = vpop.f32.mrf.mxu1 }
  0xd2   :  { %v225_v58 = vpop.f32.mrf.mxu1 }
  0xe2   :  { %v408_v50 = vpop.f32.mrf.mxu0 }
  0xe4   :  { %v409_v51 = vpop.f32.mrf.mxu0 }
  0xe5   :  { %v410_v53 = vadd.f32 %v409_v51, %v408_v50 }
  0xe6   :  { %v411_v55 = vpop.f32.mrf.mxu0 }
  0xe7   :  { %v151_v56 = vadd.f32 %v410_v53, %v70_v54 }
  0xe8   :  { %v412_v57 = vpop.f32.mrf.mxu0 }
  0xe9   :  { %v413_v59 = vadd.f32 %v412_v57, %v411_v55  ;;  %v226_v61 = vadd.f32 %v225_v58, %v151_v56 }
  0xeb   :  { %v156_v60 = vadd.f32 %v413_v59, %v75_v49  ;;  %v236_v63 = vmul.f32 0.2, %v226_v61  ;;  %vm234_vm3 = vcmp.ge.f32.partialorder %v226_v61, 0.0 }
  0xed   :  { %v231_v62 = vadd.f32 %v435_v52, %v156_v60  ;;  %v238_v3 = vsel %vm234_vm3, %v226_v61, %v236_v63 }
  0xef   :  { %vm235_vm2 = vcmp.ge.f32.partialorder %v231_v62, 0.0  ;;  %v237_v0 = vmul.f32 0.2, %v231_v62 }
  0xf1   :  { %v239_v1 = vsel %vm235_vm2, %v231_v62, %v237_v0 }
  0xf2   :  { %437 = vmatpush3.msra.mxu1 %v239_v1 }
  0xf3   :  { %438 = vmatprep.subr.mxu1 %v455_v46 }
  0xf4   :  { %439 = vmatpush3.msra.mxu1 %v238_v3 }
  0xf5   :  { %441 = vmatmul.mubr.msk.f32.vlgmr.msra.gmra.mxu1 %vm261_vm4, %v240_v2 }
  0xf6   :  { %443 = vmatprep.mubr.msk.f32.mxu1 %vm456_vm1, %v455_v46 }
  0xf9   :  { %444 = vmatmul.mubr.msk.f32.gmra.mxu1 %vm261_vm4, %v241_v4 }
  0xfa   :  { %446 = vmatprep.mubr.msk.f32.mxu1 %vm456_vm1, %v455_v46 }
  0xfd   :  { %447 = vmatmul.mubr.msk.f32.gmra.mxu1 %vm261_vm4, %v242_v5 }
 0x1b5   :  { %v337_v7 = vpop.f32.mrf.mxu1 }
 0x1b6   :  { %v338_v8 = vadd.f32 %v337_v7, %v249_v6 }
 0x1b7   :  { %v442_v10 = vpop.f32.mrf.mxu1 }
 0x1b8   :  { %v353_v14 = vmul.f32 %v351_v9, %v338_v8 }
 0x1b9   :  { %v342_v12 = vpop.f32.mrf.mxu1 }
 0x1ba   :  { %v343_v15 = vadd.f32 %v342_v12, %v254_v11  ;;  %v355_v19 = vsel %vm77_vm0, %v353_v14, 0.0 }
 0x1bb   :  { %v445_v16 = vpop.f32.mrf.mxu1 }
 0x1bc   :  { %v354_v17 = vmul.f32 %v352_v13, %v343_v15 }
 0x1bd   :  { %v347_v18 = vpop.f32.mrf.mxu1 }
 0x1be   :  { %v356_v20 = vsel %vm77_vm0, %v354_v17, 0.0  ;;  %v348_v29 = vadd.f32 %v347_v18, %v259_v28 }
 0x1bf   :  { %v357_v21 = vadd.f32 %v356_v20, %v355_v19  ;;  %v448_v22 = vpop.f32.mrf.mxu1 }
 0x1c1   :  { %v358_v23 = vrot.slane %v357_v21, 4 }
 0x1c3   :  { %v359_v24 = vadd.f32 %v358_v23, %v357_v21 }
 0x1c5   :  { %v360_v25 = vrot.slane %v359_v24, 2 }
 0x1c7   :  { %v361_v26 = vadd.f32 %v360_v25, %v359_v24 }
 0x1c9   :  { %v362_v27 = vrot.slane %v361_v26, 1 }
 0x1cb   :  { %v363_v30 = vadd.f32 %v362_v27, %v361_v26 }
 0x1cd   :  { %v364_v31 = vadd.f32 %v363_v30, %v348_v29 }
 0x1cf   :  { %366 = vst.msk [vmem:[%s664_s6] sm:$0x1] %vm365_vm5, %v364_v31 }

// kernel: fpse_forward.25
= control target key start
LH: loop header
LB: loop body
LE: loop exit
PB: predicated region body
PF: predicated region fallthrough
CT: control target
= control target key end

     0   :  { %v455_v3 = vmov 0   ;;  %vm77_vm0 = vcmask 261120   ;;  %v456_v46 = vmov 0.0   ;;  %vm457_vm1 = vmmov 0   ;;  %s655_s0 = inlined_call_operand.vmem [shape: f32[288,8], index: 0, kind: input, shape index: {}]   ;;  %s656_s2 = inlined_call_operand.vmem [shape: f32[16,288], index: 2, kind: input, shape index: {}]   ;;  %s657_s3 = inlined_call_operand.vmem [shape: f32[16,1], index: 3, kind: input, shape index: {}]   ;;  %s658_s5 = inlined_call_operand.vmem [shape: f32[17,1], index: 5, kind: input, shape index: {}]   ;;  %s659_s4 = inlined_call_operand.vmem [shape: f32[17,16], index: 4, kind: input, shape index: {}]   ;;  %s660_s1 = inlined_call_operand.vmem [shape: f32[16,8], index: 1, kind: input, shape index: {}]   ;;  %s661_s6 = inlined_call_operand.vmem [shape: f32[1,8], index: 6, kind: output, shape index: {}]  }
   0x1   :  { %v60_v0 = vld [vmem:[%s655_s0 + $0xf8] sm:$0xff]  ;;  %v59_v2 = vld [vmem:[%s655_s0 + $0xf0] sm:$0xff]  ;;  %453 = vset.pattern.permute.xlu0 %v455_v3  ;;  %454 = vset.pattern.permute.xlu1 %v455_v3  ;;  %v58_v5 = vld [vmem:[%s655_s0 + $0xe8] sm:$0xff]  ;;  %vm261_vm4 = vcmask 130048   ;;  %vm355_vm5 = vcmask 64512   ;;  %vm366_vm6 = vcmask 57344  }
   0x2   :  { %v44_v1 = vld [vmem:[%s655_s0 + $0x78] sm:$0xff]  ;;  %377 = vmatprep.subr.mxu0 %v60_v0  ;;  %v43_v4 = vld [vmem:[%s655_s0 + $0x70] sm:$0xff]  ;;  %v42_v6 = vld [vmem:[%s655_s0 + $0x68] sm:$0xff] }
   0x3   :  { %378 = vmatpush3.msra.mxu0 %v44_v1  ;;  %v57_v7 = vld [vmem:[%s655_s0 + $0xe0] sm:$0xff]  ;;  %v56_v9 = vld [vmem:[%s655_s0 + $0xd8] sm:$0xff]  ;;  %v55_v11 = vld [vmem:[%s655_s0 + $0xd0] sm:$0xff] }
   0x4   :  { %379 = vmatprep.subr.mxu0 %v59_v2  ;;  %v41_v8 = vld [vmem:[%s655_s0 + $0x60] sm:$0xff]  ;;  %v40_v10 = vld [vmem:[%s655_s0 + $0x58] sm:$0xff]  ;;  %v39_v12 = vld [vmem:[%s655_s0 + $0x50] sm:$0xff] }
   0x5   :  { %380 = vmatpush3.msra.mxu0 %v43_v4  ;;  %v64_v13 = vld [vmem:[%s655_s0 + $0x118] sm:$0xff]  ;;  %v54_v14 = vld [vmem:[%s655_s0 + $0xc8] sm:$0xff]  ;;  %v63_v15 = vld [vmem:[%s655_s0 + $0x110] sm:$0xff] }
   0x6   :  { %381 = vmatprep.subr.mxu0 %v58_v5  ;;  %426 = vmatprep.subr.mxu1 %v64_v13  ;;  %v38_v16 = vld [vmem:[%s655_s0 + $0x48] sm:$0xff]  ;;  %v53_v18 = vld [vmem:[%s655_s0 + $0xc0] sm:$0xff]  ;;  %v52_v21 = vld [vmem:[%s655_s0 + $0xb8] sm:$0xff] }
   0x7   :  { %382 = vmatpush3.msra.mxu0 %v42_v6  ;;  %427 = vmatpush3.msra.mxu1 %v64_v13  ;;  %v24_v17 = vld [vmem:[%s656_s2 + $0x8] sm:$0xff]  ;;  %v37_v20 = vld [vmem:[%s655_s0 + $0x40] sm:$0xff]  ;;  %v36_v23 = vld [vmem:[%s655_s0 + $0x38] sm:$0xff] }
   0x8   :  { %383 = vmatprep.subr.mxu0 %v57_v7  ;;  %428 = vmatprep.subr.mxu1 %v63_v15  ;;  %v62_v19 = vld [vmem:[%s655_s0 + $0x108] sm:$0xff]  ;;  %v61_v22 = vld [vmem:[%s655_s0 + $0x100] sm:$0xff]  ;;  %v51_v24 = vld [vmem:[%s655_s0 + $0xb0] sm:$0xff] }
   0x9   :  { %384 = vmatpush3.msra.mxu0 %v41_v8  ;;  %148 = vmatprep.mubr.f32.mxu0 %v24_v17  ;;  %v25_v25 = vld [vmem:[%s656_s2 + $0x10] sm:$0xff]  ;;  %v28_v27 = vld [vmem:[%s656_s2 + $0x28] sm:$0xff]  ;;  %v49_v31 = vld [vmem:[%s655_s0 + $0xa0] sm:$0xff] }
   0xa   :  { %385 = vmatprep.subr.mxu0 %v56_v9  ;;  %429 = vmatpush3.msra.mxu1 %v63_v15  ;;  %v35_v26 = vld [vmem:[%s655_s0 + $0x30] sm:$0xff]  ;;  %v50_v28 = vld [vmem:[%s655_s0 + $0xa8] sm:$0xff]  ;;  %v33_v32 = vld [vmem:[%s655_s0 + $0x20] sm:$0xff] }
   0xb   :  { %386 = vmatpush3.msra.mxu0 %v40_v10  ;;  %430 = vmatprep.subr.mxu1 %v62_v19  ;;  %v66_v29 = vld [vmem:[%s657_s3 + $0x8] sm:$0xff]  ;;  %v48_v33 = vld [vmem:[%s655_s0 + $0x98] sm:$0xff]  ;;  %v65_v34 = vld [vmem:[%s657_s3] sm:$0xff] }
   0xc   :  { %387 = vmatprep.subr.mxu0 %v55_v11  ;;  %431 = vmatpush3.msra.mxu1 %v62_v19  ;;  %v34_v30 = vld [vmem:[%s655_s0 + $0x28] sm:$0xff]  ;;  %v32_v35 = vld [vmem:[%s655_s0 + $0x18] sm:$0xff]  ;;  %v47_v36 = vld [vmem:[%s655_s0 + $0x90] sm:$0xff] }
   0xd   :  { %388 = vmatpush3.msra.mxu0 %v39_v12  ;;  %432 = vmatprep.subr.mxu1 %v61_v22  ;;  %v31_v37 = vld [vmem:[%s655_s0 + $0x10] sm:$0xff]  ;;  %v46_v38 = vld [vmem:[%s655_s0 + $0x88] sm:$0xff]  ;;  %v45_v41 = vld [vmem:[%s655_s0 + $0x80] sm:$0xff] }
   0xe   :  { %389 = vmatprep.subr.mxu0 %v54_v14  ;;  %433 = vmatpush3.msra.mxu1 %v61_v22  ;;  %v245_v39 = vld [vmem:[%s658_s5 + $0x10] sm:$0x1]  ;;  %v30_v40 = vld [vmem:[%s655_s0 + $0x8] sm:$0xff]  ;;  %v29_v42 = vld [vmem:[%s655_s0] sm:$0xff] }
   0xf   :  { %390 = vmatpush3.msra.mxu0 %v38_v16  ;;  %434 = vmatprep.mubr.msk.f32.mxu1 %vm77_vm0, %v25_v25  ;;  %v23_v43 = vld [vmem:[%s656_s2] sm:$0xff]  ;;  %v26_v45 = vld [vmem:[%s656_s2 + $0x18] sm:$0xff]  ;;  %v244_v48 = vld [vmem:[%s658_s5 + $0x8] sm:$0xff] }
  0x10   :  { %391 = vmatprep.subr.mxu0 %v53_v18  ;;  %435 = vmatmul.mubr.msk.f32.vlgmr.msra.gmra.mxu1 %vm77_vm0, %v28_v27  ;;  %v27_v44 = vld [vmem:[%s656_s2 + $0x20] sm:$0xff]  ;;  %v241_v4 = vld [vmem:[%s659_s4 + $0x8] sm:$0xff]  ;;  %v242_v5 = vld [vmem:[%s659_s4 + $0x10] sm:$0x1] }
  0x11   :  { %392 = vmatpush3.msra.mxu0 %v37_v20  ;;  %74 = vperm.xlu0 %453, %v66_v29   ;;  %v243_v47 = vld [vmem:[%s658_s5] sm:$0xff]  ;;  %v352_v13 = vld [vmem:[%s660_s1 + $0x8] sm:$0xff] }
  0x12   :  { %393 = vmatprep.subr.mxu0 %v52_v21  ;;  %437 = vmatprep.subr.mxu1 %v456_v46  ;;  %v240_v2 = vld [vmem:[%s659_s4] sm:$0xff] }
  0x13   :  { %394 = vmatpush3.msra.mxu0 %v36_v23  ;;  %441 = vmatprep.mubr.msk.f32.mxu1 %vm457_vm1, %v456_v46  ;;  %v351_v9 = vld [vmem:[%s660_s1] sm:$0xff] }
  0x14   :  { %395 = vmatprep.subr.mxu0 %v51_v24  ;;  %248 = vperm.xlu1 %454, %v243_v47  }
  0x15   :  { %396 = vmatpush3.msra.mxu0 %v35_v26  ;;  %69 = vperm.xlu0 %453, %v65_v34  }
  0x16   :  { %397 = vmatprep.subr.mxu0 %v50_v28 }
  0x17   :  { %398 = vmatpush3.msra.mxu0 %v34_v30 }
  0x18   :  { %399 = vmatprep.subr.mxu0 %v49_v31  ;;  %253 = vperm.xlu1 %454, %v244_v48  }
  0x19   :  { %400 = vmatpush3.msra.mxu0 %v33_v32  ;;  %258 = vperm.xlu0 %453, %v245_v39  }
  0x1a   :  { %401 = vmatprep.subr.mxu0 %v48_v33 }
  0x1b   :  { %402 = vmatpush3.msra.mxu0 %v32_v35 }
  0x1c   :  { %403 = vmatprep.subr.mxu0 %v47_v36 }
  0x1d   :  { %404 = vmatpush3.msra.mxu0 %v31_v37 }
  0x1e   :  { %405 = vmatprep.subr.mxu0 %v46_v38 }
  0x1f   :  { %406 = vmatpush3.msra.mxu0 %v30_v40 }
  0x20   :  { %407 = vmatprep.subr.mxu0 %v45_v41 }
  0x21   :  { %408 = vmatpush3.msra.mxu0 %v29_v42 }
  0x22   :  { %149 = vmatmul.mubr.f32.vlgmr.msra.gmra.mxu0 %v23_v43 }
  0x23   :  { %153 = vmatprep.mubr.f32.mxu0 %v27_v44 }
  0x26   :  { %154 = vmatmul.mubr.f32.gmra.mxu0 %v26_v45 }
  0x8c   :  { %v75_v49 = vpop.permute.xlu0 %74 }
  0x8f   :  { %v249_v6 = vpop.permute.xlu1 %248 }
  0x90   :  { %v70_v54 = vpop.permute.xlu0 %69 }
  0x93   :  { %v254_v11 = vpop.permute.xlu1 %253 }
  0x94   :  { %v259_v28 = vpop.permute.xlu0 %258 }
  0xd0   :  { %v436_v52 = vpop.f32.mrf.mxu1 }
  0xd2   :  { %v225_v58 = vpop.f32.mrf.mxu1 }
  0xe2   :  { %v409_v50 = vpop.f32.mrf.mxu0 }
  0xe4   :  { %v410_v51 = vpop.f32.mrf.mxu0 }
  0xe5   :  { %v411_v53 = vadd.f32 %v410_v51, %v409_v50 }
  0xe6   :  { %v412_v55 = vpop.f32.mrf.mxu0 }
  0xe7   :  { %v151_v56 = vadd.f32 %v411_v53, %v70_v54 }
  0xe8   :  { %v413_v57 = vpop.f32.mrf.mxu0 }
  0xe9   :  { %v414_v59 = vadd.f32 %v413_v57, %v412_v55  ;;  %v226_v61 = vadd.f32 %v225_v58, %v151_v56 }
  0xeb   :  { %v156_v60 = vadd.f32 %v414_v59, %v75_v49  ;;  %v236_v63 = vmul.f32 0.2, %v226_v61  ;;  %vm234_vm3 = vcmp.ge.f32.partialorder %v226_v61, 0.0 }
  0xed   :  { %v231_v62 = vadd.f32 %v436_v52, %v156_v60  ;;  %v238_v3 = vsel %vm234_vm3, %v226_v61, %v236_v63 }
  0xef   :  { %vm235_vm2 = vcmp.ge.f32.partialorder %v231_v62, 0.0  ;;  %v237_v0 = vmul.f32 0.2, %v231_v62 }
  0xf1   :  { %v239_v1 = vsel %vm235_vm2, %v231_v62, %v237_v0 }
  0xf2   :  { %438 = vmatpush3.msra.mxu1 %v239_v1 }
  0xf3   :  { %439 = vmatprep.subr.mxu1 %v456_v46 }
  0xf4   :  { %440 = vmatpush3.msra.mxu1 %v238_v3 }
  0xf5   :  { %442 = vmatmul.mubr.msk.f32.vlgmr.msra.gmra.mxu1 %vm261_vm4, %v240_v2 }
  0xf6   :  { %444 = vmatprep.mubr.msk.f32.mxu1 %vm457_vm1, %v456_v46 }
  0xf9   :  { %445 = vmatmul.mubr.msk.f32.gmra.mxu1 %vm261_vm4, %v241_v4 }
  0xfa   :  { %447 = vmatprep.mubr.msk.f32.mxu1 %vm457_vm1, %v456_v46 }
  0xfd   :  { %448 = vmatmul.mubr.msk.f32.gmra.mxu1 %vm261_vm4, %v242_v5 }
 0x1b5   :  { %v337_v7 = vpop.f32.mrf.mxu1 }
 0x1b6   :  { %v338_v8 = vadd.f32 %v337_v7, %v249_v6 }
 0x1b7   :  { %v443_v10 = vpop.f32.mrf.mxu1 }
 0x1b8   :  { %v353_v14 = vmul.f32 %v351_v9, %v338_v8 }
 0x1b9   :  { %v342_v12 = vpop.f32.mrf.mxu1 }
 0x1ba   :  { %v343_v15 = vadd.f32 %v342_v12, %v254_v11  ;;  %v356_v19 = vsel %vm355_vm5, %v353_v14, 0.0 }
 0x1bb   :  { %v446_v16 = vpop.f32.mrf.mxu1 }
 0x1bc   :  { %v354_v17 = vmul.f32 %v352_v13, %v343_v15 }
 0x1bd   :  { %v347_v18 = vpop.f32.mrf.mxu1 }
 0x1be   :  { %v357_v20 = vsel %vm355_vm5, %v354_v17, 0.0  ;;  %v348_v29 = vadd.f32 %v347_v18, %v259_v28 }
 0x1bf   :  { %v358_v21 = vadd.f32 %v357_v20, %v356_v19  ;;  %v449_v22 = vpop.f32.mrf.mxu1 }
 0x1c1   :  { %v359_v23 = vrot.slane %v358_v21, 4 }
 0x1c3   :  { %v360_v24 = vadd.f32 %v359_v23, %v358_v21 }
 0x1c5   :  { %v361_v25 = vrot.slane %v360_v24, 2 }
 0x1c7   :  { %v362_v26 = vadd.f32 %v361_v25, %v360_v24 }
 0x1c9   :  { %v363_v27 = vrot.slane %v362_v26, 1 }
 0x1cb   :  { %v364_v30 = vadd.f32 %v363_v27, %v362_v26 }
 0x1cd   :  { %v365_v31 = vadd.f32 %v364_v30, %v348_v29 }
 0x1cf   :  { %367 = vst.msk [vmem:[%s661_s6] sm:$0x1] %vm366_vm6, %v365_v31 }

</bundles_post_ra>
